<compile_context>
chip_gen: v7x
topology: tpu7x:2x2x1
jax: 0.10.0
libtpu: 0.0.40
codegen_flags: <defaults>
</compile_context>

<pallas_src>
import functools

import numpy as np
import jax
import jax.numpy as jnp
from jax.experimental import pallas as pl
from jax.experimental.pallas import tpu as pltpu

_EPS = 1e-8                           # modules.PixelNorm epsilon
_LRELU_SLOPE = 0.2                    # nn.LeakyReLU(negative_slope=0.2)
_RGB_LANES = 128                      # pad the 3-channel to_rgb output to a full lane group
_VMEM_LIMIT_BYTES = 48 * 1024 * 1024  # safe on v5e/v6e (128 MiB phys) and v7x (64 MiB phys)
_TILE_VMEM_BUDGET = 24 * 1024 * 1024  # target per-grid-step working set (drives tile_h)


def _pixelnorm(x):
    # x / sqrt(mean(x^2, channel) + eps)  ==  x * rsqrt(...)   (rsqrt -> EUP slot)
    return x * jax.lax.rsqrt(jnp.mean(x * x, axis=-1, keepdims=True) + _EPS)


def _lrelu(x):
    return jnp.where(x >= 0.0, x, _LRELU_SLOPE * x)


# ----------------------------------------------------------------------------
# Pallas kernels
# ----------------------------------------------------------------------------
def _fc1_kernel(z_ref, w_ref, b_ref, o_ref):
    """PixelNorm(z) -> EqualizedLinear (bf16 MXU matmul, f32 acc) -> + bias."""
    z = _pixelnorm(z_ref[...].astype(jnp.float32))                 # norm over latent dim
    acc = jnp.dot(z.astype(jnp.bfloat16), w_ref[...],
                  preferred_element_type=jnp.float32)
    acc = acc + b_ref[...]
    o_ref[...] = acc.astype(o_ref.dtype)


def _conv_block_kernel(*refs, th, wp, cout, prenorm, fuse_rgb):
    """3x3 pad-1 conv as 9 shifted-row matmuls on a zero-padded row slab, with a fused
    norm(lrelu(.)) epilogue and optional fused to_rgb 1x1 conv (lane-padded output)."""
    if fuse_rgb:
        x_ref, w_ref, b_ref, rw_ref, rb_ref, o_ref = refs
    else:
        x_ref, w_ref, b_ref, o_ref = refs

    x = x_ref[...]                                                 # (R, Cin) bf16 row slab
    if prenorm:
        # norm(lrelu(.)) of the conv *input* (used for the fc1 path of the initial block);
        # zero-padding rows stay zero, so applying it to the padded slab is equivalent.
        x = _pixelnorm(_lrelu(x.astype(jnp.float32))).astype(jnp.bfloat16)

    rows = th * wp
    acc = jnp.zeros((rows, cout), jnp.float32)
    for t in range(9):                                             # unrolled 3x3 taps
        dy, dx = divmod(t, 3)
        off = dy * wp + dx
        acc = acc + jnp.dot(x[off:off + rows, :], w_ref[t],
                            preferred_element_type=jnp.float32)
    acc = acc + b_ref[...]
    acc = _pixelnorm(_lrelu(acc))                                  # norm(lrelu(conv(x)))

    if fuse_rgb:                                                   # to_rgb: 1x1 equalized conv
        rgb = jnp.dot(acc.astype(jnp.bfloat16), rw_ref[...],
                      preferred_element_type=jnp.float32) + rb_ref[...]
        o_ref[...] = rgb                                           # (rows, 128) lane-dense f32
    else:
        o_ref[...] = acc.astype(o_ref.dtype)                       # (rows, Cout) bf16


# ----------------------------------------------------------------------------
# Wrappers (pallas_call setup + data-movement glue)
# ----------------------------------------------------------------------------
def fc1_forward(z, w, b):
    """z: (B, latent) f32, w: (latent, h0*w0*C) bf16 (pixel-major cols), b: (1, h0*w0*C) f32."""
    B, latent = z.shape
    PC = w.shape[1]
    return pl.pallas_call(
        _fc1_kernel,
        out_shape=jax.ShapeDtypeStruct((B, PC), jnp.bfloat16),
        grid=(1,),
        in_specs=[pl.BlockSpec((B, latent), lambda i: (0, 0)),
                  pl.BlockSpec((latent, PC), lambda i: (0, 0)),
                  pl.BlockSpec((1, PC), lambda i: (0, 0))],
        out_specs=pl.BlockSpec((B, PC), lambda i: (0, 0)),
        compiler_params=pltpu.CompilerParams(
            dimension_semantics=("arbitrary",),
            vmem_limit_bytes=_VMEM_LIMIT_BYTES),
    )(z, w, b)


def _pick_tile_h(H, W, cin, cout, out_lanes):
    """Largest divisor of H whose per-grid-step working set fits the VMEM budget
    (tiles divide evenly -> no padding, no tail slicing)."""
    wp = W + 2
    for th in sorted((d for d in range(1, H + 1) if H % d == 0), reverse=True):
        rows_in = (th + 2) * wp + 2
        rows = th * wp
        est = (2 * rows_in * cin * 2            # double-buffered bf16 input slab
               + rows * cout * 4                # f32 accumulator
               + 2 * 9 * cin * cout * 2         # bf16 weights (conservatively x2)
               + 2 * rows * out_lanes * 4)      # double-buffered output tile
        if est <= _TILE_VMEM_BUDGET:
            return th
    return 1


def conv3x3_block(x, w9, b, *, prenorm=False, rgb_w=None, rgb_b=None):
    """Fused 3x3 pad=1 EqualizedConv2d -> LeakyReLU(0.2) -> PixelNorm, optional fused to_rgb.

    x:  (N, H, W, Cin) NHWC (bf16), w9: (9, Cin, Cout) bf16, b: (1, Cout) f32.
    Returns (N, H, W, Cout) bf16, or (N, H, W, _RGB_LANES) f32 when rgb_w is given.
    """
    x = x.astype(jnp.bfloat16)
    N, H, W, Cin = x.shape
    Cout = w9.shape[-1]
    fuse_rgb = rgb_w is not None
    out_c = _RGB_LANES if fuse_rgb else Cout
    out_dt = jnp.float32 if fuse_rgb else jnp.bfloat16

    th = _pick_tile_h(H, W, Cin, Cout, out_c)
    n_t = H // th
    wp = W + 2
    rows = th * wp
    R = (th + 2) * wp + 2      # +2 so the (dy=2, dx=2) shifted window stays in bounds

    # Zero-pad spatially once, then flatten each (batch, H-tile) halo slab to rows of pixels.
    xp = jnp.pad(x, ((0, 0), (1, 1), (1, 1), (0, 0)))              # (N, H+2, W+2, Cin)
    slabs = jnp.stack(
        [xp[:, i * th: i * th + th + 2].reshape(N, (th + 2) * wp, Cin) for i in range(n_t)],
        axis=1)                                                    # (N, n_t, (th+2)*wp, Cin)
    slabs = jnp.pad(slabs, ((0, 0), (0, 0), (0, R - (th + 2) * wp), (0, 0)))

    in_specs = [
        pl.BlockSpec((None, None, R, Cin), lambda n, t: (n, t, 0, 0)),
        pl.BlockSpec((9, Cin, Cout), lambda n, t: (0, 0, 0)),
        pl.BlockSpec((1, Cout), lambda n, t: (0, 0)),
    ]
    args = [slabs, w9, b]
    if fuse_rgb:
        in_specs += [pl.BlockSpec((Cout, _RGB_LANES), lambda n, t: (0, 0)),
                     pl.BlockSpec((1, _RGB_LANES), lambda n, t: (0, 0))]
        args += [rgb_w, rgb_b]

    kernel = functools.partial(_conv_block_kernel, th=th, wp=wp, cout=Cout,
                               prenorm=prenorm, fuse_rgb=fuse_rgb)
    out = pl.pallas_call(
        kernel,
        out_shape=jax.ShapeDtypeStruct((N, n_t, rows, out_c), out_dt),
        grid=(N, n_t),
        in_specs=in_specs,
        out_specs=pl.BlockSpec((None, None, rows, out_c), lambda n, t: (n, t, 0, 0)),
        compiler_params=pltpu.CompilerParams(
            dimension_semantics=("parallel", "parallel"),
            vmem_limit_bytes=_VMEM_LIMIT_BYTES),
    )(*args)

    # Drop the two junk columns per padded row (row pitch wp = W+2 inside the kernel) and
    # restore NHWC.  This trim fuses with the next layer's upsample/pad glue in XLA.
    out = out.reshape(N, n_t, th, wp, out_c)[:, :, :, :W, :]
    return out.reshape(N, H, W, out_c)


def _upsample_nearest_2x(x):
    """modules.NearestInterpolate(scale_factor=2) on NHWC — data-movement glue."""
    return jnp.repeat(jnp.repeat(x, 2, axis=1), 2, axis=2)


# ----------------------------------------------------------------------------
# Generator forward (ProGANGeneratorBlock semantics, stacked as in ProGANGenerator)
# ----------------------------------------------------------------------------
def progan_generator_forward(z, params, scale, h0=4, w0=4):
    """Runs `scale` ProGANGeneratorBlocks and returns blocks[scale-1].rgb(x) as NCHW f32."""
    B = z.shape[0]
    x = None
    for i in range(scale):
        blk = params[i]
        out_dim = blk["conv2_w"].shape[-1]
        last = i == scale - 1
        if i == 0:
            # x = norm(x); x = fc1(x); x = x.view(B, C, h0, w0)
            # (pixel-major fc1 columns -> the NHWC reshape below is free; the following
            #  norm(lrelu(.)) is fused into conv2's prologue via prenorm=True)
            y = fc1_forward(z, blk["fc1_w"], blk["fc1_b"])
            x = y.reshape(B, h0, w0, out_dim)
            pre = True
        else:
            # x = upsample(x); x = norm(lrelu(conv1(x)))
            x = _upsample_nearest_2x(x)
            x = conv3x3_block(x, blk["conv1_w"], blk["conv1_b"], prenorm=False)
            pre = False
        # x = norm(lrelu(conv2(x)))   [+ fused to_rgb on the final block]
        if last:
            rgb = conv3x3_block(x, blk["conv2_w"], blk["conv2_b"], prenorm=pre,
                                rgb_w=blk["rgb_w"], rgb_b=blk["rgb_b"])
            return rgb[..., :3].transpose(0, 3, 1, 2).astype(jnp.float32)   # NCHW
        x = conv3x3_block(x, blk["conv2_w"], blk["conv2_b"], prenorm=pre)
    raise ValueError("scale must be >= 1")


# ----------------------------------------------------------------------------
# Synthetic parameters (equalized-LR scale folded in at setup time)
# ----------------------------------------------------------------------------
def _feature_dims_for_block(i, cap, base_exp):
    # Real module: cap=512, base_exp=13.  Scaled down for the small test below.
    return (min(cap, 2 ** (base_exp - i)), min(cap, 2 ** (base_exp - i - 1)))


def init_generator_params(key, max_scale, cap=32, base_exp=6, h0=4, w0=4):
    """Deterministic synthetic params.  Equalized-LR scaling (gain / sqrt(fan_in)) is folded
    into the weights (matches SBGAN.modules Equalized* semantics).  Conv weights are stored
    as (9, Cin, Cout) (tap-major), fc1 columns pixel-major, to_rgb lane-padded to 128."""
    params = []
    for i in range(max_scale):
        in_dim, out_dim = _feature_dims_for_block(i, cap, base_exp)
        key, *ks = jax.random.split(key, 7)
        blk = {}
        if i == 0:
            s = (np.sqrt(2) / 4) / np.sqrt(in_dim)                        # fc1 gain = sqrt(2)/4
            w = jax.random.normal(ks[0], (in_dim, h0 * w0, out_dim), jnp.float32) * s
            blk["fc1_w"] = w.reshape(in_dim, h0 * w0 * out_dim).astype(jnp.bfloat16)
            blk["fc1_b"] = jax.random.normal(ks[1], (1, h0 * w0 * out_dim), jnp.float32) * 0.01
        else:
            s = np.sqrt(2) / np.sqrt(in_dim * 9)                          # conv1 gain = sqrt(2)
            w1 = jax.random.normal(ks[0], (3, 3, in_dim, out_dim), jnp.float32) * s
            blk["conv1_w"] = w1.reshape(9, in_dim, out_dim).astype(jnp.bfloat16)
            blk["conv1_b"] = jax.random.normal(ks[1], (1, out_dim), jnp.float32) * 0.01
        s = np.sqrt(2) / np.sqrt(out_dim * 9)                             # conv2 gain = sqrt(2)
        w2 = jax.random.normal(ks[2], (3, 3, out_dim, out_dim), jnp.float32) * s
        blk["conv2_w"] = w2.reshape(9, out_dim, out_dim).astype(jnp.bfloat16)
        blk["conv2_b"] = jax.random.normal(ks[3], (1, out_dim), jnp.float32) * 0.01
        s = 1.0 / np.sqrt(out_dim)                                        # to_rgb 1x1, gain = 1
        rgb_w = jax.random.normal(ks[4], (out_dim, 3), jnp.float32) * s
        blk["rgb_w"] = jnp.pad(rgb_w, ((0, 0), (0, _RGB_LANES - 3))).astype(jnp.bfloat16)
        rgb_b = jax.random.normal(ks[5], (1, 3), jnp.float32) * 0.01
        blk["rgb_b"] = jnp.pad(rgb_b, ((0, 0), (0, _RGB_LANES - 3)))
        params.append(blk)
    return params


if __name__ == "__main__":
    # Small stand-in for ProGANGenerator(latent_dim=512, max_dim=128):
    # channel cap 32 instead of 512, max_dim 8 instead of 128.
    cap, base_exp = 32, 6
    max_dim = 8
    max_scale = int(np.log2(max_dim)) - 1            # = 2 blocks
    scale = max_scale                                # output res = 2 ** (scale + 1) = 8
    B = 2
    latent = _feature_dims_for_block(0, cap, base_exp)[0]    # fc1 in_channels (32 here)

    key = jax.random.PRNGKey(0)
    pkey, zkey = jax.random.split(key)
    params = init_generator_params(pkey, max_scale, cap=cap, base_exp=base_exp)
    z = jax.random.normal(zkey, (B, latent), jnp.float32)

    fwd = jax.jit(progan_generator_forward, static_argnums=(2,))
    out = jax.block_until_ready(fwd(z, params, scale))
    assert out.shape == (B, 3, 2 ** (scale + 1), 2 ** (scale + 1)), out.shape
    assert bool(jnp.all(jnp.isfinite(out)))
    print("KERNEL_OK")
</pallas_src>

<mosaic_0001>
module attributes {stable_mosaic.version = 11 : i64} {
  func.func @_fc1_kernel(%arg0: i32, %arg1: memref<2x32xf32, #tpu.memory_space<vmem>>, %arg2: memref<32x512xbf16, #tpu.memory_space<vmem>>, %arg3: memref<1x512xf32, #tpu.memory_space<vmem>>, %arg4: memref<2x512xbf16, #tpu.memory_space<vmem>>) attributes {dimension_semantics = [#tpu.dimension_semantics<arbitrary>], iteration_bounds = array<i64: 1>, scalar_prefetch = 0 : i64, scratch_operands = 0 : i64, tpu.core_type = #tpu.core_type<tc>, window_params = [{pipeline_mode = #tpu.pipeline_mode<synchronous>, transform_indices = @transform_0, window_bounds = array<i64: 2, 32>}, {pipeline_mode = #tpu.pipeline_mode<synchronous>, transform_indices = @transform_1, window_bounds = array<i64: 32, 512>}, {pipeline_mode = #tpu.pipeline_mode<synchronous>, transform_indices = @transform_2, window_bounds = array<i64: 1, 512>}, {pipeline_mode = #tpu.pipeline_mode<synchronous>, transform_indices = @transform_3, window_bounds = array<i64: 2, 512>}]} {
    %c0 = arith.constant 0 : index
    %c0_0 = arith.constant 0 : index
    %0 = vector.load %arg1[%c0, %c0_0] : memref<2x32xf32, #tpu.memory_space<vmem>>, vector<2x32xf32>
    %1 = arith.mulf %0, %0 : vector<2x32xf32>
    %cst = arith.constant dense<0.000000e+00> : vector<2xf32>
    %2 = vector.multi_reduction <add>, %1, %cst [1] : vector<2x32xf32> to vector<2xf32>
    %3 = vector.shape_cast %2 : vector<2xf32> to vector<2x1xf32>
    %cst_1 = arith.constant 3.200000e+01 : f32
    %4 = vector.broadcast %cst_1 : f32 to vector<2x1xf32>
    %5 = arith.divf %3, %4 : vector<2x1xf32>
    %cst_2 = arith.constant 9.99999993E-9 : f32
    %6 = vector.broadcast %cst_2 : f32 to vector<2x1xf32>
    %7 = arith.addf %5, %6 : vector<2x1xf32>
    %8 = math.rsqrt %7 : vector<2x1xf32>
    %9 = vector.broadcast %8 : vector<2x1xf32> to vector<2x32xf32>
    %10 = arith.mulf %0, %9 : vector<2x32xf32>
    %11 = arith.truncf %10 : vector<2x32xf32> to vector<2x32xbf16>
    %c0_3 = arith.constant 0 : index
    %c0_4 = arith.constant 0 : index
    %12 = vector.load %arg2[%c0_3, %c0_4] : memref<32x512xbf16, #tpu.memory_space<vmem>>, vector<32x512xbf16>
    %cst_5 = arith.constant dense<0.000000e+00> : vector<2x512xf32>
    %13 = tpu.matmul %11, %12, %cst_5 {dimension_numbers = #tpu.dot_dimension_numbers<[1], [0], [0], [1], [0, 0, 1, 1], [], []>} : vector<2x32xbf16>, vector<32x512xbf16>, vector<2x512xf32> -> vector<2x512xf32>
    %c0_6 = arith.constant 0 : index
    %c0_7 = arith.constant 0 : index
    %14 = vector.load %arg3[%c0_6, %c0_7] : memref<1x512xf32, #tpu.memory_space<vmem>>, vector<1x512xf32>
    %15 = vector.broadcast %14 : vector<1x512xf32> to vector<2x512xf32>
    %16 = arith.addf %13, %15 : vector<2x512xf32>
    %17 = arith.truncf %16 : vector<2x512xf32> to vector<2x512xbf16>
    %c0_8 = arith.constant 0 : index
    %c0_9 = arith.constant 0 : index
    %18 = vector.load %arg4[%c0_8, %c0_9] : memref<2x512xbf16, #tpu.memory_space<vmem>>, vector<2x512xbf16>
    tpu.vector_store %arg4[%c0_8, %c0_9], %17 {strides = array<i32>} : memref<2x512xbf16, #tpu.memory_space<vmem>>, vector<2x512xbf16>,
    return
  }
  func.func @transform_0(%arg0: i32) -> (i32, i32) {
    %c0_i32 = arith.constant 0 : i32
    %c0_i32_0 = arith.constant 0 : i32
    %c0_i32_1 = arith.constant 0 : i32
    return %c0_i32, %c0_i32_0 : i32, i32
  }
  func.func @transform_1(%arg0: i32) -> (i32, i32) {
    %c0_i32 = arith.constant 0 : i32
    %c0_i32_0 = arith.constant 0 : i32
    %c0_i32_1 = arith.constant 0 : i32
    return %c0_i32, %c0_i32_0 : i32, i32
  }
  func.func @transform_2(%arg0: i32) -> (i32, i32) {
    %c0_i32 = arith.constant 0 : i32
    %c0_i32_0 = arith.constant 0 : i32
    %c0_i32_1 = arith.constant 0 : i32
    return %c0_i32, %c0_i32_0 : i32, i32
  }
  func.func @transform_3(%arg0: i32) -> (i32, i32) {
    %c0_i32 = arith.constant 0 : i32
    %c0_i32_0 = arith.constant 0 : i32
    %c0_i32_1 = arith.constant 0 : i32
    return %c0_i32, %c0_i32_0 : i32, i32
  }
}

module attributes {stable_mosaic.version = 11 : i64} {
  func.func @_conv_block_kernel(%arg0: i32, %arg1: i32, %arg2: memref<1x1x38x32xbf16, #tpu.memory_space<vmem>>, %arg3: memref<9x32x32xbf16, #tpu.memory_space<vmem>>, %arg4: memref<1x32xf32, #tpu.memory_space<vmem>>, %arg5: memref<1x1x24x32xbf16, #tpu.memory_space<vmem>>) attributes {dimension_semantics = [#tpu.dimension_semantics<parallel>, #tpu.dimension_semantics<parallel>], iteration_bounds = array<i64: 2, 1>, scalar_prefetch = 0 : i64, scratch_operands = 0 : i64, tpu.core_type = #tpu.core_type<tc>, window_params = [{transform_indices = @transform_0, window_bounds = array<i64: 1, 1, 38, 32>}, {pipeline_mode = #tpu.pipeline_mode<synchronous>, transform_indices = @transform_1, window_bounds = array<i64: 9, 32, 32>}, {pipeline_mode = #tpu.pipeline_mode<synchronous>, transform_indices = @transform_2, window_bounds = array<i64: 1, 32>}, {transform_indices = @transform_3, window_bounds = array<i64: 1, 1, 24, 32>}]} {
    %c0 = arith.constant 0 : index
    %c0_0 = arith.constant 0 : index
    %c0_1 = arith.constant 0 : index
    %c0_2 = arith.constant 0 : index
    %0 = vector.load %arg2[%c0, %c0_0, %c0_1, %c0_2] : memref<1x1x38x32xbf16, #tpu.memory_space<vmem>>, vector<1x1x38x32xbf16>
    %1 = vector.shape_cast %0 : vector<1x1x38x32xbf16> to vector<38x32xbf16>
    %2 = arith.extf %1 : vector<38x32xbf16> to vector<38x32xf32>
    %cst = arith.constant 0.000000e+00 : f32
    %3 = vector.broadcast %cst : f32 to vector<38x32xf32>
    %4 = arith.cmpf oge, %2, %3 : vector<38x32xf32>
    %cst_3 = arith.constant 2.000000e-01 : f32
    %5 = vector.broadcast %cst_3 : f32 to vector<38x32xf32>
    %6 = arith.mulf %5, %2 : vector<38x32xf32>
    %7 = arith.select %4, %2, %6 : vector<38x32xi1>, vector<38x32xf32>
    %8 = arith.mulf %7, %7 : vector<38x32xf32>
    %cst_4 = arith.constant dense<0.000000e+00> : vector<38xf32>
    %9 = vector.multi_reduction <add>, %8, %cst_4 [1] : vector<38x32xf32> to vector<38xf32>
    %10 = vector.shape_cast %9 : vector<38xf32> to vector<38x1xf32>
    %cst_5 = arith.constant 3.200000e+01 : f32
    %11 = vector.broadcast %cst_5 : f32 to vector<38x1xf32>
    %12 = arith.divf %10, %11 : vector<38x1xf32>
    %cst_6 = arith.constant 9.99999993E-9 : f32
    %13 = vector.broadcast %cst_6 : f32 to vector<38x1xf32>
    %14 = arith.addf %12, %13 : vector<38x1xf32>
    %15 = math.rsqrt %14 : vector<38x1xf32>
    %16 = vector.broadcast %15 : vector<38x1xf32> to vector<38x32xf32>
    %17 = arith.mulf %7, %16 : vector<38x32xf32>
    %18 = arith.truncf %17 : vector<38x32xf32> to vector<38x32xbf16>
    %cst_7 = arith.constant 0.000000e+00 : f32
    %19 = vector.broadcast %cst_7 : f32 to vector<24x32xf32>
    %20 = vector.extract_strided_slice %18 {offsets = [0, 0], sizes = [24, 32], strides = [1, 1]} : vector<38x32xbf16> to vector<24x32xbf16>
    %c0_8 = arith.constant 0 : index
    %c0_9 = arith.constant 0 : index
    %c0_10 = arith.constant 0 : index
    %21 = vector.load %arg3[%c0_8, %c0_9, %c0_10] : memref<9x32x32xbf16, #tpu.memory_space<vmem>>, vector<1x32x32xbf16>
    %22 = vector.shape_cast %21 : vector<1x32x32xbf16> to vector<32x32xbf16>
    %cst_11 = arith.constant dense<0.000000e+00> : vector<24x32xf32>
    %23 = tpu.matmul %20, %22, %cst_11 {dimension_numbers = #tpu.dot_dimension_numbers<[1], [0], [0], [1], [0, 0, 1, 1], [], []>} : vector<24x32xbf16>, vector<32x32xbf16>, vector<24x32xf32> -> vector<24x32xf32>
    %24 = arith.addf %19, %23 : vector<24x32xf32>
    %25 = vector.extract_strided_slice %18 {offsets = [1, 0], sizes = [24, 32], strides = [1, 1]} : vector<38x32xbf16> to vector<24x32xbf16>
    %c1 = arith.constant 1 : index
    %c0_12 = arith.constant 0 : index
    %c0_13 = arith.constant 0 : index
    %26 = vector.load %arg3[%c1, %c0_12, %c0_13] : memref<9x32x32xbf16, #tpu.memory_space<vmem>>, vector<1x32x32xbf16>
    %27 = vector.shape_cast %26 : vector<1x32x32xbf16> to vector<32x32xbf16>
    %cst_14 = arith.constant dense<0.000000e+00> : vector<24x32xf32>
    %28 = tpu.matmul %25, %27, %cst_14 {dimension_numbers = #tpu.dot_dimension_numbers<[1], [0], [0], [1], [0, 0, 1, 1], [], []>} : vector<24x32xbf16>, vector<32x32xbf16>, vector<24x32xf32> -> vector<24x32xf32>
    %29 = arith.addf %24, %28 : vector<24x32xf32>
    %30 = vector.extract_strided_slice %18 {offsets = [2, 0], sizes = [24, 32], strides = [1, 1]} : vector<38x32xbf16> to vector<24x32xbf16>
    %c2 = arith.constant 2 : index
    %c0_15 = arith.constant 0 : index
    %c0_16 = arith.constant 0 : index
    %31 = vector.load %arg3[%c2, %c0_15, %c0_16] : memref<9x32x32xbf16, #tpu.memory_space<vmem>>, vector<1x32x32xbf16>
    %32 = vector.shape_cast %31 : vector<1x32x32xbf16> to vector<32x32xbf16>
    %cst_17 = arith.constant dense<0.000000e+00> : vector<24x32xf32>
    %33 = tpu.matmul %30, %32, %cst_17 {dimension_numbers = #tpu.dot_dimension_numbers<[1], [0], [0], [1], [0, 0, 1, 1], [], []>} : vector<24x32xbf16>, vector<32x32xbf16>, vector<24x32xf32> -> vector<24x32xf32>
    %34 = arith.addf %29, %33 : vector<24x32xf32>
    %35 = vector.extract_strided_slice %18 {offsets = [6, 0], sizes = [24, 32], strides = [1, 1]} : vector<38x32xbf16> to vector<24x32xbf16>
    %c3 = arith.constant 3 : index
    %c0_18 = arith.constant 0 : index
    %c0_19 = arith.constant 0 : index
    %36 = vector.load %arg3[%c3, %c0_18, %c0_19] : memref<9x32x32xbf16, #tpu.memory_space<vmem>>, vector<1x32x32xbf16>
    %37 = vector.shape_cast %36 : vector<1x32x32xbf16> to vector<32x32xbf16>
    %cst_20 = arith.constant dense<0.000000e+00> : vector<24x32xf32>
    %38 = tpu.matmul %35, %37, %cst_20 {dimension_numbers = #tpu.dot_dimension_numbers<[1], [0], [0], [1], [0, 0, 1, 1], [], []>} : vector<24x32xbf16>, vector<32x32xbf16>, vector<24x32xf32> -> vector<24x32xf32>
    %39 = arith.addf %34, %38 : vector<24x32xf32>
    %40 = vector.extract_strided_slice %18 {offsets = [7, 0], sizes = [24, 32], strides = [1, 1]} : vector<38x32xbf16> to vector<24x32xbf16>
    %c4 = arith.constant 4 : index
    %c0_21 = arith.constant 0 : index
    %c0_22 = arith.constant 0 : index
    %41 = vector.load %arg3[%c4, %c0_21, %c0_22] : memref<9x32x32xbf16, #tpu.memory_space<vmem>>, vector<1x32x32xbf16>
    %42 = vector.shape_cast %41 : vector<1x32x32xbf16> to vector<32x32xbf16>
    %cst_23 = arith.constant dense<0.000000e+00> : vector<24x32xf32>
    %43 = tpu.matmul %40, %42, %cst_23 {dimension_numbers = #tpu.dot_dimension_numbers<[1], [0], [0], [1], [0, 0, 1, 1], [], []>} : vector<24x32xbf16>, vector<32x32xbf16>, vector<24x32xf32> -> vector<24x32xf32>
    %44 = arith.addf %39, %43 : vector<24x32xf32>
    %45 = vector.extract_strided_slice %18 {offsets = [8, 0], sizes = [24, 32], strides = [1, 1]} : vector<38x32xbf16> to vector<24x32xbf16>
    %c5 = arith.constant 5 : index
    %c0_24 = arith.constant 0 : index
    %c0_25 = arith.constant 0 : index
    %46 = vector.load %arg3[%c5, %c0_24, %c0_25] : memref<9x32x32xbf16, #tpu.memory_space<vmem>>, vector<1x32x32xbf16>
    %47 = vector.shape_cast %46 : vector<1x32x32xbf16> to vector<32x32xbf16>
    %cst_26 = arith.constant dense<0.000000e+00> : vector<24x32xf32>
    %48 = tpu.matmul %45, %47, %cst_26 {dimension_numbers = #tpu.dot_dimension_numbers<[1], [0], [0], [1], [0, 0, 1, 1], [], []>} : vector<24x32xbf16>, vector<32x32xbf16>, vector<24x32xf32> -> vector<24x32xf32>
    %49 = arith.addf %44, %48 : vector<24x32xf32>
    %50 = vector.extract_strided_slice %18 {offsets = [12, 0], sizes = [24, 32], strides = [1, 1]} : vector<38x32xbf16> to vector<24x32xbf16>
    %c6 = arith.constant 6 : index
    %c0_27 = arith.constant 0 : index
    %c0_28 = arith.constant 0 : index
    %51 = vector.load %arg3[%c6, %c0_27, %c0_28] : memref<9x32x32xbf16, #tpu.memory_space<vmem>>, vector<1x32x32xbf16>
    %52 = vector.shape_cast %51 : vector<1x32x32xbf16> to vector<32x32xbf16>
    %cst_29 = arith.constant dense<0.000000e+00> : vector<24x32xf32>
    %53 = tpu.matmul %50, %52, %cst_29 {dimension_numbers = #tpu.dot_dimension_numbers<[1], [0], [0], [1], [0, 0, 1, 1], [], []>} : vector<24x32xbf16>, vector<32x32xbf16>, vector<24x32xf32> -> vector<24x32xf32>
    %54 = arith.addf %49, %53 : vector<24x32xf32>
    %55 = vector.extract_strided_slice %18 {offsets = [13, 0], sizes = [24, 32], strides = [1, 1]} : vector<38x32xbf16> to vector<24x32xbf16>
    %c7 = arith.constant 7 : index
    %c0_30 = arith.constant 0 : index
    %c0_31 = arith.constant 0 : index
    %56 = vector.load %arg3[%c7, %c0_30, %c0_31] : memref<9x32x32xbf16, #tpu.memory_space<vmem>>, vector<1x32x32xbf16>
    %57 = vector.shape_cast %56 : vector<1x32x32xbf16> to vector<32x32xbf16>
    %cst_32 = arith.constant dense<0.000000e+00> : vector<24x32xf32>
    %58 = tpu.matmul %55, %57, %cst_32 {dimension_numbers = #tpu.dot_dimension_numbers<[1], [0], [0], [1], [0, 0, 1, 1], [], []>} : vector<24x32xbf16>, vector<32x32xbf16>, vector<24x32xf32> -> vector<24x32xf32>
    %59 = arith.addf %54, %58 : vector<24x32xf32>
    %60 = vector.extract_strided_slice %18 {offsets = [14, 0], sizes = [24, 32], strides = [1, 1]} : vector<38x32xbf16> to vector<24x32xbf16>
    %c8 = arith.constant 8 : index
    %c0_33 = arith.constant 0 : index
    %c0_34 = arith.constant 0 : index
    %61 = vector.load %arg3[%c8, %c0_33, %c0_34] : memref<9x32x32xbf16, #tpu.memory_space<vmem>>, vector<1x32x32xbf16>
    %62 = vector.shape_cast %61 : vector<1x32x32xbf16> to vector<32x32xbf16>
    %cst_35 = arith.constant dense<0.000000e+00> : vector<24x32xf32>
    %63 = tpu.matmul %60, %62, %cst_35 {dimension_numbers = #tpu.dot_dimension_numbers<[1], [0], [0], [1], [0, 0, 1, 1], [], []>} : vector<24x32xbf16>, vector<32x32xbf16>, vector<24x32xf32> -> vector<24x32xf32>
    %64 = arith.addf %59, %63 : vector<24x32xf32>
    %c0_36 = arith.constant 0 : index
    %c0_37 = arith.constant 0 : index
    %65 = vector.load %arg4[%c0_36, %c0_37] : memref<1x32xf32, #tpu.memory_space<vmem>>, vector<1x32xf32>
    %66 = vector.broadcast %65 : vector<1x32xf32> to vector<24x32xf32>
    %67 = arith.addf %64, %66 : vector<24x32xf32>
    %cst_38 = arith.constant 0.000000e+00 : f32
    %68 = vector.broadcast %cst_38 : f32 to vector<24x32xf32>
    %69 = arith.cmpf oge, %67, %68 : vector<24x32xf32>
    %cst_39 = arith.constant 2.000000e-01 : f32
    %70 = vector.broadcast %cst_39 : f32 to vector<24x32xf32>
    %71 = arith.mulf %70, %67 : vector<24x32xf32>
    %72 = arith.select %69, %67, %71 : vector<24x32xi1>, vector<24x32xf32>
    %73 = arith.mulf %72, %72 : vector<24x32xf32>
    %cst_40 = arith.constant dense<0.000000e+00> : vector<24xf32>
    %74 = vector.multi_reduction <add>, %73, %cst_40 [1] : vector<24x32xf32> to vector<24xf32>
    %75 = vector.shape_cast %74 : vector<24xf32> to vector<24x1xf32>
    %cst_41 = arith.constant 3.200000e+01 : f32
    %76 = vector.broadcast %cst_41 : f32 to vector<24x1xf32>
    %77 = arith.divf %75, %76 : vector<24x1xf32>
    %cst_42 = arith.constant 9.99999993E-9 : f32
    %78 = vector.broadcast %cst_42 : f32 to vector<24x1xf32>
    %79 = arith.addf %77, %78 : vector<24x1xf32>
    %80 = math.rsqrt %79 : vector<24x1xf32>
    %81 = vector.broadcast %80 : vector<24x1xf32> to vector<24x32xf32>
    %82 = arith.mulf %72, %81 : vector<24x32xf32>
    %83 = arith.truncf %82 : vector<24x32xf32> to vector<24x32xbf16>
    %c0_43 = arith.constant 0 : index
    %c0_44 = arith.constant 0 : index
    %c0_45 = arith.constant 0 : index
    %c0_46 = arith.constant 0 : index
    %84 = vector.load %arg5[%c0_43, %c0_44, %c0_45, %c0_46] : memref<1x1x24x32xbf16, #tpu.memory_space<vmem>>, vector<1x1x24x32xbf16>
    %85 = vector.shape_cast %84 : vector<1x1x24x32xbf16> to vector<24x32xbf16>
    %86 = vector.shape_cast %83 : vector<24x32xbf16> to vector<1x1x24x32xbf16>
    tpu.vector_store %arg5[%c0_43, %c0_44, %c0_45, %c0_46], %86 {strides = array<i32>} : memref<1x1x24x32xbf16, #tpu.memory_space<vmem>>, vector<1x1x24x32xbf16>,
    return
  }
  func.func @transform_0(%arg0: i32, %arg1: i32) -> (i32, i32, i32, i32) {
    %c0_i32 = arith.constant 0 : i32
    %c0_i32_0 = arith.constant 0 : i32
    %c0_i32_1 = arith.constant 0 : i32
    return %arg0, %arg1, %c0_i32, %c0_i32_0 : i32, i32, i32, i32
  }
  func.func @transform_1(%arg0: i32, %arg1: i32) -> (i32, i32, i32) {
    %c0_i32 = arith.constant 0 : i32
    %c0_i32_0 = arith.constant 0 : i32
    %c0_i32_1 = arith.constant 0 : i32
    %c0_i32_2 = arith.constant 0 : i32
    return %c0_i32, %c0_i32_0, %c0_i32_1 : i32, i32, i32
  }
  func.func @transform_2(%arg0: i32, %arg1: i32) -> (i32, i32) {
    %c0_i32 = arith.constant 0 : i32
    %c0_i32_0 = arith.constant 0 : i32
    %c0_i32_1 = arith.constant 0 : i32
    return %c0_i32, %c0_i32_0 : i32, i32
  }
  func.func @transform_3(%arg0: i32, %arg1: i32) -> (i32, i32, i32, i32) {
    %c0_i32 = arith.constant 0 : i32
    %c0_i32_0 = arith.constant 0 : i32
    %c0_i32_1 = arith.constant 0 : i32
    return %arg0, %arg1, %c0_i32, %c0_i32_0 : i32, i32, i32, i32
  }
}

module attributes {stable_mosaic.version = 11 : i64} {
  func.func @_conv_block_kernel(%arg0: i32, %arg1: i32, %arg2: memref<1x1x102x32xbf16, #tpu.memory_space<vmem>>, %arg3: memref<9x32x16xbf16, #tpu.memory_space<vmem>>, %arg4: memref<1x16xf32, #tpu.memory_space<vmem>>, %arg5: memref<1x1x80x16xbf16, #tpu.memory_space<vmem>>) attributes {dimension_semantics = [#tpu.dimension_semantics<parallel>, #tpu.dimension_semantics<parallel>], iteration_bounds = array<i64: 2, 1>, scalar_prefetch = 0 : i64, scratch_operands = 0 : i64, tpu.core_type = #tpu.core_type<tc>, window_params = [{transform_indices = @transform_0, window_bounds = array<i64: 1, 1, 102, 32>}, {pipeline_mode = #tpu.pipeline_mode<synchronous>, transform_indices = @transform_1, window_bounds = array<i64: 9, 32, 16>}, {pipeline_mode = #tpu.pipeline_mode<synchronous>, transform_indices = @transform_2, window_bounds = array<i64: 1, 16>}, {transform_indices = @transform_3, window_bounds = array<i64: 1, 1, 80, 16>}]} {
    %c0 = arith.constant 0 : index
    %c0_0 = arith.constant 0 : index
    %c0_1 = arith.constant 0 : index
    %c0_2 = arith.constant 0 : index
    %0 = vector.load %arg2[%c0, %c0_0, %c0_1, %c0_2] : memref<1x1x102x32xbf16, #tpu.memory_space<vmem>>, vector<1x1x102x32xbf16>
    %1 = vector.shape_cast %0 : vector<1x1x102x32xbf16> to vector<102x32xbf16>
    %cst = arith.constant 0.000000e+00 : f32
    %2 = vector.broadcast %cst : f32 to vector<80x16xf32>
    %3 = vector.extract_strided_slice %1 {offsets = [0, 0], sizes = [80, 32], strides = [1, 1]} : vector<102x32xbf16> to vector<80x32xbf16>
    %c0_3 = arith.constant 0 : index
    %c0_4 = arith.constant 0 : index
    %c0_5 = arith.constant 0 : index
    %4 = vector.load %arg3[%c0_3, %c0_4, %c0_5] : memref<9x32x16xbf16, #tpu.memory_space<vmem>>, vector<1x32x16xbf16>
    %5 = vector.shape_cast %4 : vector<1x32x16xbf16> to vector<32x16xbf16>
    %cst_6 = arith.constant dense<0.000000e+00> : vector<80x16xf32>
    %6 = tpu.matmul %3, %5, %cst_6 {dimension_numbers = #tpu.dot_dimension_numbers<[1], [0], [0], [1], [0, 0, 1, 1], [], []>} : vector<80x32xbf16>, vector<32x16xbf16>, vector<80x16xf32> -> vector<80x16xf32>
    %7 = arith.addf %2, %6 : vector<80x16xf32>
    %8 = vector.extract_strided_slice %1 {offsets = [1, 0], sizes = [80, 32], strides = [1, 1]} : vector<102x32xbf16> to vector<80x32xbf16>
    %c1 = arith.constant 1 : index
    %c0_7 = arith.constant 0 : index
    %c0_8 = arith.constant 0 : index
    %9 = vector.load %arg3[%c1, %c0_7, %c0_8] : memref<9x32x16xbf16, #tpu.memory_space<vmem>>, vector<1x32x16xbf16>
    %10 = vector.shape_cast %9 : vector<1x32x16xbf16> to vector<32x16xbf16>
    %cst_9 = arith.constant dense<0.000000e+00> : vector<80x16xf32>
    %11 = tpu.matmul %8, %10, %cst_9 {dimension_numbers = #tpu.dot_dimension_numbers<[1], [0], [0], [1], [0, 0, 1, 1], [], []>} : vector<80x32xbf16>, vector<32x16xbf16>, vector<80x16xf32> -> vector<80x16xf32>
    %12 = arith.addf %7, %11 : vector<80x16xf32>
    %13 = vector.extract_strided_slice %1 {offsets = [2, 0], sizes = [80, 32], strides = [1, 1]} : vector<102x32xbf16> to vector<80x32xbf16>
    %c2 = arith.constant 2 : index
    %c0_10 = arith.constant 0 : index
    %c0_11 = arith.constant 0 : index
    %14 = vector.load %arg3[%c2, %c0_10, %c0_11] : memref<9x32x16xbf16, #tpu.memory_space<vmem>>, vector<1x32x16xbf16>
    %15 = vector.shape_cast %14 : vector<1x32x16xbf16> to vector<32x16xbf16>
    %cst_12 = arith.constant dense<0.000000e+00> : vector<80x16xf32>
    %16 = tpu.matmul %13, %15, %cst_12 {dimension_numbers = #tpu.dot_dimension_numbers<[1], [0], [0], [1], [0, 0, 1, 1], [], []>} : vector<80x32xbf16>, vector<32x16xbf16>, vector<80x16xf32> -> vector<80x16xf32>
    %17 = arith.addf %12, %16 : vector<80x16xf32>
    %18 = vector.extract_strided_slice %1 {offsets = [10, 0], sizes = [80, 32], strides = [1, 1]} : vector<102x32xbf16> to vector<80x32xbf16>
    %c3 = arith.constant 3 : index
    %c0_13 = arith.constant 0 : index
    %c0_14 = arith.constant 0 : index
    %19 = vector.load %arg3[%c3, %c0_13, %c0_14] : memref<9x32x16xbf16, #tpu.memory_space<vmem>>, vector<1x32x16xbf16>
    %20 = vector.shape_cast %19 : vector<1x32x16xbf16> to vector<32x16xbf16>
    %cst_15 = arith.constant dense<0.000000e+00> : vector<80x16xf32>
    %21 = tpu.matmul %18, %20, %cst_15 {dimension_numbers = #tpu.dot_dimension_numbers<[1], [0], [0], [1], [0, 0, 1, 1], [], []>} : vector<80x32xbf16>, vector<32x16xbf16>, vector<80x16xf32> -> vector<80x16xf32>
    %22 = arith.addf %17, %21 : vector<80x16xf32>
    %23 = vector.extract_strided_slice %1 {offsets = [11, 0], sizes = [80, 32], strides = [1, 1]} : vector<102x32xbf16> to vector<80x32xbf16>
    %c4 = arith.constant 4 : index
    %c0_16 = arith.constant 0 : index
    %c0_17 = arith.constant 0 : index
    %24 = vector.load %arg3[%c4, %c0_16, %c0_17] : memref<9x32x16xbf16, #tpu.memory_space<vmem>>, vector<1x32x16xbf16>
    %25 = vector.shape_cast %24 : vector<1x32x16xbf16> to vector<32x16xbf16>
    %cst_18 = arith.constant dense<0.000000e+00> : vector<80x16xf32>
    %26 = tpu.matmul %23, %25, %cst_18 {dimension_numbers = #tpu.dot_dimension_numbers<[1], [0], [0], [1], [0, 0, 1, 1], [], []>} : vector<80x32xbf16>, vector<32x16xbf16>, vector<80x16xf32> -> vector<80x16xf32>
    %27 = arith.addf %22, %26 : vector<80x16xf32>
    %28 = vector.extract_strided_slice %1 {offsets = [12, 0], sizes = [80, 32], strides = [1, 1]} : vector<102x32xbf16> to vector<80x32xbf16>
    %c5 = arith.constant 5 : index
    %c0_19 = arith.constant 0 : index
    %c0_20 = arith.constant 0 : index
    %29 = vector.load %arg3[%c5, %c0_19, %c0_20] : memref<9x32x16xbf16, #tpu.memory_space<vmem>>, vector<1x32x16xbf16>
    %30 = vector.shape_cast %29 : vector<1x32x16xbf16> to vector<32x16xbf16>
    %cst_21 = arith.constant dense<0.000000e+00> : vector<80x16xf32>
    %31 = tpu.matmul %28, %30, %cst_21 {dimension_numbers = #tpu.dot_dimension_numbers<[1], [0], [0], [1], [0, 0, 1, 1], [], []>} : vector<80x32xbf16>, vector<32x16xbf16>, vector<80x16xf32> -> vector<80x16xf32>
    %32 = arith.addf %27, %31 : vector<80x16xf32>
    %33 = vector.extract_strided_slice %1 {offsets = [20, 0], sizes = [80, 32], strides = [1, 1]} : vector<102x32xbf16> to vector<80x32xbf16>
    %c6 = arith.constant 6 : index
    %c0_22 = arith.constant 0 : index
    %c0_23 = arith.constant 0 : index
    %34 = vector.load %arg3[%c6, %c0_22, %c0_23] : memref<9x32x16xbf16, #tpu.memory_space<vmem>>, vector<1x32x16xbf16>
    %35 = vector.shape_cast %34 : vector<1x32x16xbf16> to vector<32x16xbf16>
    %cst_24 = arith.constant dense<0.000000e+00> : vector<80x16xf32>
    %36 = tpu.matmul %33, %35, %cst_24 {dimension_numbers = #tpu.dot_dimension_numbers<[1], [0], [0], [1], [0, 0, 1, 1], [], []>} : vector<80x32xbf16>, vector<32x16xbf16>, vector<80x16xf32> -> vector<80x16xf32>
    %37 = arith.addf %32, %36 : vector<80x16xf32>
    %38 = vector.extract_strided_slice %1 {offsets = [21, 0], sizes = [80, 32], strides = [1, 1]} : vector<102x32xbf16> to vector<80x32xbf16>
    %c7 = arith.constant 7 : index
    %c0_25 = arith.constant 0 : index
    %c0_26 = arith.constant 0 : index
    %39 = vector.load %arg3[%c7, %c0_25, %c0_26] : memref<9x32x16xbf16, #tpu.memory_space<vmem>>, vector<1x32x16xbf16>
    %40 = vector.shape_cast %39 : vector<1x32x16xbf16> to vector<32x16xbf16>
    %cst_27 = arith.constant dense<0.000000e+00> : vector<80x16xf32>
    %41 = tpu.matmul %38, %40, %cst_27 {dimension_numbers = #tpu.dot_dimension_numbers<[1], [0], [0], [1], [0, 0, 1, 1], [], []>} : vector<80x32xbf16>, vector<32x16xbf16>, vector<80x16xf32> -> vector<80x16xf32>
    %42 = arith.addf %37, %41 : vector<80x16xf32>
    %43 = vector.extract_strided_slice %1 {offsets = [22, 0], sizes = [80, 32], strides = [1, 1]} : vector<102x32xbf16> to vector<80x32xbf16>
    %c8 = arith.constant 8 : index
    %c0_28 = arith.constant 0 : index
    %c0_29 = arith.constant 0 : index
    %44 = vector.load %arg3[%c8, %c0_28, %c0_29] : memref<9x32x16xbf16, #tpu.memory_space<vmem>>, vector<1x32x16xbf16>
    %45 = vector.shape_cast %44 : vector<1x32x16xbf16> to vector<32x16xbf16>
    %cst_30 = arith.constant dense<0.000000e+00> : vector<80x16xf32>
    %46 = tpu.matmul %43, %45, %cst_30 {dimension_numbers = #tpu.dot_dimension_numbers<[1], [0], [0], [1], [0, 0, 1, 1], [], []>} : vector<80x32xbf16>, vector<32x16xbf16>, vector<80x16xf32> -> vector<80x16xf32>
    %47 = arith.addf %42, %46 : vector<80x16xf32>
    %c0_31 = arith.constant 0 : index
    %c0_32 = arith.constant 0 : index
    %48 = vector.load %arg4[%c0_31, %c0_32] : memref<1x16xf32, #tpu.memory_space<vmem>>, vector<1x16xf32>
    %49 = vector.broadcast %48 : vector<1x16xf32> to vector<80x16xf32>
    %50 = arith.addf %47, %49 : vector<80x16xf32>
    %cst_33 = arith.constant 0.000000e+00 : f32
    %51 = vector.broadcast %cst_33 : f32 to vector<80x16xf32>
    %52 = arith.cmpf oge, %50, %51 : vector<80x16xf32>
    %cst_34 = arith.constant 2.000000e-01 : f32
    %53 = vector.broadcast %cst_34 : f32 to vector<80x16xf32>
    %54 = arith.mulf %53, %50 : vector<80x16xf32>
    %55 = arith.select %52, %50, %54 : vector<80x16xi1>, vector<80x16xf32>
    %56 = arith.mulf %55, %55 : vector<80x16xf32>
    %cst_35 = arith.constant dense<0.000000e+00> : vector<80xf32>
    %57 = vector.multi_reduction <add>, %56, %cst_35 [1] : vector<80x16xf32> to vector<80xf32>
    %58 = vector.shape_cast %57 : vector<80xf32> to vector<80x1xf32>
    %cst_36 = arith.constant 1.600000e+01 : f32
    %59 = vector.broadcast %cst_36 : f32 to vector<80x1xf32>
    %60 = arith.divf %58, %59 : vector<80x1xf32>
    %cst_37 = arith.constant 9.99999993E-9 : f32
    %61 = vector.broadcast %cst_37 : f32 to vector<80x1xf32>
    %62 = arith.addf %60, %61 : vector<80x1xf32>
    %63 = math.rsqrt %62 : vector<80x1xf32>
    %64 = vector.broadcast %63 : vector<80x1xf32> to vector<80x16xf32>
    %65 = arith.mulf %55, %64 : vector<80x16xf32>
    %66 = arith.truncf %65 : vector<80x16xf32> to vector<80x16xbf16>
    %c0_38 = arith.constant 0 : index
    %c0_39 = arith.constant 0 : index
    %c0_40 = arith.constant 0 : index
    %c0_41 = arith.constant 0 : index
    %67 = vector.load %arg5[%c0_38, %c0_39, %c0_40, %c0_41] : memref<1x1x80x16xbf16, #tpu.memory_space<vmem>>, vector<1x1x80x16xbf16>
    %68 = vector.shape_cast %67 : vector<1x1x80x16xbf16> to vector<80x16xbf16>
    %69 = vector.shape_cast %66 : vector<80x16xbf16> to vector<1x1x80x16xbf16>
    tpu.vector_store %arg5[%c0_38, %c0_39, %c0_40, %c0_41], %69 {strides = array<i32>} : memref<1x1x80x16xbf16, #tpu.memory_space<vmem>>, vector<1x1x80x16xbf16>,
    return
  }
  func.func @transform_0(%arg0: i32, %arg1: i32) -> (i32, i32, i32, i32) {
    %c0_i32 = arith.constant 0 : i32
    %c0_i32_0 = arith.constant 0 : i32
    %c0_i32_1 = arith.constant 0 : i32
    return %arg0, %arg1, %c0_i32, %c0_i32_0 : i32, i32, i32, i32
  }
  func.func @transform_1(%arg0: i32, %arg1: i32) -> (i32, i32, i32) {
    %c0_i32 = arith.constant 0 : i32
    %c0_i32_0 = arith.constant 0 : i32
    %c0_i32_1 = arith.constant 0 : i32
    %c0_i32_2 = arith.constant 0 : i32
    return %c0_i32, %c0_i32_0, %c0_i32_1 : i32, i32, i32
  }
  func.func @transform_2(%arg0: i32, %arg1: i32) -> (i32, i32) {
    %c0_i32 = arith.constant 0 : i32
    %c0_i32_0 = arith.constant 0 : i32
    %c0_i32_1 = arith.constant 0 : i32
    return %c0_i32, %c0_i32_0 : i32, i32
  }
  func.func @transform_3(%arg0: i32, %arg1: i32) -> (i32, i32, i32, i32) {
    %c0_i32 = arith.constant 0 : i32
    %c0_i32_0 = arith.constant 0 : i32
    %c0_i32_1 = arith.constant 0 : i32
    return %arg0, %arg1, %c0_i32, %c0_i32_0 : i32, i32, i32, i32
  }
}

module attributes {stable_mosaic.version = 11 : i64} {
  func.func @_conv_block_kernel(%arg0: i32, %arg1: i32, %arg2: memref<1x1x102x16xbf16, #tpu.memory_space<vmem>>, %arg3: memref<9x16x16xbf16, #tpu.memory_space<vmem>>, %arg4: memref<1x16xf32, #tpu.memory_space<vmem>>, %arg5: memref<16x128xbf16, #tpu.memory_space<vmem>>, %arg6: memref<1x128xf32, #tpu.memory_space<vmem>>, %arg7: memref<1x1x80x128xf32, #tpu.memory_space<vmem>>) attributes {dimension_semantics = [#tpu.dimension_semantics<parallel>, #tpu.dimension_semantics<parallel>], iteration_bounds = array<i64: 2, 1>, scalar_prefetch = 0 : i64, scratch_operands = 0 : i64, tpu.core_type = #tpu.core_type<tc>, window_params = [{transform_indices = @transform_0, window_bounds = array<i64: 1, 1, 102, 16>}, {pipeline_mode = #tpu.pipeline_mode<synchronous>, transform_indices = @transform_1, window_bounds = array<i64: 9, 16, 16>}, {pipeline_mode = #tpu.pipeline_mode<synchronous>, transform_indices = @transform_2, window_bounds = array<i64: 1, 16>}, {pipeline_mode = #tpu.pipeline_mode<synchronous>, transform_indices = @transform_3, window_bounds = array<i64: 16, 128>}, {pipeline_mode = #tpu.pipeline_mode<synchronous>, transform_indices = @transform_4, window_bounds = array<i64: 1, 128>}, {transform_indices = @transform_5, window_bounds = array<i64: 1, 1, 80, 128>}]} {
    %c0 = arith.constant 0 : index
    %c0_0 = arith.constant 0 : index
    %c0_1 = arith.constant 0 : index
    %c0_2 = arith.constant 0 : index
    %0 = vector.load %arg2[%c0, %c0_0, %c0_1, %c0_2] : memref<1x1x102x16xbf16, #tpu.memory_space<vmem>>, vector<1x1x102x16xbf16>
    %1 = vector.shape_cast %0 : vector<1x1x102x16xbf16> to vector<102x16xbf16>
    %cst = arith.constant 0.000000e+00 : f32
    %2 = vector.broadcast %cst : f32 to vector<80x16xf32>
    %3 = vector.extract_strided_slice %1 {offsets = [0, 0], sizes = [80, 16], strides = [1, 1]} : vector<102x16xbf16> to vector<80x16xbf16>
    %c0_3 = arith.constant 0 : index
    %c0_4 = arith.constant 0 : index
    %c0_5 = arith.constant 0 : index
    %4 = vector.load %arg3[%c0_3, %c0_4, %c0_5] : memref<9x16x16xbf16, #tpu.memory_space<vmem>>, vector<1x16x16xbf16>
    %5 = vector.shape_cast %4 : vector<1x16x16xbf16> to vector<16x16xbf16>
    %cst_6 = arith.constant dense<0.000000e+00> : vector<80x16xf32>
    %6 = tpu.matmul %3, %5, %cst_6 {dimension_numbers = #tpu.dot_dimension_numbers<[1], [0], [0], [1], [0, 0, 1, 1], [], []>} : vector<80x16xbf16>, vector<16x16xbf16>, vector<80x16xf32> -> vector<80x16xf32>
    %7 = arith.addf %2, %6 : vector<80x16xf32>
    %8 = vector.extract_strided_slice %1 {offsets = [1, 0], sizes = [80, 16], strides = [1, 1]} : vector<102x16xbf16> to vector<80x16xbf16>
    %c1 = arith.constant 1 : index
    %c0_7 = arith.constant 0 : index
    %c0_8 = arith.constant 0 : index
    %9 = vector.load %arg3[%c1, %c0_7, %c0_8] : memref<9x16x16xbf16, #tpu.memory_space<vmem>>, vector<1x16x16xbf16>
    %10 = vector.shape_cast %9 : vector<1x16x16xbf16> to vector<16x16xbf16>
    %cst_9 = arith.constant dense<0.000000e+00> : vector<80x16xf32>
    %11 = tpu.matmul %8, %10, %cst_9 {dimension_numbers = #tpu.dot_dimension_numbers<[1], [0], [0], [1], [0, 0, 1, 1], [], []>} : vector<80x16xbf16>, vector<16x16xbf16>, vector<80x16xf32> -> vector<80x16xf32>
    %12 = arith.addf %7, %11 : vector<80x16xf32>
    %13 = vector.extract_strided_slice %1 {offsets = [2, 0], sizes = [80, 16], strides = [1, 1]} : vector<102x16xbf16> to vector<80x16xbf16>
    %c2 = arith.constant 2 : index
    %c0_10 = arith.constant 0 : index
    %c0_11 = arith.constant 0 : index
    %14 = vector.load %arg3[%c2, %c0_10, %c0_11] : memref<9x16x16xbf16, #tpu.memory_space<vmem>>, vector<1x16x16xbf16>
    %15 = vector.shape_cast %14 : vector<1x16x16xbf16> to vector<16x16xbf16>
    %cst_12 = arith.constant dense<0.000000e+00> : vector<80x16xf32>
    %16 = tpu.matmul %13, %15, %cst_12 {dimension_numbers = #tpu.dot_dimension_numbers<[1], [0], [0], [1], [0, 0, 1, 1], [], []>} : vector<80x16xbf16>, vector<16x16xbf16>, vector<80x16xf32> -> vector<80x16xf32>
    %17 = arith.addf %12, %16 : vector<80x16xf32>
    %18 = vector.extract_strided_slice %1 {offsets = [10, 0], sizes = [80, 16], strides = [1, 1]} : vector<102x16xbf16> to vector<80x16xbf16>
    %c3 = arith.constant 3 : index
    %c0_13 = arith.constant 0 : index
    %c0_14 = arith.constant 0 : index
    %19 = vector.load %arg3[%c3, %c0_13, %c0_14] : memref<9x16x16xbf16, #tpu.memory_space<vmem>>, vector<1x16x16xbf16>
    %20 = vector.shape_cast %19 : vector<1x16x16xbf16> to vector<16x16xbf16>
    %cst_15 = arith.constant dense<0.000000e+00> : vector<80x16xf32>
    %21 = tpu.matmul %18, %20, %cst_15 {dimension_numbers = #tpu.dot_dimension_numbers<[1], [0], [0], [1], [0, 0, 1, 1], [], []>} : vector<80x16xbf16>, vector<16x16xbf16>, vector<80x16xf32> -> vector<80x16xf32>
    %22 = arith.addf %17, %21 : vector<80x16xf32>
    %23 = vector.extract_strided_slice %1 {offsets = [11, 0], sizes = [80, 16], strides = [1, 1]} : vector<102x16xbf16> to vector<80x16xbf16>
    %c4 = arith.constant 4 : index
    %c0_16 = arith.constant 0 : index
    %c0_17 = arith.constant 0 : index
    %24 = vector.load %arg3[%c4, %c0_16, %c0_17] : memref<9x16x16xbf16, #tpu.memory_space<vmem>>, vector<1x16x16xbf16>
    %25 = vector.shape_cast %24 : vector<1x16x16xbf16> to vector<16x16xbf16>
    %cst_18 = arith.constant dense<0.000000e+00> : vector<80x16xf32>
    %26 = tpu.matmul %23, %25, %cst_18 {dimension_numbers = #tpu.dot_dimension_numbers<[1], [0], [0], [1], [0, 0, 1, 1], [], []>} : vector<80x16xbf16>, vector<16x16xbf16>, vector<80x16xf32> -> vector<80x16xf32>
    %27 = arith.addf %22, %26 : vector<80x16xf32>
    %28 = vector.extract_strided_slice %1 {offsets = [12, 0], sizes = [80, 16], strides = [1, 1]} : vector<102x16xbf16> to vector<80x16xbf16>
    %c5 = arith.constant 5 : index
    %c0_19 = arith.constant 0 : index
    %c0_20 = arith.constant 0 : index
    %29 = vector.load %arg3[%c5, %c0_19, %c0_20] : memref<9x16x16xbf16, #tpu.memory_space<vmem>>, vector<1x16x16xbf16>
    %30 = vector.shape_cast %29 : vector<1x16x16xbf16> to vector<16x16xbf16>
    %cst_21 = arith.constant dense<0.000000e+00> : vector<80x16xf32>
    %31 = tpu.matmul %28, %30, %cst_21 {dimension_numbers = #tpu.dot_dimension_numbers<[1], [0], [0], [1], [0, 0, 1, 1], [], []>} : vector<80x16xbf16>, vector<16x16xbf16>, vector<80x16xf32> -> vector<80x16xf32>
    %32 = arith.addf %27, %31 : vector<80x16xf32>
    %33 = vector.extract_strided_slice %1 {offsets = [20, 0], sizes = [80, 16], strides = [1, 1]} : vector<102x16xbf16> to vector<80x16xbf16>
    %c6 = arith.constant 6 : index
    %c0_22 = arith.constant 0 : index
    %c0_23 = arith.constant 0 : index
    %34 = vector.load %arg3[%c6, %c0_22, %c0_23] : memref<9x16x16xbf16, #tpu.memory_space<vmem>>, vector<1x16x16xbf16>
    %35 = vector.shape_cast %34 : vector<1x16x16xbf16> to vector<16x16xbf16>
    %cst_24 = arith.constant dense<0.000000e+00> : vector<80x16xf32>
    %36 = tpu.matmul %33, %35, %cst_24 {dimension_numbers = #tpu.dot_dimension_numbers<[1], [0], [0], [1], [0, 0, 1, 1], [], []>} : vector<80x16xbf16>, vector<16x16xbf16>, vector<80x16xf32> -> vector<80x16xf32>
    %37 = arith.addf %32, %36 : vector<80x16xf32>
    %38 = vector.extract_strided_slice %1 {offsets = [21, 0], sizes = [80, 16], strides = [1, 1]} : vector<102x16xbf16> to vector<80x16xbf16>
    %c7 = arith.constant 7 : index
    %c0_25 = arith.constant 0 : index
    %c0_26 = arith.constant 0 : index
    %39 = vector.load %arg3[%c7, %c0_25, %c0_26] : memref<9x16x16xbf16, #tpu.memory_space<vmem>>, vector<1x16x16xbf16>
    %40 = vector.shape_cast %39 : vector<1x16x16xbf16> to vector<16x16xbf16>
    %cst_27 = arith.constant dense<0.000000e+00> : vector<80x16xf32>
    %41 = tpu.matmul %38, %40, %cst_27 {dimension_numbers = #tpu.dot_dimension_numbers<[1], [0], [0], [1], [0, 0, 1, 1], [], []>} : vector<80x16xbf16>, vector<16x16xbf16>, vector<80x16xf32> -> vector<80x16xf32>
    %42 = arith.addf %37, %41 : vector<80x16xf32>
    %43 = vector.extract_strided_slice %1 {offsets = [22, 0], sizes = [80, 16], strides = [1, 1]} : vector<102x16xbf16> to vector<80x16xbf16>
    %c8 = arith.constant 8 : index
    %c0_28 = arith.constant 0 : index
    %c0_29 = arith.constant 0 : index
    %44 = vector.load %arg3[%c8, %c0_28, %c0_29] : memref<9x16x16xbf16, #tpu.memory_space<vmem>>, vector<1x16x16xbf16>
    %45 = vector.shape_cast %44 : vector<1x16x16xbf16> to vector<16x16xbf16>
    %cst_30 = arith.constant dense<0.000000e+00> : vector<80x16xf32>
    %46 = tpu.matmul %43, %45, %cst_30 {dimension_numbers = #tpu.dot_dimension_numbers<[1], [0], [0], [1], [0, 0, 1, 1], [], []>} : vector<80x16xbf16>, vector<16x16xbf16>, vector<80x16xf32> -> vector<80x16xf32>
    %47 = arith.addf %42, %46 : vector<80x16xf32>
    %c0_31 = arith.constant 0 : index
    %c0_32 = arith.constant 0 : index
    %48 = vector.load %arg4[%c0_31, %c0_32] : memref<1x16xf32, #tpu.memory_space<vmem>>, vector<1x16xf32>
    %49 = vector.broadcast %48 : vector<1x16xf32> to vector<80x16xf32>
    %50 = arith.addf %47, %49 : vector<80x16xf32>
    %cst_33 = arith.constant 0.000000e+00 : f32
    %51 = vector.broadcast %cst_33 : f32 to vector<80x16xf32>
    %52 = arith.cmpf oge, %50, %51 : vector<80x16xf32>
    %cst_34 = arith.constant 2.000000e-01 : f32
    %53 = vector.broadcast %cst_34 : f32 to vector<80x16xf32>
    %54 = arith.mulf %53, %50 : vector<80x16xf32>
    %55 = arith.select %52, %50, %54 : vector<80x16xi1>, vector<80x16xf32>
    %56 = arith.mulf %55, %55 : vector<80x16xf32>
    %cst_35 = arith.constant dense<0.000000e+00> : vector<80xf32>
    %57 = vector.multi_reduction <add>, %56, %cst_35 [1] : vector<80x16xf32> to vector<80xf32>
    %58 = vector.shape_cast %57 : vector<80xf32> to vector<80x1xf32>
    %cst_36 = arith.constant 1.600000e+01 : f32
    %59 = vector.broadcast %cst_36 : f32 to vector<80x1xf32>
    %60 = arith.divf %58, %59 : vector<80x1xf32>
    %cst_37 = arith.constant 9.99999993E-9 : f32
    %61 = vector.broadcast %cst_37 : f32 to vector<80x1xf32>
    %62 = arith.addf %60, %61 : vector<80x1xf32>
    %63 = math.rsqrt %62 : vector<80x1xf32>
    %64 = vector.broadcast %63 : vector<80x1xf32> to vector<80x16xf32>
    %65 = arith.mulf %55, %64 : vector<80x16xf32>
    %66 = arith.truncf %65 : vector<80x16xf32> to vector<80x16xbf16>
    %c0_38 = arith.constant 0 : index
    %c0_39 = arith.constant 0 : index
    %67 = vector.load %arg5[%c0_38, %c0_39] : memref<16x128xbf16, #tpu.memory_space<vmem>>, vector<16x128xbf16>
    %cst_40 = arith.constant dense<0.000000e+00> : vector<80x128xf32>
    %68 = tpu.matmul %66, %67, %cst_40 {dimension_numbers = #tpu.dot_dimension_numbers<[1], [0], [0], [1], [0, 0, 1, 1], [], []>} : vector<80x16xbf16>, vector<16x128xbf16>, vector<80x128xf32> -> vector<80x128xf32>
    %c0_41 = arith.constant 0 : index
    %c0_42 = arith.constant 0 : index
    %69 = vector.load %arg6[%c0_41, %c0_42] : memref<1x128xf32, #tpu.memory_space<vmem>>, vector<1x128xf32>
    %70 = vector.broadcast %69 : vector<1x128xf32> to vector<80x128xf32>
    %71 = arith.addf %68, %70 : vector<80x128xf32>
    %c0_43 = arith.constant 0 : index
    %c0_44 = arith.constant 0 : index
    %c0_45 = arith.constant 0 : index
    %c0_46 = arith.constant 0 : index
    %72 = vector.load %arg7[%c0_43, %c0_44, %c0_45, %c0_46] : memref<1x1x80x128xf32, #tpu.memory_space<vmem>>, vector<1x1x80x128xf32>
    %73 = vector.shape_cast %72 : vector<1x1x80x128xf32> to vector<80x128xf32>
    %74 = vector.shape_cast %71 : vector<80x128xf32> to vector<1x1x80x128xf32>
    tpu.vector_store %arg7[%c0_43, %c0_44, %c0_45, %c0_46], %74 {strides = array<i32>} : memref<1x1x80x128xf32, #tpu.memory_space<vmem>>, vector<1x1x80x128xf32>,
    return
  }
  func.func @transform_0(%arg0: i32, %arg1: i32) -> (i32, i32, i32, i32) {
    %c0_i32 = arith.constant 0 : i32
    %c0_i32_0 = arith.constant 0 : i32
    %c0_i32_1 = arith.constant 0 : i32
    return %arg0, %arg1, %c0_i32, %c0_i32_0 : i32, i32, i32, i32
  }
  func.func @transform_1(%arg0: i32, %arg1: i32) -> (i32, i32, i32) {
    %c0_i32 = arith.constant 0 : i32
    %c0_i32_0 = arith.constant 0 : i32
    %c0_i32_1 = arith.constant 0 : i32
    %c0_i32_2 = arith.constant 0 : i32
    return %c0_i32, %c0_i32_0, %c0_i32_1 : i32, i32, i32
  }
  func.func @transform_2(%arg0: i32, %arg1: i32) -> (i32, i32) {
    %c0_i32 = arith.constant 0 : i32
    %c0_i32_0 = arith.constant 0 : i32
    %c0_i32_1 = arith.constant 0 : i32
    return %c0_i32, %c0_i32_0 : i32, i32
  }
  func.func @transform_3(%arg0: i32, %arg1: i32) -> (i32, i32) {
    %c0_i32 = arith.constant 0 : i32
    %c0_i32_0 = arith.constant 0 : i32
    %c0_i32_1 = arith.constant 0 : i32
    return %c0_i32, %c0_i32_0 : i32, i32
  }
  func.func @transform_4(%arg0: i32, %arg1: i32) -> (i32, i32) {
    %c0_i32 = arith.constant 0 : i32
    %c0_i32_0 = arith.constant 0 : i32
    %c0_i32_1 = arith.constant 0 : i32
    return %c0_i32, %c0_i32_0 : i32, i32
  }
  func.func @transform_5(%arg0: i32, %arg1: i32) -> (i32, i32, i32, i32) {
    %c0_i32 = arith.constant 0 : i32
    %c0_i32_0 = arith.constant 0 : i32
    %c0_i32_1 = arith.constant 0 : i32
    return %arg0, %arg1, %c0_i32, %c0_i32_0 : i32, i32, i32, i32
  }
}

</mosaic_0001>

<bundles_post_ra>
// kernel: progan_generator_forward.4
= control target key start
LH: loop header
LB: loop body
LE: loop exit
PB: predicated region body
PF: predicated region fallthrough
CT: control target
= control target key end

     0   :  { %8 = vsyncpa [#allocation3], 0  ;;  %s393_s0 = inlined_call_operand.hbm [shape: f32[2,32], index: 0, kind: input, shape index: {}]   ;;  %s394_s1 = inlined_call_operand.hbm [shape: bf16[32,512], index: 1, kind: input, shape index: {}]   ;;  %s395_s2 = inlined_call_operand.vmem [shape: f32[1,512], index: 2, kind: input, shape index: {}]   ;;  %s396_s3 = inlined_call_operand.vmem [shape: bf16[2,512], index: 3, kind: output, shape index: {}]  }
   0x1   :  { %9 = vsyncpa [#allocation5], 0  ;;  %s330_s12 = smov [#allocation2]   ;;  %s331_s14 = smov [#allocation4]  }
   0x2   :  { %s16_s13 = sshll.u32 %s330_s12, 4  ;;  %s25_s15 = sshll.u32 %s331_s14, 4  ;;  %s17_s13 = int_to_ptr.vmem [resolvable:$true] %s16_s13  ;;  %s356_s15 = int_to_ptr.vmem [resolvable:$true] %s25_s15 }
   0x3   :  { %s282_s18 = scalar_lea.hbm %s393_s0, 32 }
   0x4   :  { %p283_p0 = scmp.ne.s32.totalorder %s393_s0, %s282_s18  ;;  %p286_p1 = scmp.lt.u32.totalorder %s282_s18, %s393_s0 }
   0x6   :  { %p288_p2 = pnand %p286_p1, %p283_p0 }
   0x8   :  { %291 = shalt.err (!%p288_p2)
}
   0x9   :  { %s292_s23 = scalar_lea.vmem %s17_s13, 32  ;;  %p297_p4 = scmp.lt.s32.totalorder %s17_s13, %s17_s13 }
   0xa   :  { %p293_p3 = scmp.ne.s32.totalorder %s17_s13, %s292_s23  ;;  %p298_p5 = scmp.lt.s32.totalorder %s292_s23, %s292_s23 }
   0xc   :  { %p299_p6 = por %p298_p5, %p297_p4 }
   0xe   :  { %p300_p7 = pnand %p299_p6, %p293_p3 }
  0x10   :  { %303 = shalt.err (!%p300_p7)
}
  0x11   :  { %19 = dma.hbm_to_vmem [thread:$0]  %s393_s0, 32, %s17_s13, [#allocation3]  }
  0x12   :  { %s304_s28 = scalar_lea.hbm %s394_s1, 1024 }
  0x13   :  { %p305_p8 = scmp.ne.s32.totalorder %s394_s1, %s304_s28  ;;  %p308_p9 = scmp.lt.u32.totalorder %s304_s28, %s394_s1 }
  0x15   :  { %p310_p10 = pnand %p308_p9, %p305_p8 }
  0x17   :  { %313 = shalt.err (!%p310_p10)
}
  0x18   :  { %s314_s6 = scalar_lea.vmem %s356_s15, 1024  ;;  %p319_p12 = scmp.lt.s32.totalorder %s356_s15, %s356_s15 }
  0x19   :  { %p315_p11 = scmp.ne.s32.totalorder %s356_s15, %s314_s6  ;;  %p320_p13 = scmp.lt.s32.totalorder %s314_s6, %s314_s6 }
  0x1b   :  { %p321_p0 = por %p320_p13, %p319_p12 }
  0x1d   :  { %p322_p1 = pnand %p321_p0, %p315_p11 }
  0x1f   :  { %325 = shalt.err (!%p322_p1)
}
  0x20   :  { %s332_s0 = smov 256   ;;  %s333_s7 = smov 16  }
  0x21   :  { %31 = dma.hbm_to_vmem [thread:$0]  %s394_s1, 1024, %s356_s15, [#allocation5], %s332_s0, %s332_s0, %s333_s7  }
  0x22   :  { %326 = dma.done.wait [#allocation3], 32  }
  0x23   :  { %327 = vsyncadd [#allocation3], 4294967264 }
  0x24   :  { %328 = dma.done.wait [#allocation5], 1024  }
  0x25   :  { %329 = vsyncadd [#allocation5], 4294966272  ;;  %v41_v0 = vld [vmem:[#allocation2] sm:$0x3]  ;;  %vm43_vm0 = vcmask 254976   ;;  %v334_v11 = vmov 0   ;;  %v63_v18 = vlaneseq }
  0x26   :  { %v42_v1 = vmul.f32 %v41_v0, %v41_v0  ;;  %v268_v3 = vld [vmem:[#allocation4 + $0x4] ss:$16 sps:$4 sm:$0xff]   ;;  %v270_v4 = vld [vmem:[#allocation4 + $0xc] ss:$16 sps:$4 sm:$0xff]   ;;  %v272_v5 = vld [vmem:[#allocation4] ss:$16 sps:$4 sm:$0xff]   ;;  %159 = vmatprep.mubr.bf16.mxu0 %v334_v11  ;;  %200 = vmatprep.mubr.bf16.mxu1 %v334_v11 }
  0x27   :  { %v273_v6 = vld [vmem:[#allocation4 + $0x8] ss:$16 sps:$4 sm:$0xff]   ;;  %v274_v7 = vld [vmem:[#allocation4 + $0x24] ss:$16 sps:$4 sm:$0xff]   ;;  %v276_v8 = vld [vmem:[#allocation4 + $0x2c] ss:$16 sps:$4 sm:$0xff]   ;;  %127 = vmatprep.subr.bf16.mxu0 %v268_v3  ;;  %168 = vmatprep.subr.bf16.mxu1 %v270_v4 }
  0x28   :  { %v44_v2 = vsel %vm43_vm0, %v42_v1, 0.0  ;;  %128 = vmatpush1.bf16.msra.mxu0 %v272_v5  ;;  %169 = vmatpush1.bf16.msra.mxu1 %v273_v6  ;;  %v278_v9 = vld [vmem:[#allocation4 + $0x20] ss:$16 sps:$4 sm:$0xff]   ;;  %v279_v10 = vld [vmem:[#allocation4 + $0x28] ss:$16 sps:$4 sm:$0xff]   ;;  %vm123_vm1 = vcmask 261120  }
  0x29   :  { %45 = vadd.xlane.f32.xlu0 %v44_v2  ;;  %129 = vmatprep.subr.bf16.mxu0 %v274_v7  ;;  %v64_v19 = vshrl.u32 %v63_v18, 7  ;;  %v61_v22 = vld [vmem:[%s395_s2] sm:$0xf]  ;;  %v335_v24 = vmov 1966171168  }
  0x2a   :  { %170 = vmatprep.subr.bf16.mxu1 %v276_v8  ;;  %v220_v25 = vunpack.c.l.s4 %v335_v24 }
  0x2b   :  { %v65_v20 = vsub.s32 0, %v64_v19  ;;  %v73_v21 = vsub.s32 2, %v64_v19  ;;  %v69_v23 = vsub.s32 1, %v64_v19  ;;  %v77_v26 = vsub.s32 3, %v64_v19 }
  0x2c   :  { %130 = vmatpush1.bf16.msra.mxu0 %v278_v9  ;;  %171 = vmatpush1.bf16.msra.mxu1 %v279_v10  ;;  %v221_v30 = vunpack.c.0.s8 %v220_v25 }
  0x2d   :  { %v66_v27 = vrot.slane %v61_v22, %v65_v20  ;;  %v74_v28 = vrot.slane %v61_v22, %v73_v21  ;;  %v70_v29 = vrot.slane %v61_v22, %v69_v23  ;;  %v78_v31 = vrot.slane %v61_v22, %v77_v26 }
  0x2e   :  { %v224_v39 = vsub.s32 %v221_v30, %v64_v19 }
  0xb6   :  { %v46_v12 = vpop.xlane.xlu0 %45 }
  0xb7   :  { %v48_v13 = vmul.f32 0.03125, %v46_v12 }
  0xb9   :  { %v49_v14 = vadd.f32 1e-08, %v48_v13 }
  0xbb   :  { %280 = vrsqrt.f32 %v49_v14 }
  0xc5   :  { %v281_v15 = vpop.eup %280 }
  0xc6   :  { %v51_v16 = vmul.f32 %v281_v15, %v41_v0 }
  0xc8   :  { %v52_v17 = vpack.c.bf16 %v51_v16, %v51_v16 }
  0xca   :  { %257 = vmatmul.mubr.msk.bf16.vlgmr.msra.gmra.mrb[0].mxu0 %vm123_vm1, %v52_v17  ;;  %258 = vmatmul.mubr.msk.bf16.vlgmr.msra.gmra.mrb[0].mxu1 %vm123_vm1, %v52_v17 }
 0x19d   :  { %v161_v32 = vpop.f32.mrb[0].mxu0  ;;  %v202_v33 = vpop.f32.mrb[0].mxu1 }
 0x19e   :  { %v162_v34 = vadd.f32 %v161_v32, %v66_v27  ;;  %v203_v35 = vadd.f32 %v202_v33, %v74_v28  ;;  %v163_v36 = vpop.f32.mrb[1].mxu0  ;;  %v204_v37 = vpop.f32.mrb[1].mxu1 }
 0x19f   :  { %v164_v38 = vadd.f32 %v163_v36, %v70_v29  ;;  %v205_v40 = vadd.f32 %v204_v37, %v78_v31  ;;  %v165_v41 = vpop.f32.mrb[2].mxu0  ;;  %v206_v42 = vpop.f32.mrb[2].mxu1 }
 0x1a0   :  { %v166_v43 = vpop.f32.mrb[3].mxu0  ;;  %v207_v44 = vpop.f32.mrb[3].mxu1 }
 0x1a1   :  { %v259_v45 = vpack.c.bf16 %v164_v38, %v162_v34  ;;  %v260_v46 = vpack.c.bf16 %v205_v40, %v203_v35 }
 0x1a3   :  { %v225_v47 = vrot.slane %v259_v45, %v224_v39  ;;  %v232_v48 = vrot.slane %v260_v46, %v224_v39 }
 0x1a5   :  { %v233_v49 = vcombine.low %v225_v47, %v232_v48 }
 0x1a7   :  { %261 = vst.sshfl [vmem:[%s396_s3] sm:$0x55 pattern:$0x73625140] %v233_v49 }
 0x1a8   :  { %247 = vsyncpa [#allocation3], 1 }
 0x1a9   :  { %248 = vsyncpa [#allocation5], 1 }

// kernel: progan_generator_forward.5
= control target key start
LH: loop header
LB: loop body
LE: loop exit
PB: predicated region body
PF: predicated region fallthrough
CT: control target
= control target key end

     0   :  { %s1461_s12 = smov 0   ;;  %s1463_s13 = smov 0   ;;  %s1629_s0 = inlined_call_operand.vmem [shape: bf16[2,1,38,32], index: 0, kind: input, shape index: {}]   ;;  %s1630_s1 = inlined_call_operand.vmem [shape: bf16[9,32,32], index: 1, kind: input, shape index: {}]   ;;  %s1631_s2 = inlined_call_operand.vmem [shape: f32[1,32], index: 2, kind: input, shape index: {}]   ;;  %s1632_s3 = inlined_call_operand.vmem [shape: bf16[2,1,24,32], index: 3, kind: output, shape index: {}]  }
   0x1   :  { %s1465_s14 = smov 0  }
   0x2 LB: > { %s25_s15 = sadd.s32 1, %s1435_s13  ;;  %p1160_p0 = scmp.ge.s32.totalorder %s1439_s14, 1  ;;  %s1439_s14 = sphi %s1465_s14, %s13_s14   ;;  %s1435_s13 = sphi %s1463_s13, %s1634_s13   ;;  %s1431_s12 = sphi %s1461_s12, %s1633_s12  }
   0x3   : > { %p27_p1 = scmp.ge.s32.totalorder %s25_s15, 2  ;;  %p157_p2 = scmp.lt.s32.totalorder %s1439_s14, 3 }
   0x5   : > { %s1636_s15 = smov (%p27_p1, %s25_s15), 0  ;;  %p158_p3 = pnand %p1160_p0, %p157_p2 }
   0x6   : > { %p189_p4 = scmp.lt.s32.totalorder (!%p158_p3), %s1431_s12, 1  ;;  %vm238_vm0 = vcmask (!%p158_p3), 261120   ;;  %vm251_vm6 = vcmask (!%p158_p3), 259072   ;;  %v1383_v28 = vld [vmem:[%s1630_s1] sm:$0xff] (!%p158_p3)   ;;  %v1384_v29 = vld [vmem:[%s1630_s1 + $0x8] sm:$0xff] (!%p158_p3)   ;;  %v1385_v30 = vld [vmem:[%s1630_s1 + $0x10] sm:$0xff] (!%p158_p3)  }
   0x7   : > { %161 = sbr.rel (%p158_p3) target bundleno = 622 (0x26e), region = 32  ;;  %1293 = vmatprep.subr.bf16.mxu1 (!%p158_p3), %v1383_v28  ;;  %v1386_v31 = vld [vmem:[%s1630_s1 + $0x30] sm:$0xff] (!%p158_p3)   ;;  %1285 = vmatprep.subr.bf16.mxu0 (!%p158_p3), %v1385_v30  ;;  %v1387_v32 = vld [vmem:[%s1630_s1 + $0x18] sm:$0xff] (!%p158_p3)   ;;  %v1519_v33 = vld [vmem:[%s1630_s1 + $0x20] sm:$0xff] (!%p158_p3)   ;;  %vm519_vm7 = vcmask (!%p158_p3), 1044480   ;;  %vm441_vm9 = vcmask (!%p158_p3), 1046528  }
   0x8   : > { %1294 = vmatpush3.bf16.msra.mxu1 (!%p158_p3), %v1383_v28  ;;  %1286 = vmatpush3.bf16.msra.mxu0 (!%p158_p3), %v1385_v30  ;;  %v1388_v60 = vld [vmem:[%s1630_s1 + $0x38] sm:$0xff] (!%p158_p3)   ;;  %vm288_vm8 = vsmask.f32 (!%p158_p3), 7424  ;;  %vm679_vm10 = vcmask (!%p158_p3), 1043456   ;;  %vm597_vm11 = vsmask.f32 (!%p158_p3), 4352 }
   0x9   : > { %1295 = vmatprep.subr.bf16.mxu1 (!%p158_p3), %v1384_v29  ;;  %1287 = vmatprep.subr.bf16.mxu0 (!%p158_p3), %v1387_v32  ;;  %vm838_vm12 = vsmask.f32 (!%p158_p3), 1280  ;;  %vm758_vm13 = vcmask (!%p158_p3), 1041408   ;;  %vm929_vm14 = vcmask (!%p158_p3), 1040384  }
   0xc   : > { %1296 = vmatpush3.bf16.msra.mxu1 (!%p158_p3), %v1384_v29  ;;  %1288 = vmatpush3.bf16.msra.mxu0 (!%p158_p3), %v1387_v32 }
   0xd   : > { %1309 = vmatprep.subr.bf16.mxu1 (!%p158_p3), %v1386_v31  ;;  %1301 = vmatprep.subr.bf16.mxu0 (!%p158_p3), %v1519_v33 }
   0xe   : > { %s1638_s12 = smov (!%p189_p4, %s1431_s12), 1 }
   0xf   : > { %s1357_s16 = smul.u32 20, %s1638_s12 }
  0x10   : > { %s1358_s8 = smul.u32 12, %s1638_s12 }
  0x11   : > { %s197_s19 = scalar_lea.vmem %s1629_s0, %s1357_s16 }
  0x12   : > { %v1248_v0 = vld [vmem:[%s197_s19 + $0x8] sm:$0xff]   ;;  %v1241_v1 = vld [vmem:[%s197_s19] sm:$0xff]   ;;  %v212_v2 = vld [vmem:[%s197_s19 + $0x10] sm:$0x7]  ;;  %s206_s11 = scalar_lea.vmem %s1632_s3, %s1358_s8 }
  0x13   : > { %v1246_v3 = vunpack.c.l.bf16 %v1248_v0  ;;  %v1242_v4 = vunpack.c.l.bf16 %v1241_v1  ;;  %v1247_v5 = vunpack.c.h.bf16 %v1248_v0  ;;  %v1243_v6 = vunpack.c.h.bf16 %v1241_v1 }
  0x14   : > { %v217_v7 = vunpack.c.l.bf16 %v212_v2 }
  0x15   : > { %vm220_vm1 = vcmp.ge.f32.partialorder %v1246_v3, 0.0  ;;  %v225_v8 = vmul.f32 0.2, %v1246_v3  ;;  %vm218_vm2 = vcmp.ge.f32.partialorder %v1242_v4, 0.0  ;;  %v223_v9 = vmul.f32 0.2, %v1242_v4 }
  0x16   : > { %vm221_vm3 = vcmp.ge.f32.partialorder %v1247_v5, 0.0  ;;  %v226_v10 = vmul.f32 0.2, %v1247_v5  ;;  %vm219_vm4 = vcmp.ge.f32.partialorder %v1243_v6, 0.0  ;;  %v224_v11 = vmul.f32 0.2, %v1243_v6 }
  0x17   : > { %v1485_v12 = vsel %vm220_vm1, %v1246_v3, %v225_v8  ;;  %v1487_v13 = vsel %vm218_vm2, %v1242_v4, %v223_v9  ;;  %vm222_vm5 = vcmp.ge.f32.partialorder %v217_v7, 0.0  ;;  %v227_v14 = vmul.f32 0.2, %v217_v7 }
  0x18   : > { %v235_v15 = vmul.f32 %v1485_v12, %v1485_v12  ;;  %v233_v16 = vmul.f32 %v1487_v13, %v1487_v13  ;;  %v231_v17 = vsel %vm221_vm3, %v1247_v5, %v226_v10  ;;  %v229_v18 = vsel %vm219_vm4, %v1243_v6, %v224_v11  ;;  %v1390_v5 = vld [vmem:[%s1630_s1 + $0x50] sm:$0xff]  }
  0x19   : > { %v236_v19 = vmul.f32 %v231_v17, %v231_v17  ;;  %v234_v20 = vmul.f32 %v229_v18, %v229_v18  ;;  %v1493_v21 = vsel %vm222_vm5, %v217_v7, %v227_v14 }
  0x1a   : > { %v245_v22 = vsel %vm238_vm0, %v235_v15, 0.0  ;;  %v239_v23 = vsel %vm238_vm0, %v233_v16, 0.0  ;;  %v237_v26 = vmul.f32 %v1493_v21, %v1493_v21  ;;  %v1391_v15 = vld [vmem:[%s1630_s1 + $0x28] sm:$0xff]  }
  0x1b   : > { %246 = vadd.xlane.f32.xlu1 %v245_v22  ;;  %240 = vadd.xlane.f32.xlu0 %v239_v23  ;;  %v248_v24 = vsel %vm238_vm0, %v236_v19, 0.0  ;;  %v242_v25 = vsel %vm238_vm0, %v234_v20, 0.0 }
  0x1c   : > { %v252_v27 = vsel %vm251_vm6, %v237_v26, 0.0 }
  0x1f   : > { %249 = vadd.xlane.f32.xlu1 %v248_v24  ;;  %243 = vadd.xlane.f32.xlu0 %v242_v25  ;;  %v1393_v24 = vld [vmem:[%s1630_s1 + $0x40] sm:$0xff]  }
  0x23   : > { %253 = vadd.xlane.f32.xlu0 %v252_v27 }
  0xa8   : > { %v247_v34 = vpop.xlane.xlu1 %246  ;;  %v241_v35 = vpop.xlane.xlu0 %240 }
  0xa9   : > { %v258_v36 = vmul.f32 0.03125, %v247_v34  ;;  %v256_v37 = vmul.f32 0.03125, %v241_v35 }
  0xab   : > { %v263_v38 = vadd.f32 1e-08, %v258_v36  ;;  %v261_v39 = vadd.f32 1e-08, %v256_v37  ;;  %v1395_v36 = vld [vmem:[%s1630_s1 + $0x48] sm:$0xff]  }
  0xac   : > { %v250_v40 = vpop.xlane.xlu1 %249  ;;  %v244_v41 = vpop.xlane.xlu0 %243 }
  0xad   : > { %v259_v42 = vmul.f32 0.03125, %v250_v40  ;;  %v257_v43 = vmul.f32 0.03125, %v244_v41  ;;  %1401 = vrsqrt.f32 %v263_v38  ;;  %v1396_v38 = vld [vmem:[%s1630_s1 + $0x78] sm:$0xff]  }
  0xae   : > { %1403 = vrsqrt.f32 %v261_v39 }
  0xaf   : > { %v264_v44 = vadd.f32 1e-08, %v259_v42  ;;  %v262_v45 = vadd.f32 1e-08, %v257_v43  ;;  %v1397_v42 = vld [vmem:[%s1630_s1 + $0x60] sm:$0xff]  }
  0xb0   : > { %v254_v46 = vpop.xlane.xlu0 %253 }
  0xb1   : > { %1405 = vrsqrt.f32 %v264_v44  ;;  %v260_v47 = vmul.f32 0.03125, %v254_v46  ;;  %v1398_v46 = vld [vmem:[%s1630_s1 + $0x68] sm:$0xff]  }
  0xb2   : > { %1407 = vrsqrt.f32 %v262_v45 }
  0xb3   : > { %v265_v48 = vadd.f32 1e-08, %v260_v47 }
  0xb5   : > { %1409 = vrsqrt.f32 %v265_v48 }
  0xb7   : > { %v1402_v49 = vpop.eup %1401 }
  0xb8   : > { %v1404_v50 = vpop.eup %1403  ;;  %v273_v53 = vmul.f32 %v1402_v49, %v1485_v12  ;;  %v1399_v49 = vld [vmem:[%s1630_s1 + $0x80] sm:$0xff]  }
  0xb9   : > { %v271_v55 = vmul.f32 %v1404_v50, %v1487_v13 }
  0xbb   : > { %v1406_v51 = vpop.eup %1405 }
  0xbc   : > { %v1408_v52 = vpop.eup %1407  ;;  %v274_v54 = vmul.f32 %v1406_v51, %v231_v17 }
  0xbd   : > { %v272_v56 = vmul.f32 %v1408_v52, %v229_v18  ;;  %v1392_v18 = vld [vmem:[%s1630_s1 + $0x58] sm:$0xff]  }
  0xbe   : > { %v1524_v57 = vpack.c.bf16 %v274_v54, %v273_v53  ;;  %v1400_v53 = vld [vmem:[%s1630_s1 + $0x88] sm:$0xff]  }
  0xbf   : > { %v1526_v58 = vpack.c.bf16 %v272_v56, %v271_v55  ;;  %v1410_v0 = vpop.eup %1409 }
  0xc0   : > { %v521_v59 = vrot.slane %v1524_v57, 3  ;;  %v297_v61 = vshll.u32 %v1524_v57, 16  ;;  %v301_v7 = vshrl.u32 %v1524_v57, 16  ;;  %v443_v9 = vrot.slane %v1524_v57, 1 }
  0xc1   : > { %1297 = vmatprep.mubr.msk.bf16.mxu1 %vm238_vm0, %v1526_v58  ;;  %v520_v62 = vrot.slane %v1526_v58, 3  ;;  %v292_v63 = vshll.u32 %v1526_v58, 16  ;;  %v290_v2 = vshrl.u32 %v1526_v58, 16  ;;  %v442_v8 = vrot.slane %v1526_v58, 1 }
  0xc2   : > { %1298 = vmatmul.mubr.msk.bf16.vlgmr.msra.gmra.mrb[0].mxu1 %vm238_vm0, %v1524_v57  ;;  %v299_v4 = vrot.slane %v297_v61, 1  ;;  %v275_v10 = vmul.f32 %v1410_v0, %v1493_v21  ;;  %v680_v11 = vrot.slane %v1526_v58, 4  ;;  %v681_v12 = vrot.slane %v1524_v57, 4 }
  0xc3   : > { %1310 = vmatpush3.bf16.msra.mxu1 %v1386_v31  ;;  %v522_v1 = vsel %vm519_vm7, %v520_v62, %v521_v59  ;;  %v294_v3 = vrot.slane %v292_v63, 1  ;;  %v598_v16 = vrot.slane %v290_v2, 3  ;;  %v444_v17 = vsel %vm441_vm9, %v442_v8, %v443_v9  ;;  %v1394_v31 = vld [vmem:[%s1630_s1 + $0x70] sm:$0xff]  }
  0xc4   : > { %1313 = vmatprep.mubr.msk.bf16.mxu1 %vm238_vm0, %v522_v1  ;;  %1311 = vmatprep.subr.bf16.mxu1 %v1388_v60  ;;  %v303_v14 = vor.u32 %v301_v7, %v299_v4  ;;  %v599_v19 = vrot.slane %v292_v63, 4  ;;  %v601_v20 = vrot.slane %v301_v7, 3  ;;  %v602_v21 = vrot.slane %v297_v61, 4 }
  0xc5   : > { %v295_v6 = vor.u32 %v294_v3, %v290_v2  ;;  %v1558_v22 = vpack.c.bf16 %v275_v10, %v275_v10  ;;  %v682_v23 = vsel %vm679_vm10, %v680_v11, %v681_v12  ;;  %v839_v25 = vrot.slane %v290_v2, 6 }
  0xc6   : > { %v840_v26 = vrot.slane %v292_v63, 7  ;;  %v842_v27 = vrot.slane %v301_v7, 6  ;;  %v843_v28 = vrot.slane %v297_v61, 7  ;;  %v600_v29 = vor.u32 %v599_v19, %v598_v16 }
  0xc7   : > { %1312 = vmatpush3.bf16.msra.mxu1 %v1388_v60  ;;  %v300_v13 = vsel %vm288_vm8, %v295_v6, %v299_v4  ;;  %v603_v30 = vor.u32 %v602_v21, %v601_v20  ;;  %v847_v32 = vshrl.u32 %v1558_v22, 16  ;;  %v759_v43 = vrot.slane %v1526_v58, 6 }
  0xc8   : > { %1289 = vmatprep.mubr.msk.bf16.mxu0 %vm238_vm0, %v300_v13  ;;  %1325 = vmatprep.subr.bf16.mxu1 %v1390_v5  ;;  %v841_v34 = vor.u32 %v840_v26, %v839_v25  ;;  %v844_v35 = vor.u32 %v843_v28, %v842_v27  ;;  %v760_v44 = vrot.slane %v1524_v57, 6  ;;  %v762_v50 = vrot.slane %v1558_v22, 6 }
  0xc9   : > { %1290 = vmatmul.mubr.msk.bf16.vlgmr.msra.gmra.mrb[0].mxu0 %vm238_vm0, %v303_v14  ;;  %v604_v37 = vsel %vm597_vm11, %v600_v29, %v603_v30  ;;  %v849_v39 = vrot.slane %v847_v32, 6  ;;  %v930_v51 = vrot.slane %v1526_v58, 7  ;;  %v931_v52 = vrot.slane %v1524_v57, 7 }
  0xca   : > { %1302 = vmatpush3.bf16.msra.mxu0 %v1519_v33  ;;  %1305 = vmatprep.mubr.msk.bf16.mxu0 %vm238_vm0, %v444_v17  ;;  %v850_v33 = vshll.u32 %v1558_v22, 16  ;;  %v845_v41 = vsel %vm838_vm12, %v841_v34, %v844_v35  ;;  %v761_v47 = vsel %vm758_vm13, %v759_v43, %v760_v44  ;;  %v763_v54 = vsel %vm758_vm13, %v760_v44, %v762_v50 }
  0xcb   : > { %1314 = vmatmul.mubr.msk.bf16.vlgmr.msra.gmra.mrb[4].mxu1 %vm238_vm0, %v521_v59  ;;  %1303 = vmatprep.subr.bf16.mxu0 %v1391_v15  ;;  %v932_v55 = vsel %vm929_vm14, %v930_v51, %v931_v52  ;;  %v933_v56 = vrot.slane %v1558_v22, 7 }
  0xcc   : > { %1326 = vmatpush3.bf16.msra.mxu1 %v1390_v5  ;;  %1329 = vmatprep.mubr.msk.bf16.mxu1 %vm238_vm0, %v682_v23  ;;  %v852_v40 = vrot.slane %v850_v33, 7 }
  0xcd   : > { %1327 = vmatprep.subr.bf16.mxu1 %v1392_v18  ;;  %v934_v57 = vsel %vm929_vm14, %v931_v52, %v933_v56 }
  0xce   : > { %1304 = vmatpush3.bf16.msra.mxu0 %v1391_v15  ;;  %v853_v45 = vor.u32 %v852_v40, %v849_v39 }
  0xcf   : > { %1317 = vmatprep.subr.bf16.mxu0 %v1393_v24 }
  0xd0   : > { %1328 = vmatpush3.bf16.msra.mxu1 %v1392_v18  ;;  %v854_v48 = vsel %vm838_vm12, %v844_v35, %v853_v45 }
  0xd1   : > { %1306 = vmatmul.mubr.msk.bf16.vlgmr.msra.gmra.mrb[4].mxu0 %vm238_vm0, %v443_v9  ;;  %1341 = vmatprep.subr.bf16.mxu1 %v1394_v31 }
  0xd2   : > { %1318 = vmatpush3.bf16.msra.mxu0 %v1393_v24  ;;  %1321 = vmatprep.mubr.msk.bf16.mxu0 %vm238_vm0, %v604_v37 }
  0xd3   : > { %1330 = vmatmul.mubr.msk.bf16.vlgmr.msra.gmra.mrb[8].mxu1 %vm238_vm0, %v681_v12  ;;  %1319 = vmatprep.subr.bf16.mxu0 %v1395_v36 }
  0xd4   : > { %1342 = vmatpush3.bf16.msra.mxu1 %v1394_v31  ;;  %1345 = vmatprep.mubr.msk.bf16.mxu1 %vm238_vm0, %v845_v41 }
  0xd5   : > { %1343 = vmatprep.subr.bf16.mxu1 %v1396_v38 }
  0xd6   : > { %1320 = vmatpush3.bf16.msra.mxu0 %v1395_v36 }
  0xd7   : > { %1333 = vmatprep.subr.bf16.mxu0 %v1397_v42 }
  0xd8   : > { %1344 = vmatpush3.bf16.msra.mxu1 %v1396_v38 }
  0xd9   : > { %1322 = vmatmul.mubr.msk.bf16.vlgmr.msra.gmra.mrb[8].mxu0 %vm238_vm0, %v603_v30 }
  0xda   : > { %1334 = vmatpush3.bf16.msra.mxu0 %v1397_v42  ;;  %1337 = vmatprep.mubr.msk.bf16.mxu0 %vm238_vm0, %v761_v47 }
  0xdb   : > { %1346 = vmatmul.mubr.msk.bf16.vlgmr.msra.gmra.mrb[12].mxu1 %vm238_vm0, %v854_v48  ;;  %1335 = vmatprep.subr.bf16.mxu0 %v1398_v46  ;;  %v1231_v48 = vld [vmem:[%s1631_s2] ss:$0 sm:$0xff] }
  0xde   : > { %1336 = vmatpush3.bf16.msra.mxu0 %v1398_v46 }
  0xdf   : > { %1349 = vmatprep.subr.bf16.mxu0 %v1399_v49 }
  0xe1   : > { %1338 = vmatmul.mubr.msk.bf16.vlgmr.msra.gmra.mrb[12].mxu0 %vm238_vm0, %v763_v54 }
  0xe2   : > { %1350 = vmatpush3.bf16.msra.mxu0 %v1399_v49  ;;  %1353 = vmatprep.mubr.msk.bf16.mxu0 %vm238_vm0, %v932_v55 }
  0xe3   : > { %1351 = vmatprep.subr.bf16.mxu0 %v1400_v53 }
  0xe6   : > { %1352 = vmatpush3.bf16.msra.mxu0 %v1400_v53 }
  0xe9   : > { %1354 = vmatmul.mubr.msk.bf16.vlgmr.msra.gmra.mrb[16].mxu0 %vm238_vm0, %v934_v57 }
 0x195   : > { %v1299_v58 = vpop.f32.mrb[0].mxu1 }
 0x196   : > { %v420_v59 = vpop.f32.mrb[1].mxu1 }
 0x197   : > { %v1300_v60 = vpop.f32.mrb[2].mxu1 }
 0x198   : > { %v423_v61 = vpop.f32.mrb[3].mxu1 }
 0x19c   : > { %v1291_v62 = vpop.f32.mrb[0].mxu0 }
 0x19d   : > { %v429_v63 = vadd.f32 %v1299_v58, %v1291_v62  ;;  %v356_v0 = vpop.f32.mrb[1].mxu0 }
 0x19e   : > { %v421_v1 = vadd.f32 %v420_v59, %v356_v0  ;;  %v1315_v2 = vpop.f32.mrb[4].mxu1  ;;  %v1292_v3 = vpop.f32.mrb[2].mxu0 }
 0x19f   : > { %v575_v4 = vpop.f32.mrb[5].mxu1  ;;  %v359_v5 = vpop.f32.mrb[3].mxu0 }
 0x1a0   : > { %v424_v6 = vadd.f32 %v423_v61, %v359_v5  ;;  %v1316_v7 = vpop.f32.mrb[6].mxu1 }
 0x1a1   : > { %v578_v8 = vpop.f32.mrb[7].mxu1 }
 0x1a4   : > { %v1307_v9 = vpop.f32.mrb[4].mxu0 }
 0x1a5   : > { %v513_v10 = vadd.f32 %v1307_v9, %v429_v63  ;;  %v497_v11 = vpop.f32.mrb[5].mxu0 }
 0x1a6   : > { %v511_v12 = vadd.f32 %v497_v11, %v421_v1  ;;  %v1331_v13 = vpop.f32.mrb[8].mxu1  ;;  %v1308_v14 = vpop.f32.mrb[6].mxu0 }
 0x1a7   : > { %v735_v15 = vpop.f32.mrb[9].mxu1  ;;  %v500_v16 = vpop.f32.mrb[7].mxu0  ;;  %v591_v17 = vadd.f32 %v1315_v2, %v513_v10 }
 0x1a8   : > { %v512_v18 = vadd.f32 %v500_v16, %v424_v6  ;;  %v1332_v19 = vpop.f32.mrb[10].mxu1  ;;  %v589_v20 = vadd.f32 %v575_v4, %v511_v12 }
 0x1a9   : > { %v738_v21 = vpop.f32.mrb[11].mxu1 }
 0x1aa   : > { %v590_v22 = vadd.f32 %v578_v8, %v512_v18 }
 0x1ac   : > { %v1323_v23 = vpop.f32.mrb[8].mxu0 }
 0x1ad   : > { %v673_v24 = vadd.f32 %v1323_v23, %v591_v17  ;;  %v657_v25 = vpop.f32.mrb[9].mxu0 }
 0x1ae   : > { %v671_v26 = vadd.f32 %v657_v25, %v589_v20  ;;  %v1347_v27 = vpop.f32.mrb[12].mxu1  ;;  %v1324_v28 = vpop.f32.mrb[10].mxu0 }
 0x1af   : > { %v907_v29 = vpop.f32.mrb[13].mxu1  ;;  %v660_v30 = vpop.f32.mrb[11].mxu0  ;;  %v751_v31 = vadd.f32 %v1331_v13, %v673_v24 }
 0x1b0   : > { %v672_v32 = vadd.f32 %v660_v30, %v590_v22  ;;  %v1348_v33 = vpop.f32.mrb[14].mxu1  ;;  %v749_v34 = vadd.f32 %v735_v15, %v671_v26 }
 0x1b1   : > { %v910_v35 = vpop.f32.mrb[15].mxu1 }
 0x1b2   : > { %v750_v36 = vadd.f32 %v738_v21, %v672_v32 }
 0x1b4   : > { %v1339_v37 = vpop.f32.mrb[12].mxu0 }
 0x1b5   : > { %v832_v38 = vadd.f32 %v1339_v37, %v751_v31  ;;  %v816_v39 = vpop.f32.mrb[13].mxu0 }
 0x1b6   : > { %v830_v40 = vadd.f32 %v816_v39, %v749_v34  ;;  %v1340_v41 = vpop.f32.mrb[14].mxu0 }
 0x1b7   : > { %v819_v42 = vpop.f32.mrb[15].mxu0  ;;  %v923_v43 = vadd.f32 %v1347_v27, %v832_v38 }
 0x1b8   : > { %v831_v44 = vadd.f32 %v819_v42, %v750_v36  ;;  %v921_v45 = vadd.f32 %v907_v29, %v830_v40 }
 0x1ba   : > { %v922_v46 = vadd.f32 %v910_v35, %v831_v44 }
 0x1bc   : > { %v1355_v47 = vpop.f32.mrb[16].mxu0 }
 0x1bd   : > { %v1003_v49 = vadd.f32 %v1355_v47, %v923_v43  ;;  %v987_v50 = vpop.f32.mrb[17].mxu0 }
 0x1be   : > { %v1001_v51 = vadd.f32 %v987_v50, %v921_v45  ;;  %v1356_v52 = vpop.f32.mrb[18].mxu0 }
 0x1bf   : > { %v1013_v53 = vadd.f32 %v1231_v48, %v1003_v49  ;;  %v990_v54 = vpop.f32.mrb[19].mxu0 }
 0x1c0   : > { %v1011_v55 = vadd.f32 %v1231_v48, %v1001_v51  ;;  %v1002_v56 = vadd.f32 %v990_v54, %v922_v46 }
 0x1c1   : > { %v1019_v57 = vmul.f32 0.2, %v1013_v53  ;;  %vm1016_vm15 = vcmp.ge.f32.partialorder %v1013_v53, 0.0 }
 0x1c2   : > { %v1017_v58 = vmul.f32 0.2, %v1011_v55  ;;  %v1012_v59 = vadd.f32 %v1231_v48, %v1002_v56  ;;  %vm1014_vm1 = vcmp.ge.f32.partialorder %v1011_v55, 0.0 }
 0x1c3   : > { %v1022_v62 = vsel %vm1016_vm15, %v1013_v53, %v1019_v57 }
 0x1c4   : > { %v1018_v60 = vmul.f32 0.2, %v1012_v59  ;;  %v1020_v61 = vsel %vm1014_vm1, %v1011_v55, %v1017_v58  ;;  %vm1015_vm2 = vcmp.ge.f32.partialorder %v1012_v59, 0.0  ;;  %v1025_v3 = vmul.f32 %v1022_v62, %v1022_v62 }
 0x1c5   : > { %v1023_v63 = vmul.f32 %v1020_v61, %v1020_v61 }
 0x1c6   : > { %v1021_v0 = vsel %vm1015_vm2, %v1012_v59, %v1018_v60  ;;  %v1032_v5 = vsel %vm238_vm0, %v1025_v3, 0.0 }
 0x1c7   : > { %v1026_v1 = vsel %vm238_vm0, %v1023_v63, 0.0  ;;  %v1024_v2 = vmul.f32 %v1021_v0, %v1021_v0 }
 0x1c8   : > { %1027 = vadd.xlane.f32.xlu1 %v1026_v1 }
 0x1c9   : > { %v1029_v4 = vsel %vm238_vm0, %v1024_v2, 0.0  ;;  %vm1060_vm0 = vcmask 257024  }
 0x1ca   : > { %1030 = vadd.xlane.f32.xlu0 %v1029_v4 }
 0x1cc   : > { %1033 = vadd.xlane.f32.xlu1 %v1032_v5 }
 0x255   : > { %v1028_v6 = vpop.xlane.xlu1 %1027 }
 0x256   : > { %v1035_v7 = vmul.f32 0.03125, %v1028_v6 }
 0x257   : > { %v1031_v8 = vpop.xlane.xlu0 %1030 }
 0x258   : > { %v1038_v9 = vadd.f32 1e-08, %v1035_v7  ;;  %v1036_v10 = vmul.f32 0.03125, %v1031_v8 }
 0x259   : > { %v1034_v11 = vpop.xlane.xlu1 %1033 }
 0x25a   : > { %1411 = vrsqrt.f32 %v1038_v9  ;;  %v1039_v12 = vadd.f32 1e-08, %v1036_v10  ;;  %v1037_v13 = vmul.f32 0.03125, %v1034_v11 }
 0x25c   : > { %1413 = vrsqrt.f32 %v1039_v12  ;;  %v1040_v14 = vadd.f32 1e-08, %v1037_v13 }
 0x25e   : > { %1415 = vrsqrt.f32 %v1040_v14 }
 0x264   : > { %v1412_v15 = vpop.eup %1411 }
 0x265   : > { %v1044_v16 = vmul.f32 %v1412_v15, %v1020_v61 }
 0x266   : > { %v1414_v17 = vpop.eup %1413 }
 0x267   : > { %v1237_v18 = vpack.c.bf16 %v1044_v16, %v1044_v16  ;;  %v1045_v19 = vmul.f32 %v1414_v17, %v1021_v0 }
 0x268   : > { %v1416_v20 = vpop.eup %1415 }
 0x269   : > { %1061 = vst.msk [vmem:[%s206_s11] sm:$0xf] %vm1060_vm0, %v1237_v18  ;;  %v1238_v21 = vpack.c.bf16 %v1045_v19, %v1045_v19  ;;  %v1046_v22 = vmul.f32 %v1416_v20, %v1022_v62 }
 0x26b   : > { %1062 = vst.msk [vmem:[%s206_s11 + $0x4] sm:$0xf] %vm1060_vm0, %v1238_v21  ;;  %v1239_v23 = vpack.c.bf16 %v1046_v22, %v1046_v22 }
 0x26d   : > { %1063 = vst.msk [vmem:[%s206_s11 + $0x8] sm:$0xf] %vm1060_vm0, %v1239_v23 }
 0x26e PF: > { %s13_s14 = sadd.s32 1, %s1439_s14   ;;  %s1633_s12 = smov %s1435_s13 }
 0x26f   : > { %p10_p5 = scmp.ge.s32.totalorder %s13_s14, 4   ;;  %s1634_s13 = smov %s1636_s15 }
 0x271   :  { %12 = sbr.rel (!%p10_p5) target bundleno = 2 (0x2), region = 70 }

// kernel: progan_generator_forward.6
= control target key start
LH: loop header
LB: loop body
LE: loop exit
PB: predicated region body
PF: predicated region fallthrough
CT: control target
= control target key end

     0   :  { %s2282_s12 = smov 0   ;;  %s2284_s13 = smov 0   ;;  %s2910_s0 = inlined_call_operand.vmem [shape: bf16[2,1,102,32], index: 0, kind: input, shape index: {}]   ;;  %s2911_s1 = inlined_call_operand.vmem [shape: bf16[9,32,16], index: 1, kind: input, shape index: {}]   ;;  %s2912_s2 = inlined_call_operand.vmem [shape: f32[1,16], index: 2, kind: input, shape index: {}]   ;;  %s2913_s3 = inlined_call_operand.vmem [shape: bf16[2,1,80,16], index: 3, kind: output, shape index: {}]  }
   0x1   :  { %s2286_s14 = smov 0  }
   0x2 LB: > { %s25_s15 = sadd.s32 1, %s2254_s13  ;;  %p1738_p0 = scmp.ge.s32.totalorder %s2258_s14, 1  ;;  %s2258_s14 = sphi %s2286_s14, %s13_s14   ;;  %s2254_s13 = sphi %s2284_s13, %s2915_s13   ;;  %s2250_s12 = sphi %s2282_s12, %s2914_s12  }
   0x3   : > { %p27_p1 = scmp.ge.s32.totalorder %s25_s15, 2  ;;  %p157_p2 = scmp.lt.s32.totalorder %s2258_s14, 3 }
   0x5   : > { %s2917_s15 = smov (%p27_p1, %s25_s15), 0  ;;  %p158_p3 = pnand %p1738_p0, %p157_p2 }
   0x6   : > { %v2184_v0 = vld [vmem:[%s2911_s1 + $0x10] sm:$0xff] (!%p158_p3)   ;;  %v2260_v1 = vmov (!%p158_p3), 0.0   ;;  %v2185_v2 = vld [vmem:[%s2911_s1 + $0x18] sm:$0xff] (!%p158_p3)   ;;  %p189_p4 = scmp.lt.s32.totalorder (!%p158_p3), %s2250_s12, 1  ;;  %vm2261_vm0 = vmmov (!%p158_p3), 0   ;;  %vm315_vm2 = vcmask (!%p158_p3), 261120  }
   0x7   : > { %161 = sbr.rel (%p158_p3) target bundleno = 590 (0x24e), region = 32  ;;  %1936 = vmatprep.subr.bf16.mxu0 (!%p158_p3), %v2260_v1  ;;  %2152 = vmatprep.subr.bf16.mxu1 (!%p158_p3), %v2260_v1  ;;  %vm258_vm1 = vsmask.f32 (!%p158_p3), 7424  ;;  %v2191_v31 = vld [vmem:[%s2911_s1 + $0x20] sm:$0xff] (!%p158_p3)   ;;  %v2197_v45 = vld [vmem:[%s2911_s1 + $0x28] sm:$0xff] (!%p158_p3)   ;;  %vm504_vm3 = vcmask (!%p158_p3), 1046528  }
   0x8   : > { %1937 = vmatpush3.bf16.msra.mxu0 (!%p158_p3), %v2184_v0  ;;  %2154 = vmatpush3.bf16.msra.mxu1 (!%p158_p3), %v2184_v0  ;;  %v2192_v36 = vld [vmem:[%s2911_s1] sm:$0xff] (!%p158_p3)   ;;  %v2198_v48 = vld [vmem:[%s2911_s1 + $0x8] sm:$0xff] (!%p158_p3)   ;;  %vm934_vm4 = vcmask (!%p158_p3), 1045504   ;;  %vm765_vm5 = vsmask.f32 (!%p158_p3), 6400  ;;  %vm1340_vm7 = vcmask (!%p158_p3), 1044480  }
   0x9   : > { %1938 = vmatprep.subr.bf16.mxu0 (!%p158_p3), %v2260_v1  ;;  %2153 = vmatprep.subr.bf16.mxu1 (!%p158_p3), %v2260_v1  ;;  %vm1191_vm6 = vsmask.f32 (!%p158_p3), 5376  ;;  %vm1519_vm9 = vcmask (!%p158_p3), 130048  }
   0xa   : > { %1940 = vmatprep.mubr.msk.bf16.mxu0 (!%p158_p3), %vm2261_vm0, %v2260_v1  ;;  %1952 = vmatprep.mubr.msk.bf16.mxu1 (!%p158_p3), %vm2261_vm0, %v2260_v1 }
   0xc   : > { %1939 = vmatpush3.bf16.msra.mxu0 (!%p158_p3), %v2185_v2  ;;  %2155 = vmatpush3.bf16.msra.mxu1 (!%p158_p3), %v2185_v2 }
   0xd   : > { %1984 = vmatprep.subr.bf16.mxu0 (!%p158_p3), %v2260_v1  ;;  %1960 = vmatprep.subr.bf16.mxu1 (!%p158_p3), %v2260_v1 }
   0xe   : > { %s2919_s12 = smov (!%p189_p4, %s2250_s12), 1 }
   0xf   : > { %s2156_s20 = smul.u32 52, %s2919_s12 }
  0x10   : > { %s2157_s8 = smul.u32 40, %s2919_s12 }
  0x11   : > { %s2322_s23 = scalar_lea.vmem %s2910_s0, %s2156_s20 }
  0x12   : > { %v208_v3 = vld [vmem:[%s2322_s23] sm:$0xf]  ;;  %v2326_v4 = vld [vmem:[%s2322_s23 + $0x4] sm:$0xf]  ;;  %v2329_v5 = vld [vmem:[%s2322_s23 + $0x8] sm:$0xf]  ;;  %s2870_s11 = scalar_lea.vmem %s2913_s3, %s2157_s8 }
  0x13   : > { %v2332_v6 = vld [vmem:[%s2322_s23 + $0xc] sm:$0xf]  ;;  %v2335_v7 = vcombine.low %v208_v3, %v2326_v4  ;;  %v214_v8 = vld [vmem:[%s2322_s23 + $0x18] sm:$0xf]  ;;  %v215_v9 = vld [vmem:[%s2322_s23 + $0x1c] sm:$0xf] }
  0x14   : > { %v2341_v10 = vcombine.low %v2329_v5, %v2332_v6  ;;  %v216_v11 = vld [vmem:[%s2322_s23 + $0x20] sm:$0xf]  ;;  %v217_v12 = vld [vmem:[%s2322_s23 + $0x24] sm:$0xf]  ;;  %v2345_v13 = vcombine.low %v214_v8, %v215_v9  ;;  %v2348_v14 = vld [vmem:[%s2322_s23 + $0x10] sm:$0xf] }
  0x15   : > { %v260_v15 = vshrl.u32 %v2335_v7, 16  ;;  %v262_v16 = vshll.u32 %v2335_v7, 16  ;;  %v2352_v17 = vcombine.low %v216_v11, %v217_v12  ;;  %v213_v18 = vld [vmem:[%s2322_s23 + $0x14] sm:$0xf]  ;;  %v218_v19 = vld [vmem:[%s2322_s23 + $0x28] sm:$0xf]  ;;  %v2414_v53 = vcombine.low %v215_v9, %v216_v11 }
  0x16   : > { %v267_v20 = vshll.u32 %v2341_v10, 16  ;;  %v283_v21 = vshll.u32 %v2345_v13, 16  ;;  %v287_v22 = vshrl.u32 %v2345_v13, 16  ;;  %v2360_v23 = vcombine.low %v2348_v14, %v213_v18  ;;  %v219_v34 = vld [vmem:[%s2322_s23 + $0x2c] sm:$0xf] }
  0x17   : > { %v264_v24 = vrot.slane %v262_v16, 1  ;;  %v291_v25 = vshll.u32 %v2352_v17, 16  ;;  %v2363_v26 = vcombine.low %v218_v19, %v218_v19  ;;  %v271_v32 = vshrl.u32 %v2341_v10, 16 }
  0x18   : > { %v269_v27 = vrot.slane %v267_v20, 1  ;;  %v2367_v28 = vrot.slane %v283_v21, 1  ;;  %v275_v33 = vshll.u32 %v2360_v23, 16  ;;  %v295_v37 = vshrl.u32 %v2352_v17, 16 }
  0x19   : > { %v265_v29 = vor.u32 %v264_v24, %v260_v15  ;;  %v293_v30 = vrot.slane %v291_v25, 1  ;;  %v299_v39 = vshll.u32 %v2363_v26, 16  ;;  %v2386_v40 = vcombine.low %v217_v12, %v218_v19 }
  0x1a   : > { %v289_v35 = vor.u32 %v287_v22, %v2367_v28  ;;  %v2390_v42 = vcombine.low %v218_v19, %v219_v34  ;;  %v273_v43 = vor.u32 %v271_v32, %v269_v27  ;;  %v277_v44 = vrot.slane %v275_v33, 1 }
  0x1b   : > { %v270_v38 = vsel %vm258_vm1, %v265_v29, %v269_v27  ;;  %v297_v46 = vor.u32 %v295_v37, %v293_v30  ;;  %v301_v47 = vrot.slane %v299_v39, 1  ;;  %v279_v50 = vshrl.u32 %v2360_v23, 16  ;;  %v2199_v29 = vld [vmem:[%s2911_s1 + $0x30] sm:$0xff]  }
  0x1c   : > { %1941 = vmatmul.mubr.msk.bf16.vlgmr.msra.gmra.mrb[0].mxu0 %vm315_vm2, %v270_v38  ;;  %v294_v41 = vsel %vm258_vm1, %v289_v35, %v293_v30  ;;  %v278_v49 = vsel %vm258_vm1, %v273_v43, %v277_v44  ;;  %v2409_v51 = vcombine.low %v213_v18, %v214_v8  ;;  %v2417_v55 = vrot.slane %v267_v20, 3 }
  0x1d   : > { %1953 = vmatmul.mubr.msk.bf16.vlgmr.msra.gmra.mrb[0].mxu1 %vm315_vm2, %v294_v41  ;;  %1985 = vmatpush3.bf16.msra.mxu0 %v2191_v31  ;;  %v302_v52 = vsel %vm258_vm1, %v297_v46, %v301_v47  ;;  %v2420_v56 = vrot.slane %v271_v32, 2  ;;  %v2422_v57 = vrot.slane %v275_v33, 3  ;;  %v281_v58 = vor.u32 %v279_v50, %v277_v44  ;;  %v2470_v47 = vld [vmem:[%s2322_s23 + $0x30] ss:$0 sps:$4 sm:$0x77]  }
  0x1e   : > { %1961 = vmatpush3.bf16.msra.mxu1 %v2192_v36  ;;  %1944 = vmatprep.mubr.msk.bf16.mxu0 %vm2261_vm0, %v2260_v1  ;;  %v784_v54 = vshrl.u32 %v2409_v51, 16  ;;  %v642_v59 = vrot.slane %v2409_v51, 1  ;;  %v644_v60 = vrot.slane %v2414_v53, 1  ;;  %v787_v61 = vshll.u32 %v2409_v51, 16 }
  0x1f   : > { %1956 = vmatprep.mubr.msk.bf16.mxu1 %vm2261_vm0, %v2260_v1  ;;  %1986 = vmatprep.subr.bf16.mxu0 %v2260_v1  ;;  %v505_v62 = vrot.slane %v2335_v7, 1  ;;  %v646_v0 = vrot.slane %v2386_v40, 1  ;;  %v793_v2 = vshrl.u32 %v2414_v53, 16  ;;  %v796_v9 = vshll.u32 %v2414_v53, 16 }
  0x20   : > { %1962 = vmatprep.subr.bf16.mxu1 %v2260_v1  ;;  %v786_v63 = vrot.slane %v784_v54, 1  ;;  %v2438_v3 = vsel %vm504_vm3, %v642_v59, %v644_v60  ;;  %v789_v8 = vrot.slane %v787_v61, 2  ;;  %v1785_v11 = vcombine.low %v219_v34, %v219_v34 }
  0x21   : > { %1987 = vmatpush3.bf16.msra.mxu0 %v2197_v45  ;;  %v506_v12 = vrot.slane %v2341_v10, 1  ;;  %v2443_v15 = vsel %vm504_vm3, %v644_v60, %v646_v0  ;;  %v795_v16 = vrot.slane %v793_v2, 1  ;;  %v802_v18 = vshrl.u32 %v2386_v40, 16  ;;  %v2200_v2 = vld [vmem:[%s2911_s1 + $0x40] sm:$0xff]  }
  0x22   : > { %1963 = vmatpush3.bf16.msra.mxu1 %v2198_v48  ;;  %2032 = vmatprep.subr.bf16.mxu0 %v2260_v1  ;;  %v286_v19 = vsel %vm258_vm1, %v281_v58, %v2367_v28  ;;  %v798_v20 = vrot.slane %v796_v9, 2  ;;  %v648_v24 = vrot.slane %v1785_v11, 1  ;;  %v805_v27 = vshll.u32 %v2386_v40, 16  ;;  %v2201_v48 = vld [vmem:[%s2911_s1 + $0x38] sm:$0xff]  }
  0x23   : > { %2008 = vmatprep.subr.bf16.mxu1 %v2260_v1  ;;  %v508_v30 = vrot.slane %v2360_v23, 1  ;;  %v804_v31 = vrot.slane %v802_v18, 1  ;;  %v811_v32 = vshrl.u32 %v1785_v11, 16  ;;  %v814_v33 = vshll.u32 %v1785_v11, 16 }
  0x24   : > { %1945 = vmatmul.mubr.msk.bf16.gmra.mrb[4].mxu0 %vm315_vm2, %v278_v49  ;;  %v2453_v34 = vor.u32 %v789_v8, %v786_v63  ;;  %v799_v35 = vor.u32 %v798_v20, %v795_v16  ;;  %v2456_v36 = vsel %vm504_vm3, %v646_v0, %v648_v24  ;;  %v807_v28 = vrot.slane %v805_v27, 2 }
  0x25   : > { %1957 = vmatmul.mubr.msk.bf16.gmra.mrb[4].mxu1 %vm315_vm2, %v302_v52  ;;  %1948 = vmatprep.mubr.msk.bf16.mxu0 %vm2261_vm0, %v2260_v1  ;;  %v1195_v38 = vrot.slane %v279_v50, 2  ;;  %v813_v39 = vrot.slane %v811_v32, 1  ;;  %v816_v41 = vrot.slane %v814_v33, 2  ;;  %v1065_v45 = vrot.slane %v2341_v10, 2 }
  0x26   : > { %1964 = vmatprep.mubr.msk.bf16.mxu1 %vm2261_vm0, %v2260_v1  ;;  %v2465_v43 = vsel %vm765_vm5, %v2453_v34, %v799_v35  ;;  %v808_v44 = vor.u32 %v807_v28, %v804_v31  ;;  %v1066_v46 = vrot.slane %v2360_v23, 2  ;;  %v938_v50 = vrot.slane %v2409_v51, 2 }
  0x27   : > { %v817_v49 = vor.u32 %v816_v41, %v813_v39  ;;  %v940_v52 = vrot.slane %v2414_v53, 2  ;;  %v1068_v60 = vrot.slane %v2345_v13, 2  ;;  %v942_v61 = vrot.slane %v2386_v40, 2 }
  0x28   : > { %v2484_v54 = vsel %vm765_vm5, %v799_v35, %v808_v44  ;;  %v2487_v58 = vsel %vm934_vm4, %v1065_v45, %v1066_v46  ;;  %v1070_v53 = vrot.slane %v2352_v17, 2  ;;  %v944_v0 = vrot.slane %v1785_v11, 2 }
  0x29   : > { %v2497_v63 = vsel %vm934_vm4, %v938_v50, %v940_v52  ;;  %v2504_v8 = vsel %vm934_vm4, %v1066_v46, %v1068_v60  ;;  %v2507_v40 = vsel %vm934_vm4, %v940_v52, %v942_v61  ;;  %v1072_v9 = vrot.slane %v2390_v42, 2 }
  0x2a   : > { %v1074_v16 = vrot.slane %v2470_v47, 2  ;;  %v2512_v18 = vsel %vm934_vm4, %v1068_v60, %v1070_v53  ;;  %v2515_v11 = vsel %vm934_vm4, %v942_v61, %v944_v0  ;;  %v1197_v27 = vor.u32 %v2422_v57, %v1195_v38  ;;  %v2202_v57 = vld [vmem:[%s2911_s1 + $0x48] sm:$0xff]  }
  0x2b   : > { %v2521_v20 = vsel %vm934_vm4, %v1070_v53, %v1072_v9  ;;  %v1200_v31 = vrot.slane %v283_v21, 3  ;;  %v1203_v32 = vrot.slane %v295_v37, 2  ;;  %v1204_v21 = vrot.slane %v291_v25, 3 }
  0x2c   : > { %1949 = vmatmul.mubr.msk.bf16.gmra.mrb[8].mxu0 %vm315_vm2, %v286_v19  ;;  %v1194_v19 = vor.u32 %v2417_v55, %v2420_v56  ;;  %v2524_v24 = vsel %vm934_vm4, %v1072_v9, %v1074_v16  ;;  %v1341_v55 = vrot.slane %v2341_v10, 3  ;;  %v1342_v56 = vrot.slane %v2360_v23, 3 }
  0x2d   : > { %1965 = vmatmul.mubr.msk.bf16.vlgmr.msra.gmra.mrb[8].mxu1 %vm315_vm2, %v2335_v7  ;;  %1988 = vmatprep.mubr.msk.bf16.mxu0 %vm2261_vm0, %v2260_v1  ;;  %v507_v7 = vsel %vm504_vm3, %v505_v62, %v506_v12  ;;  %v2492_v62 = vsel %vm765_vm5, %v808_v44, %v817_v49  ;;  %v1344_v33 = vrot.slane %v2345_v13, 3  ;;  %v1208_v38 = vshrl.u32 %v2390_v42, 16 }
  0x2e   : > { %2009 = vmatpush3.bf16.msra.mxu1 %v2199_v29  ;;  %1968 = vmatprep.mubr.msk.bf16.mxu1 %vm2261_vm0, %v2260_v1  ;;  %v1199_v29 = vrot.slane %v287_v22, 2  ;;  %v2540_v22 = vsel %vm1191_vm6, %v1194_v19, %v1197_v27  ;;  %v2552_v28 = vsel %vm1340_vm7, %v1341_v55, %v1342_v56  ;;  %v1211_v39 = vshll.u32 %v2390_v42, 16 }
  0x2f   : > { %2010 = vmatprep.subr.bf16.mxu1 %v2260_v1  ;;  %v1205_v37 = vor.u32 %v1204_v21, %v1203_v32  ;;  %v2558_v25 = vsel %vm1340_vm7, %v1342_v56, %v1344_v33  ;;  %v1210_v44 = vrot.slane %v1208_v38, 2  ;;  %v509_v46 = vsel %vm504_vm3, %v506_v12, %v508_v30 }
  0x30   : > { %v1201_v35 = vor.u32 %v1200_v31, %v1199_v29  ;;  %v1213_v45 = vrot.slane %v1211_v39, 3  ;;  %v1346_v49 = vrot.slane %v2352_v17, 3  ;;  %v1217_v12 = vshrl.u32 %v2470_v47, 16 }
  0x31   : > { %v1220_v61 = vshll.u32 %v2470_v47, 16  ;;  %v1348_v16 = vrot.slane %v2390_v42, 3  ;;  %v1780_v31 = vcombine.low %v2326_v4, %v2329_v5  ;;  %v514_v55 = vrot.slane %v2363_v26, 1 }
  0x32   : > { %2011 = vmatpush3.bf16.msra.mxu1 %v2201_v48  ;;  %v2561_v41 = vsel %vm1191_vm6, %v1197_v27, %v1201_v35  ;;  %v1214_v48 = vor.u32 %v1213_v45, %v1210_v44  ;;  %v2578_v60 = vsel %vm1340_vm7, %v1344_v33, %v1346_v49  ;;  %v1219_v53 = vrot.slane %v1217_v12, 2  ;;  %v2206_v45 = vld [vmem:[%s2911_s1 + $0x60] sm:$0xff]  }
  0x33   : > { %2056 = vmatprep.subr.bf16.mxu1 %v2260_v1  ;;  %v1222_v0 = vrot.slane %v1220_v61, 3  ;;  %v2598_v27 = vsel %vm1340_vm7, %v1346_v49, %v1348_v16  ;;  %v770_v56 = vshll.u32 %v1780_v31, 16  ;;  %v639_v5 = vrot.slane %v1780_v31, 1  ;;  %v2214_v49 = vld [vmem:[%s2911_s1 + $0x88] sm:$0xff]  }
  0x34   : > { %1989 = vmatmul.mubr.msk.bf16.vlgmr.msra.gmra.mrb[12].mxu0 %vm315_vm2, %v507_v7  ;;  %v2569_v7 = vsel %vm1191_vm6, %v1201_v35, %v1205_v37  ;;  %v2575_v52 = vsel %vm1191_vm6, %v1205_v37, %v1214_v48  ;;  %v2204_v35 = vld [vmem:[%s2911_s1 + $0x50] sm:$0xff]   ;;  %v2208_v37 = vld [vmem:[%s2911_s1 + $0x58] sm:$0xff]  }
  0x35   : > { %1969 = vmatmul.mubr.msk.bf16.gmra.mrb[12].mxu1 %vm315_vm2, %v2341_v10  ;;  %2033 = vmatpush3.bf16.msra.mxu0 %v2200_v2  ;;  %v510_v10 = vrot.slane %v2345_v13, 1  ;;  %v1223_v9 = vor.u32 %v1222_v0, %v1219_v53  ;;  %v772_v32 = vrot.slane %v770_v56, 2 }
  0x36   : > { %1972 = vmatprep.mubr.msk.bf16.mxu1 %vm2261_vm0, %v2260_v1  ;;  %1992 = vmatprep.mubr.msk.bf16.mxu0 %vm2261_vm0, %v2260_v1 }
  0x37   : > { %2034 = vmatprep.subr.bf16.mxu0 %v2260_v1  ;;  %v511_v2 = vsel %vm504_vm3, %v508_v30, %v510_v10  ;;  %v2595_v19 = vsel %vm1191_vm6, %v1214_v48, %v1223_v9  ;;  %v1350_v30 = vrot.slane %v2470_v47, 3  ;;  %v767_v47 = vshrl.u32 %v1780_v31, 16  ;;  %v2209_v48 = vld [vmem:[%s2911_s1 + $0x68] sm:$0xff]  }
  0x39   : > { %2035 = vmatpush3.bf16.msra.mxu0 %v2202_v57  ;;  %v2609_v42 = vsel %vm1340_vm7, %v1348_v16, %v1350_v30  ;;  %v769_v26 = vrot.slane %v767_v47, 1 }
  0x3a   : > { %2080 = vmatprep.subr.bf16.mxu0 %v2260_v1 }
  0x3b   : > { %v773_v38 = vor.u32 %v772_v32, %v769_v26 }
  0x3c   : > { %1993 = vmatmul.mubr.msk.bf16.gmra.mrb[16].mxu0 %vm315_vm2, %v509_v46 }
  0x3d   : > { %1973 = vmatmul.mubr.msk.bf16.gmra.mrb[16].mxu1 %vm315_vm2, %v2360_v23  ;;  %1996 = vmatprep.mubr.msk.bf16.mxu0 %vm2261_vm0, %v2260_v1  ;;  %v512_v23 = vrot.slane %v2352_v17, 1 }
  0x3e   : > { %1976 = vmatprep.mubr.msk.bf16.mxu1 %vm2261_vm0, %v2260_v1 }
  0x3f   : > { %v513_v29 = vsel %vm504_vm3, %v510_v10, %v512_v23 }
  0x44   : > { %1997 = vmatmul.mubr.msk.bf16.gmra.mrb[20].mxu0 %vm315_vm2, %v511_v2 }
  0x45   : > { %1977 = vmatmul.mubr.msk.bf16.gmra.mrb[20].mxu1 %vm315_vm2, %v2345_v13  ;;  %2000 = vmatprep.mubr.msk.bf16.mxu0 %vm2261_vm0, %v2260_v1  ;;  %v2616_v13 = vcombine.low %v2332_v6, %v2348_v14  ;;  %v515_v14 = vsel %vm504_vm3, %v512_v23, %v514_v55 }
  0x46   : > { %1980 = vmatprep.mubr.msk.bf16.mxu1 %vm2261_vm0, %v2260_v1 }
  0x47   : > { %v775_v57 = vshrl.u32 %v2616_v13, 16  ;;  %v778_v4 = vshll.u32 %v2616_v13, 16  ;;  %v640_v6 = vrot.slane %v2616_v13, 1 }
  0x49   : > { %v780_v21 = vrot.slane %v778_v4, 2  ;;  %v641_v33 = vsel %vm504_vm3, %v639_v5, %v640_v6  ;;  %v643_v46 = vsel %vm504_vm3, %v640_v6, %v642_v59  ;;  %vm1631_vm3 = vcmask 125952  }
  0x4c   : > { %2001 = vmatmul.mubr.msk.bf16.gmra.mrb[24].mxu0 %vm315_vm2, %v513_v29 }
  0x4d   : > { %1981 = vmatmul.mubr.msk.bf16.gmra.mrb[24].mxu1 %vm315_vm2, %v2352_v17  ;;  %2004 = vmatprep.mubr.msk.bf16.mxu0 %vm2261_vm0, %v2260_v1  ;;  %v777_v17 = vrot.slane %v775_v57, 1 }
  0x4e   : > { %2012 = vmatprep.mubr.msk.bf16.mxu1 %vm2261_vm0, %v2260_v1 }
  0x4f   : > { %v781_v39 = vor.u32 %v780_v21, %v777_v17 }
  0x51   : > { %v782_v44 = vsel %vm765_vm5, %v773_v38, %v781_v39  ;;  %v791_v59 = vsel %vm765_vm5, %v781_v39, %v2453_v34 }
  0x54   : > { %2005 = vmatmul.mubr.msk.bf16.gmra.mrb[28].mxu0 %vm315_vm2, %v515_v14 }
  0x55   : > { %2013 = vmatmul.mubr.msk.bf16.vlgmr.msra.gmra.mrb[28].mxu1 %vm315_vm2, %v641_v33  ;;  %2036 = vmatprep.mubr.msk.bf16.mxu0 %vm2261_vm0, %v2260_v1 }
  0x56   : > { %2057 = vmatpush3.bf16.msra.mxu1 %v2204_v35  ;;  %2016 = vmatprep.mubr.msk.bf16.mxu1 %vm2261_vm0, %v2260_v1 }
  0x57   : > { %2058 = vmatprep.subr.bf16.mxu1 %v2260_v1 }
  0x5a   : > { %2059 = vmatpush3.bf16.msra.mxu1 %v2208_v37 }
  0x5b   : > { %2104 = vmatprep.subr.bf16.mxu1 %v2260_v1 }
  0x5c   : > { %2037 = vmatmul.mubr.msk.bf16.vlgmr.msra.gmra.mrb[32].mxu0 %vm315_vm2, %v782_v44 }
  0x5d   : > { %2017 = vmatmul.mubr.msk.bf16.gmra.mrb[32].mxu1 %vm315_vm2, %v643_v46  ;;  %2081 = vmatpush3.bf16.msra.mxu0 %v2206_v45 }
  0x5e   : > { %2020 = vmatprep.mubr.msk.bf16.mxu1 %vm2261_vm0, %v2260_v1  ;;  %2040 = vmatprep.mubr.msk.bf16.mxu0 %vm2261_vm0, %v2260_v1 }
  0x5f   : > { %2082 = vmatprep.subr.bf16.mxu0 %v2260_v1 }
  0x61   : > { %2083 = vmatpush3.bf16.msra.mxu0 %v2209_v48 }
  0x62   : > { %2128 = vmatprep.subr.bf16.mxu0 %v2260_v1 }
  0x64   : > { %2041 = vmatmul.mubr.msk.bf16.gmra.mrb[36].mxu0 %vm315_vm2, %v791_v59 }
  0x65   : > { %2021 = vmatmul.mubr.msk.bf16.gmra.mrb[36].mxu1 %vm315_vm2, %v2438_v3  ;;  %2044 = vmatprep.mubr.msk.bf16.mxu0 %vm2261_vm0, %v2260_v1  ;;  %v935_v3 = vrot.slane %v1780_v31, 2 }
  0x66   : > { %2024 = vmatprep.mubr.msk.bf16.mxu1 %vm2261_vm0, %v2260_v1 }
  0x6c   : > { %2045 = vmatmul.mubr.msk.bf16.gmra.mrb[40].mxu0 %vm315_vm2, %v2465_v43  ;;  %v2211_v43 = vld [vmem:[%s2911_s1 + $0x70] sm:$0xff]  }
  0x6d   : > { %2025 = vmatmul.mubr.msk.bf16.gmra.mrb[40].mxu1 %vm315_vm2, %v2443_v15  ;;  %2048 = vmatprep.mubr.msk.bf16.mxu0 %vm2261_vm0, %v2260_v1  ;;  %v936_v15 = vrot.slane %v2616_v13, 2 }
  0x6e   : > { %2028 = vmatprep.mubr.msk.bf16.mxu1 %vm2261_vm0, %v2260_v1 }
  0x6f   : > { %v937_v34 = vsel %vm934_vm4, %v935_v3, %v936_v15 }
  0x74   : > { %2049 = vmatmul.mubr.msk.bf16.gmra.mrb[44].mxu0 %vm315_vm2, %v2484_v54  ;;  %v2212_v54 = vld [vmem:[%s2911_s1 + $0x80] sm:$0xff]  }
  0x75   : > { %2029 = vmatmul.mubr.msk.bf16.gmra.mrb[44].mxu1 %vm315_vm2, %v2456_v36  ;;  %2052 = vmatprep.mubr.msk.bf16.mxu0 %vm2261_vm0, %v2260_v1  ;;  %v2213_v36 = vld [vmem:[%s2911_s1 + $0x78] sm:$0xff]  }
  0x76   : > { %2060 = vmatprep.mubr.msk.bf16.mxu1 %vm2261_vm0, %v2260_v1 }
  0x7c   : > { %2053 = vmatmul.mubr.msk.bf16.gmra.mrb[48].mxu0 %vm315_vm2, %v2492_v62  ;;  %v939_v62 = vsel %vm934_vm4, %v936_v15, %v938_v50 }
  0x7d   : > { %2061 = vmatmul.mubr.msk.bf16.vlgmr.msra.gmra.mrb[48].mxu1 %vm315_vm2, %v937_v34  ;;  %2084 = vmatprep.mubr.msk.bf16.mxu0 %vm2261_vm0, %v2260_v1 }
  0x7e   : > { %2105 = vmatpush3.bf16.msra.mxu1 %v2211_v43  ;;  %2064 = vmatprep.mubr.msk.bf16.mxu1 %vm2261_vm0, %v2260_v1 }
  0x7f   : > { %2106 = vmatprep.subr.bf16.mxu1 %v2260_v1 }
  0x82   : > { %2107 = vmatpush3.bf16.msra.mxu1 %v2213_v36 }
  0x84   : > { %2085 = vmatmul.mubr.msk.bf16.vlgmr.msra.gmra.mrb[52].mxu0 %vm315_vm2, %v2487_v58 }
  0x85   : > { %2065 = vmatmul.mubr.msk.bf16.gmra.mrb[52].mxu1 %vm315_vm2, %v939_v62  ;;  %2129 = vmatpush3.bf16.msra.mxu0 %v2212_v54 }
  0x86   : > { %2068 = vmatprep.mubr.msk.bf16.mxu1 %vm2261_vm0, %v2260_v1  ;;  %2088 = vmatprep.mubr.msk.bf16.mxu0 %vm2261_vm0, %v2260_v1 }
  0x87   : > { %2130 = vmatprep.subr.bf16.mxu0 %v2260_v1 }
  0x89   : > { %2131 = vmatpush3.bf16.msra.mxu0 %v2214_v49 }
  0x8c   : > { %2089 = vmatmul.mubr.msk.bf16.gmra.mrb[56].mxu0 %vm315_vm2, %v2504_v8 }
  0x8d   : > { %2069 = vmatmul.mubr.msk.bf16.gmra.mrb[56].mxu1 %vm315_vm2, %v2497_v63  ;;  %2092 = vmatprep.mubr.msk.bf16.mxu0 %vm2261_vm0, %v2260_v1 }
  0x8e   : > { %2072 = vmatprep.mubr.msk.bf16.mxu1 %vm2261_vm0, %v2260_v1 }
  0x94   : > { %2093 = vmatmul.mubr.msk.bf16.gmra.mrb[60].mxu0 %vm315_vm2, %v2512_v18 }
  0x95   : > { %2073 = vmatmul.mubr.msk.bf16.gmra.mrb[60].mxu1 %vm315_vm2, %v2507_v40  ;;  %2096 = vmatprep.mubr.msk.bf16.mxu0 %vm2261_vm0, %v2260_v1 }
  0x96   : > { %2076 = vmatprep.mubr.msk.bf16.mxu1 %vm2261_vm0, %v2260_v1 }
  0x9c   : > { %2097 = vmatmul.mubr.msk.bf16.gmra.mrb[64].mxu0 %vm315_vm2, %v2521_v20 }
  0x9d   : > { %2077 = vmatmul.mubr.msk.bf16.gmra.mrb[64].mxu1 %vm315_vm2, %v2515_v11  ;;  %2100 = vmatprep.mubr.msk.bf16.mxu0 %vm2261_vm0, %v2260_v1 }
  0x9e   : > { %2108 = vmatprep.mubr.msk.bf16.mxu1 %vm2261_vm0, %v2260_v1 }
  0xa4   : > { %2101 = vmatmul.mubr.msk.bf16.gmra.mrb[68].mxu0 %vm315_vm2, %v2524_v24 }
  0xa5   : > { %2109 = vmatmul.mubr.msk.bf16.vlgmr.msra.gmra.mrb[68].mxu1 %vm315_vm2, %v2540_v22  ;;  %2132 = vmatprep.mubr.msk.bf16.mxu0 %vm2261_vm0, %v2260_v1 }
  0xa6   : > { %2112 = vmatprep.mubr.msk.bf16.mxu1 %vm2261_vm0, %v2260_v1 }
  0xac   : > { %2133 = vmatmul.mubr.msk.bf16.vlgmr.msra.gmra.mrb[72].mxu0 %vm315_vm2, %v2552_v28 }
  0xad   : > { %2113 = vmatmul.mubr.msk.bf16.gmra.mrb[72].mxu1 %vm315_vm2, %v2561_v41  ;;  %2136 = vmatprep.mubr.msk.bf16.mxu0 %vm2261_vm0, %v2260_v1 }
  0xae   : > { %2116 = vmatprep.mubr.msk.bf16.mxu1 %vm2261_vm0, %v2260_v1 }
  0xb4   : > { %2137 = vmatmul.mubr.msk.bf16.gmra.mrb[76].mxu0 %vm315_vm2, %v2558_v25 }
  0xb5   : > { %2117 = vmatmul.mubr.msk.bf16.gmra.mrb[76].mxu1 %vm315_vm2, %v2569_v7  ;;  %2140 = vmatprep.mubr.msk.bf16.mxu0 %vm2261_vm0, %v2260_v1 }
  0xb6   : > { %2120 = vmatprep.mubr.msk.bf16.mxu1 %vm2261_vm0, %v2260_v1 }
  0xbc   : > { %2141 = vmatmul.mubr.msk.bf16.gmra.mrb[80].mxu0 %vm315_vm2, %v2578_v60 }
  0xbd   : > { %2121 = vmatmul.mubr.msk.bf16.gmra.mrb[80].mxu1 %vm315_vm2, %v2575_v52  ;;  %2144 = vmatprep.mubr.msk.bf16.mxu0 %vm2261_vm0, %v2260_v1 }
  0xbe   : > { %2124 = vmatprep.mubr.msk.bf16.mxu1 %vm2261_vm0, %v2260_v1 }
  0xc4   : > { %2145 = vmatmul.mubr.msk.bf16.gmra.mrb[84].mxu0 %vm315_vm2, %v2598_v27 }
  0xc5   : > { %2125 = vmatmul.mubr.msk.bf16.gmra.mrb[84].mxu1 %vm315_vm2, %v2595_v19  ;;  %2148 = vmatprep.mubr.msk.bf16.mxu0 %vm2261_vm0, %v2260_v1 }
  0xcc   : > { %2149 = vmatmul.mubr.msk.bf16.gmra.mrb[88].mxu0 %vm315_vm2, %v2609_v42 }
  0xef   : > { %v365_v51 = vpop.f32.mrb[0].mxu0 }
  0xf0   : > { %v1942_v50 = vpop.f32.mrb[1].mxu0  ;;  %v389_v58 = vpop.f32.mrb[0].mxu1 }
  0xf1   : > { %v368_v63 = vpop.f32.mrb[2].mxu0  ;;  %v1954_v8 = vpop.f32.mrb[1].mxu1 }
  0xf2   : > { %v1943_v40 = vpop.f32.mrb[3].mxu0  ;;  %v392_v18 = vpop.f32.mrb[2].mxu1 }
  0xf3   : > { %v1955_v11 = vpop.f32.mrb[3].mxu1 }
  0xf7   : > { %v373_v20 = vpop.f32.mrb[4].mxu0 }
  0xf8   : > { %v1946_v24 = vpop.f32.mrb[5].mxu0  ;;  %v397_v22 = vpop.f32.mrb[4].mxu1 }
  0xf9   : > { %v376_v28 = vpop.f32.mrb[6].mxu0  ;;  %v1958_v25 = vpop.f32.mrb[5].mxu1 }
  0xfa   : > { %v1947_v41 = vpop.f32.mrb[7].mxu0  ;;  %v400_v7 = vpop.f32.mrb[6].mxu1 }
  0xfb   : > { %v1959_v52 = vpop.f32.mrb[7].mxu1 }
  0xff   : > { %v381_v1 = vpop.f32.mrb[8].mxu0 }
 0x100   : > { %v460_v60 = vpop.f32.mrb[8].mxu1  ;;  %v1950_v10 = vpop.f32.mrb[9].mxu0 }
 0x101   : > { %v461_v12 = vadd.f32 %v460_v60, %v365_v51  ;;  %v1966_v61 = vpop.f32.mrb[9].mxu1  ;;  %v384_v53 = vpop.f32.mrb[10].mxu0 }
 0x102   : > { %v463_v0 = vpop.f32.mrb[10].mxu1  ;;  %v1951_v2 = vpop.f32.mrb[11].mxu0 }
 0x103   : > { %v464_v9 = vadd.f32 %v463_v0, %v368_v63  ;;  %v1967_v16 = vpop.f32.mrb[11].mxu1 }
 0x107   : > { %v577_v19 = vpop.f32.mrb[12].mxu0 }
 0x108   : > { %v468_v27 = vpop.f32.mrb[12].mxu1  ;;  %v616_v23 = vadd.f32 %v577_v19, %v461_v12  ;;  %v1990_v30 = vpop.f32.mrb[13].mxu0 }
 0x109   : > { %v469_v42 = vadd.f32 %v468_v27, %v373_v20  ;;  %v1970_v29 = vpop.f32.mrb[13].mxu1  ;;  %v580_v31 = vpop.f32.mrb[14].mxu0 }
 0x10a   : > { %v471_v13 = vpop.f32.mrb[14].mxu1  ;;  %v617_v55 = vadd.f32 %v580_v31, %v464_v9  ;;  %v1991_v47 = vpop.f32.mrb[15].mxu0 }
 0x10b   : > { %v472_v56 = vadd.f32 %v471_v13, %v376_v28  ;;  %v1971_v57 = vpop.f32.mrb[15].mxu1 }
 0x10f   : > { %v585_v4 = vpop.f32.mrb[16].mxu0 }
 0x110   : > { %v476_v5 = vpop.f32.mrb[16].mxu1  ;;  %v618_v6 = vadd.f32 %v585_v4, %v469_v42  ;;  %v1994_v14 = vpop.f32.mrb[17].mxu0 }
 0x111   : > { %v477_v26 = vadd.f32 %v476_v5, %v381_v1  ;;  %v1974_v32 = vpop.f32.mrb[17].mxu1  ;;  %v588_v17 = vpop.f32.mrb[18].mxu0 }
 0x112   : > { %v479_v21 = vpop.f32.mrb[18].mxu1  ;;  %v619_v33 = vadd.f32 %v588_v17, %v472_v56  ;;  %v1995_v35 = vpop.f32.mrb[19].mxu0 }
 0x113   : > { %v480_v38 = vadd.f32 %v479_v21, %v384_v53  ;;  %v1975_v39 = vpop.f32.mrb[19].mxu1 }
 0x117   : > { %v593_v37 = vpop.f32.mrb[20].mxu0 }
 0x118   : > { %v484_v44 = vpop.f32.mrb[20].mxu1  ;;  %v620_v45 = vadd.f32 %v593_v37, %v477_v26  ;;  %v1998_v46 = vpop.f32.mrb[21].mxu0 }
 0x119   : > { %v485_v48 = vadd.f32 %v484_v44, %v389_v58  ;;  %v1978_v59 = vpop.f32.mrb[21].mxu1  ;;  %v596_v3 = vpop.f32.mrb[22].mxu0 }
 0x11a   : > { %v487_v15 = vpop.f32.mrb[22].mxu1  ;;  %v621_v34 = vadd.f32 %v596_v3, %v480_v38  ;;  %v1999_v43 = vpop.f32.mrb[23].mxu0 }
 0x11b   : > { %v488_v36 = vadd.f32 %v487_v15, %v392_v18  ;;  %v1979_v54 = vpop.f32.mrb[23].mxu1 }
 0x11f   : > { %v601_v62 = vpop.f32.mrb[24].mxu0 }
 0x120   : > { %v492_v49 = vpop.f32.mrb[24].mxu1  ;;  %v622_v51 = vadd.f32 %v601_v62, %v485_v48  ;;  %v2002_v50 = vpop.f32.mrb[25].mxu0 }
 0x121   : > { %v493_v63 = vadd.f32 %v492_v49, %v397_v22  ;;  %v1982_v8 = vpop.f32.mrb[25].mxu1  ;;  %v604_v40 = vpop.f32.mrb[26].mxu0 }
 0x122   : > { %v495_v11 = vpop.f32.mrb[26].mxu1  ;;  %v623_v20 = vadd.f32 %v604_v40, %v488_v36  ;;  %v2003_v24 = vpop.f32.mrb[27].mxu0 }
 0x123   : > { %v496_v28 = vadd.f32 %v495_v11, %v400_v7  ;;  %v1983_v25 = vpop.f32.mrb[27].mxu1 }
 0x127   : > { %v609_v58 = vpop.f32.mrb[28].mxu0 }
 0x128   : > { %v624_v41 = vadd.f32 %v609_v58, %v493_v63  ;;  %v711_v52 = vpop.f32.mrb[28].mxu1  ;;  %v2006_v1 = vpop.f32.mrb[29].mxu0 }
 0x129   : > { %v750_v60 = vadd.f32 %v711_v52, %v616_v23  ;;  %v2014_v10 = vpop.f32.mrb[29].mxu1  ;;  %v612_v18 = vpop.f32.mrb[30].mxu0 }
 0x12a   : > { %v625_v12 = vadd.f32 %v612_v18, %v496_v28  ;;  %v714_v61 = vpop.f32.mrb[30].mxu1  ;;  %v2007_v53 = vpop.f32.mrb[31].mxu0 }
 0x12b   : > { %v751_v0 = vadd.f32 %v714_v61, %v617_v55  ;;  %v2015_v2 = vpop.f32.mrb[31].mxu1 }
 0x12f   : > { %v880_v22 = vpop.f32.mrb[32].mxu0 }
 0x130   : > { %v719_v9 = vpop.f32.mrb[32].mxu1  ;;  %v919_v16 = vadd.f32 %v880_v22, %v750_v60  ;;  %v2038_v19 = vpop.f32.mrb[33].mxu0 }
 0x131   : > { %v752_v27 = vadd.f32 %v719_v9, %v618_v6  ;;  %v2018_v30 = vpop.f32.mrb[33].mxu1  ;;  %v883_v7 = vpop.f32.mrb[34].mxu0 }
 0x132   : > { %v722_v42 = vpop.f32.mrb[34].mxu1  ;;  %v920_v29 = vadd.f32 %v883_v7, %v751_v0  ;;  %v2039_v31 = vpop.f32.mrb[35].mxu0 }
 0x133   : > { %v753_v13 = vadd.f32 %v722_v42, %v619_v33  ;;  %v2019_v47 = vpop.f32.mrb[35].mxu1 }
 0x137   : > { %v888_v23 = vpop.f32.mrb[36].mxu0 }
 0x138   : > { %v727_v56 = vpop.f32.mrb[36].mxu1  ;;  %v921_v57 = vadd.f32 %v888_v23, %v752_v27  ;;  %v2042_v4 = vpop.f32.mrb[37].mxu0 }
 0x139   : > { %v754_v5 = vadd.f32 %v727_v56, %v620_v45  ;;  %v2022_v14 = vpop.f32.mrb[37].mxu1  ;;  %v891_v55 = vpop.f32.mrb[38].mxu0 }
 0x13a   : > { %v730_v26 = vpop.f32.mrb[38].mxu1  ;;  %v922_v32 = vadd.f32 %v891_v55, %v753_v13  ;;  %v2043_v17 = vpop.f32.mrb[39].mxu0 }
 0x13b   : > { %v755_v21 = vadd.f32 %v730_v26, %v621_v34  ;;  %v2023_v35 = vpop.f32.mrb[39].mxu1 }
 0x13f   : > { %v896_v6 = vpop.f32.mrb[40].mxu0 }
 0x140   : > { %v735_v38 = vpop.f32.mrb[40].mxu1  ;;  %v923_v39 = vadd.f32 %v896_v6, %v754_v5  ;;  %v2046_v37 = vpop.f32.mrb[41].mxu0 }
 0x141   : > { %v756_v44 = vadd.f32 %v735_v38, %v622_v51  ;;  %v2026_v46 = vpop.f32.mrb[41].mxu1  ;;  %v899_v33 = vpop.f32.mrb[42].mxu0 }
 0x142   : > { %v738_v48 = vpop.f32.mrb[42].mxu1  ;;  %v924_v59 = vadd.f32 %v899_v33, %v755_v21  ;;  %v2047_v3 = vpop.f32.mrb[43].mxu0 }
 0x143   : > { %v757_v15 = vadd.f32 %v738_v48, %v623_v20  ;;  %v2027_v43 = vpop.f32.mrb[43].mxu1 }
 0x147   : > { %v904_v45 = vpop.f32.mrb[44].mxu0 }
 0x148   : > { %v743_v36 = vpop.f32.mrb[44].mxu1  ;;  %v925_v54 = vadd.f32 %v904_v45, %v756_v44  ;;  %v2050_v62 = vpop.f32.mrb[45].mxu0 }
 0x149   : > { %v758_v49 = vadd.f32 %v743_v36, %v624_v41  ;;  %v2030_v50 = vpop.f32.mrb[45].mxu1  ;;  %v907_v34 = vpop.f32.mrb[46].mxu0 }
 0x14a   : > { %v746_v63 = vpop.f32.mrb[46].mxu1  ;;  %v926_v8 = vadd.f32 %v907_v34, %v757_v15  ;;  %v2051_v40 = vpop.f32.mrb[47].mxu0 }
 0x14b   : > { %v759_v11 = vadd.f32 %v746_v63, %v625_v12  ;;  %v2031_v24 = vpop.f32.mrb[47].mxu1 }
 0x14f   : > { %v912_v51 = vpop.f32.mrb[48].mxu0 }
 0x150   : > { %v927_v28 = vadd.f32 %v912_v51, %v758_v49  ;;  %v1007_v25 = vpop.f32.mrb[48].mxu1  ;;  %v2054_v58 = vpop.f32.mrb[49].mxu0 }
 0x151   : > { %v1046_v52 = vadd.f32 %v1007_v25, %v919_v16  ;;  %v2062_v1 = vpop.f32.mrb[49].mxu1  ;;  %v915_v20 = vpop.f32.mrb[50].mxu0 }
 0x152   : > { %v928_v60 = vadd.f32 %v915_v20, %v759_v11  ;;  %v1010_v10 = vpop.f32.mrb[50].mxu1  ;;  %v2055_v18 = vpop.f32.mrb[51].mxu0 }
 0x153   : > { %v1047_v61 = vadd.f32 %v1010_v10, %v920_v29  ;;  %v2063_v53 = vpop.f32.mrb[51].mxu1 }
 0x157   : > { %v1137_v41 = vpop.f32.mrb[52].mxu0 }
 0x158   : > { %v1015_v0 = vpop.f32.mrb[52].mxu1  ;;  %v1176_v2 = vadd.f32 %v1137_v41, %v1046_v52  ;;  %v2086_v22 = vpop.f32.mrb[53].mxu0 }
 0x159   : > { %v1048_v9 = vadd.f32 %v1015_v0, %v921_v57  ;;  %v2066_v19 = vpop.f32.mrb[53].mxu1  ;;  %v1140_v12 = vpop.f32.mrb[54].mxu0 }
 0x15a   : > { %v1018_v27 = vpop.f32.mrb[54].mxu1  ;;  %v1177_v30 = vadd.f32 %v1140_v12, %v1047_v61  ;;  %v2087_v7 = vpop.f32.mrb[55].mxu0 }
 0x15b   : > { %v1049_v42 = vadd.f32 %v1018_v27, %v922_v32  ;;  %v2067_v31 = vpop.f32.mrb[55].mxu1 }
 0x15f   : > { %v1145_v16 = vpop.f32.mrb[56].mxu0 }
 0x160   : > { %v1023_v13 = vpop.f32.mrb[56].mxu1  ;;  %v1178_v47 = vadd.f32 %v1145_v16, %v1048_v9  ;;  %v2090_v23 = vpop.f32.mrb[57].mxu0 }
 0x161   : > { %v1050_v56 = vadd.f32 %v1023_v13, %v923_v39  ;;  %v2070_v4 = vpop.f32.mrb[57].mxu1  ;;  %v1148_v29 = vpop.f32.mrb[58].mxu0 }
 0x162   : > { %v1026_v5 = vpop.f32.mrb[58].mxu1  ;;  %v1179_v14 = vadd.f32 %v1148_v29, %v1049_v42  ;;  %v2091_v55 = vpop.f32.mrb[59].mxu0 }
 0x163   : > { %v1051_v26 = vadd.f32 %v1026_v5, %v924_v59  ;;  %v2071_v17 = vpop.f32.mrb[59].mxu1 }
 0x167   : > { %v1153_v57 = vpop.f32.mrb[60].mxu0 }
 0x168   : > { %v1031_v21 = vpop.f32.mrb[60].mxu1  ;;  %v1180_v35 = vadd.f32 %v1153_v57, %v1050_v56  ;;  %v2094_v6 = vpop.f32.mrb[61].mxu0 }
 0x169   : > { %v1052_v38 = vadd.f32 %v1031_v21, %v925_v54  ;;  %v2074_v37 = vpop.f32.mrb[61].mxu1  ;;  %v1156_v32 = vpop.f32.mrb[62].mxu0 }
 0x16a   : > { %v1034_v44 = vpop.f32.mrb[62].mxu1  ;;  %v2785_v46 = vadd.f32 %v1156_v32, %v1051_v26  ;;  %v2095_v33 = vpop.f32.mrb[63].mxu0 }
 0x16b   : > { %v1053_v48 = vadd.f32 %v1034_v44, %v926_v8  ;;  %v2075_v39 = vpop.f32.mrb[63].mxu1 }
 0x16f   : > { %v1161_v3 = vpop.f32.mrb[64].mxu0 }
 0x170   : > { %v1039_v15 = vpop.f32.mrb[64].mxu1  ;;  %v2787_v43 = vadd.f32 %v1161_v3, %v1052_v38  ;;  %v2098_v45 = vpop.f32.mrb[65].mxu0 }
 0x171   : > { %v1054_v59 = vadd.f32 %v1039_v15, %v927_v28  ;;  %v2078_v36 = vpop.f32.mrb[65].mxu1  ;;  %v1164_v62 = vpop.f32.mrb[66].mxu0 }
 0x172   : > { %v1042_v49 = vpop.f32.mrb[66].mxu1  ;;  %v2789_v50 = vadd.f32 %v1164_v62, %v1053_v48  ;;  %v2099_v54 = vpop.f32.mrb[67].mxu0 }
 0x173   : > { %v1055_v34 = vadd.f32 %v1042_v49, %v928_v60  ;;  %v2079_v63 = vpop.f32.mrb[67].mxu1  ;;  %v2798_v60 = vld [vmem:[%s2912_s2] ss:$0 sm:$0xff] }
 0x177   : > { %v1169_v40 = vpop.f32.mrb[68].mxu0 }
 0x178   : > { %v2791_v11 = vadd.f32 %v1169_v40, %v1054_v59  ;;  %v1286_v24 = vpop.f32.mrb[68].mxu1  ;;  %v2102_v8 = vpop.f32.mrb[69].mxu0 }
 0x179   : > { %v1325_v51 = vadd.f32 %v1286_v24, %v1176_v2  ;;  %v2110_v25 = vpop.f32.mrb[69].mxu1  ;;  %v1172_v58 = vpop.f32.mrb[70].mxu0 }
 0x17a   : > { %v2793_v52 = vadd.f32 %v1172_v58, %v1055_v34  ;;  %v1289_v1 = vpop.f32.mrb[70].mxu1  ;;  %v2103_v28 = vpop.f32.mrb[71].mxu0 }
 0x17b   : > { %v1326_v20 = vadd.f32 %v1289_v1, %v1177_v30  ;;  %v2111_v10 = vpop.f32.mrb[71].mxu1 }
 0x17f   : > { %v1413_v18 = vpop.f32.mrb[72].mxu0 }
 0x180   : > { %v1294_v61 = vpop.f32.mrb[72].mxu1  ;;  %v1452_v53 = vadd.f32 %v1413_v18, %v1325_v51  ;;  %v2134_v41 = vpop.f32.mrb[73].mxu0 }
 0x181   : > { %v1327_v0 = vadd.f32 %v1294_v61, %v1178_v47  ;;  %v2114_v22 = vpop.f32.mrb[73].mxu1  ;;  %v1416_v2 = vpop.f32.mrb[74].mxu0 }
 0x182   : > { %v1469_v9 = vadd.f32 %v2798_v60, %v1452_v53  ;;  %v1297_v19 = vpop.f32.mrb[74].mxu1  ;;  %v1453_v12 = vadd.f32 %v1416_v2, %v1326_v20  ;;  %v2135_v27 = vpop.f32.mrb[75].mxu0 }
 0x183   : > { %v1328_v7 = vadd.f32 %v1297_v19, %v1179_v14  ;;  %v2115_v30 = vpop.f32.mrb[75].mxu1 }
 0x184   : > { %v1489_v42 = vmul.f32 0.2, %v1469_v9  ;;  %v1470_v31 = vadd.f32 %v2798_v60, %v1453_v12  ;;  %vm1479_vm8 = vcmp.ge.f32.partialorder %v1469_v9, 0.0 }
 0x186   : > { %v1490_v16 = vmul.f32 0.2, %v1470_v31  ;;  %v2802_v13 = vsel %vm1479_vm8, %v1469_v9, %v1489_v42  ;;  %vm1480_vm10 = vcmp.ge.f32.partialorder %v1470_v31, 0.0 }
 0x187   : > { %v1421_v23 = vpop.f32.mrb[76].mxu0  ;;  %v1509_v47 = vmul.f32 %v2802_v13, %v2802_v13 }
 0x188   : > { %v1302_v56 = vpop.f32.mrb[76].mxu1  ;;  %v1454_v4 = vadd.f32 %v1421_v23, %v1327_v0  ;;  %v2138_v29 = vpop.f32.mrb[77].mxu0  ;;  %v2806_v5 = vsel %vm1480_vm10, %v1470_v31, %v1490_v16 }
 0x189   : > { %v1329_v14 = vadd.f32 %v1302_v56, %v1180_v35  ;;  %v2118_v55 = vpop.f32.mrb[77].mxu1  ;;  %v1424_v26 = vpop.f32.mrb[78].mxu0  ;;  %v1520_v17 = vsel %vm1519_vm9, %v1509_v47, 0.0  ;;  %v1510_v57 = vmul.f32 %v2806_v5, %v2806_v5 }
 0x18a   : > { %v1471_v21 = vadd.f32 %v2798_v60, %v1454_v4  ;;  %v1305_v6 = vpop.f32.mrb[78].mxu1  ;;  %v1455_v38 = vadd.f32 %v1424_v26, %v1328_v7  ;;  %1521 = vadd.xlane.f32.xlu0 %v1520_v17  ;;  %v2139_v37 = vpop.f32.mrb[79].mxu0 }
 0x18b   : > { %v1330_v32 = vadd.f32 %v1305_v6, %v2785_v46  ;;  %v2119_v44 = vpop.f32.mrb[79].mxu1  ;;  %v1523_v35 = vsel %vm1519_vm9, %v1510_v57, 0.0 }
 0x18c   : > { %v1491_v33 = vmul.f32 0.2, %v1471_v21  ;;  %v1472_v48 = vadd.f32 %v2798_v60, %v1455_v38  ;;  %vm1481_vm11 = vcmp.ge.f32.partialorder %v1471_v21, 0.0 }
 0x18e   : > { %v1492_v39 = vmul.f32 0.2, %v1472_v48  ;;  %1524 = vadd.xlane.f32.xlu0 %v1523_v35  ;;  %v2815_v3 = vsel %vm1481_vm11, %v1471_v21, %v1491_v33  ;;  %vm1482_vm12 = vcmp.ge.f32.partialorder %v1472_v48, 0.0 }
 0x18f   : > { %v1429_v15 = vpop.f32.mrb[80].mxu0  ;;  %v1511_v45 = vmul.f32 %v2815_v3, %v2815_v3 }
 0x190   : > { %v1310_v59 = vpop.f32.mrb[80].mxu1  ;;  %v1456_v36 = vadd.f32 %v1429_v15, %v1329_v14  ;;  %v2142_v62 = vpop.f32.mrb[81].mxu0  ;;  %v2819_v46 = vsel %vm1482_vm12, %v1472_v48, %v1492_v39 }
 0x191   : > { %v1331_v49 = vadd.f32 %v1310_v59, %v2787_v43  ;;  %v2122_v54 = vpop.f32.mrb[81].mxu1  ;;  %v1432_v34 = vpop.f32.mrb[82].mxu0  ;;  %v1526_v63 = vsel %vm1519_vm9, %v1511_v45, 0.0  ;;  %v1512_v40 = vmul.f32 %v2819_v46, %v2819_v46 }
 0x192   : > { %v1473_v24 = vadd.f32 %v2798_v60, %v1456_v36  ;;  %v1313_v8 = vpop.f32.mrb[82].mxu1  ;;  %v1457_v51 = vadd.f32 %v1432_v34, %v1330_v32  ;;  %1527 = vadd.xlane.f32.xlu1 %v1526_v63  ;;  %v2143_v25 = vpop.f32.mrb[83].mxu0 }
 0x193   : > { %v1332_v58 = vadd.f32 %v1313_v8, %v2789_v50  ;;  %v2123_v1 = vpop.f32.mrb[83].mxu1  ;;  %v1529_v43 = vsel %vm1519_vm9, %v1512_v40, 0.0 }
 0x194   : > { %v1493_v28 = vmul.f32 0.2, %v1473_v24  ;;  %v1474_v20 = vadd.f32 %v2798_v60, %v1457_v51  ;;  %vm1483_vm13 = vcmp.ge.f32.partialorder %v1473_v24, 0.0 }
 0x196   : > { %v1494_v10 = vmul.f32 0.2, %v1474_v20  ;;  %1530 = vadd.xlane.f32.xlu1 %v1529_v43  ;;  %v2829_v18 = vsel %vm1483_vm13, %v1473_v24, %v1493_v28  ;;  %vm1484_vm14 = vcmp.ge.f32.partialorder %v1474_v20, 0.0 }
 0x197   : > { %v1437_v61 = vpop.f32.mrb[84].mxu0  ;;  %v1513_v53 = vmul.f32 %v2829_v18, %v2829_v18 }
 0x198   : > { %v1318_v41 = vpop.f32.mrb[84].mxu1  ;;  %v1458_v0 = vadd.f32 %v1437_v61, %v1331_v49  ;;  %v2146_v22 = vpop.f32.mrb[85].mxu0  ;;  %v2833_v50 = vsel %vm1484_vm14, %v1474_v20, %v1494_v10 }
 0x199   : > { %v1333_v2 = vadd.f32 %v1318_v41, %v2791_v11  ;;  %v2126_v9 = vpop.f32.mrb[85].mxu1  ;;  %v1440_v19 = vpop.f32.mrb[86].mxu0  ;;  %v1532_v12 = vsel %vm1519_vm9, %v1513_v53, 0.0  ;;  %v1514_v27 = vmul.f32 %v2833_v50, %v2833_v50 }
 0x19a   : > { %v1475_v7 = vadd.f32 %v2798_v60, %v1458_v0  ;;  %v1321_v30 = vpop.f32.mrb[86].mxu1  ;;  %v1459_v42 = vadd.f32 %v1440_v19, %v1332_v58  ;;  %1533 = vadd.xlane.f32.xlu0 %v1532_v12  ;;  %v2147_v31 = vpop.f32.mrb[87].mxu0 }
 0x19b   : > { %v1334_v16 = vadd.f32 %v1321_v30, %v2793_v52  ;;  %v1535_v23 = vsel %vm1519_vm9, %v1514_v27, 0.0  ;;  %v2127_v47 = vpop.f32.mrb[87].mxu1 }
 0x19c   : > { %v1495_v56 = vmul.f32 0.2, %v1475_v7  ;;  %v1476_v11 = vadd.f32 %v2798_v60, %v1459_v42  ;;  %1536 = vadd.xlane.f32.xlu1 %v1535_v23  ;;  %vm1485_vm15 = vcmp.ge.f32.partialorder %v1475_v7, 0.0 }
 0x19e   : > { %v1496_v4 = vmul.f32 0.2, %v1476_v11  ;;  %v2843_v29 = vsel %vm1485_vm15, %v1475_v7, %v1495_v56  ;;  %vm1486_vm0 = vcmp.ge.f32.partialorder %v1476_v11, 0.0 }
 0x19f   : > { %v1445_v14 = vpop.f32.mrb[88].mxu0  ;;  %v1515_v55 = vmul.f32 %v2843_v29, %v2843_v29 }
 0x1a0   : > { %v1460_v26 = vadd.f32 %v1445_v14, %v1333_v2  ;;  %v2150_v17 = vpop.f32.mrb[89].mxu0  ;;  %v2847_v57 = vsel %vm1486_vm0, %v1476_v11, %v1496_v4 }
 0x1a1   : > { %v1448_v52 = vpop.f32.mrb[90].mxu0  ;;  %v1538_v21 = vsel %vm1519_vm9, %v1515_v55, 0.0  ;;  %v1516_v6 = vmul.f32 %v2847_v57, %v2847_v57 }
 0x1a2   : > { %v1477_v38 = vadd.f32 %v2798_v60, %v1460_v26  ;;  %v1461_v37 = vadd.f32 %v1448_v52, %v1334_v16  ;;  %1539 = vadd.xlane.f32.xlu0 %v1538_v21  ;;  %v2151_v32 = vpop.f32.mrb[91].mxu0 }
 0x1a3   : > { %v1541_v44 = vsel %vm1519_vm9, %v1516_v6, 0.0 }
 0x1a4   : > { %v1497_v33 = vmul.f32 0.2, %v1477_v38  ;;  %v1478_v48 = vadd.f32 %v2798_v60, %v1461_v37  ;;  %1542 = vadd.xlane.f32.xlu1 %v1541_v44  ;;  %vm1487_vm1 = vcmp.ge.f32.partialorder %v1477_v38, 0.0 }
 0x1a6   : > { %v1498_v35 = vmul.f32 0.2, %v1478_v48  ;;  %v2855_v39 = vsel %vm1487_vm1, %v1477_v38, %v1497_v33  ;;  %vm1488_vm2 = vcmp.ge.f32.partialorder %v1478_v48, 0.0 }
 0x1a7   : > { %v1517_v15 = vmul.f32 %v2855_v39, %v2855_v39 }
 0x1a8   : > { %v2859_v45 = vsel %vm1488_vm2, %v1478_v48, %v1498_v35 }
 0x1a9   : > { %v1544_v59 = vsel %vm1519_vm9, %v1517_v15, 0.0  ;;  %v1518_v36 = vmul.f32 %v2859_v45, %v2859_v45 }
 0x1aa   : > { %1545 = vadd.xlane.f32.xlu0 %v1544_v59 }
 0x1ab   : > { %v1547_v60 = vsel %vm1519_vm9, %v1518_v36, 0.0 }
 0x1ac   : > { %1548 = vadd.xlane.f32.xlu1 %v1547_v60 }
 0x217   : > { %v1522_v62 = vpop.xlane.xlu0 %1521 }
 0x218   : > { %v1551_v49 = vmul.f32 0.0625, %v1522_v62 }
 0x21a   : > { %v1561_v54 = vadd.f32 1e-08, %v1551_v49 }
 0x21b   : > { %v1525_v34 = vpop.xlane.xlu0 %1524 }
 0x21c   : > { %2216 = vrsqrt.f32 %v1561_v54  ;;  %v1552_v63 = vmul.f32 0.0625, %v1525_v34 }
 0x21e   : > { %v1562_v40 = vadd.f32 1e-08, %v1552_v63 }
 0x21f   : > { %v1528_v24 = vpop.xlane.xlu1 %1527 }
 0x220   : > { %2218 = vrsqrt.f32 %v1562_v40  ;;  %v1553_v8 = vmul.f32 0.0625, %v1528_v24 }
 0x222   : > { %v1563_v51 = vadd.f32 1e-08, %v1553_v8 }
 0x223   : > { %v1531_v25 = vpop.xlane.xlu1 %1530 }
 0x224   : > { %2220 = vrsqrt.f32 %v1563_v51  ;;  %v1554_v58 = vmul.f32 0.0625, %v1531_v25 }
 0x226   : > { %v2217_v1 = vpop.eup %2216  ;;  %v1564_v28 = vadd.f32 1e-08, %v1554_v58 }
 0x227   : > { %v1581_v20 = vmul.f32 %v2217_v1, %v2802_v13  ;;  %v1534_v43 = vpop.xlane.xlu0 %1533 }
 0x228   : > { %2222 = vrsqrt.f32 %v1564_v28  ;;  %v1555_v10 = vmul.f32 0.0625, %v1534_v43 }
 0x229   : > { %v1863_v61 = vpack.c.bf16 %v1581_v20, %v1581_v20  ;;  %v1537_v53 = vpop.xlane.xlu1 %1536 }
 0x22a   : > { %v2219_v41 = vpop.eup %2218  ;;  %v1565_v0 = vadd.f32 1e-08, %v1555_v10  ;;  %v1556_v22 = vmul.f32 0.0625, %v1537_v53 }
 0x22b   : > { %1632 = vst.msk [vmem:[%s2870_s11] sm:$0xf] %vm1631_vm3, %v1863_v61  ;;  %v1582_v13 = vmul.f32 %v2219_v41, %v2806_v5 }
 0x22c   : > { %2224 = vrsqrt.f32 %v1565_v0  ;;  %v1566_v2 = vadd.f32 1e-08, %v1556_v22 }
 0x22d   : > { %v1864_v9 = vpack.c.bf16 %v1582_v13, %v1582_v13 }
 0x22e   : > { %v2221_v19 = vpop.eup %2220  ;;  %2226 = vrsqrt.f32 %v1566_v2 }
 0x22f   : > { %1633 = vst.msk [vmem:[%s2870_s11 + $0x4] sm:$0xf] %vm1631_vm3, %v1864_v9  ;;  %v1583_v12 = vmul.f32 %v2221_v19, %v2815_v3  ;;  %v1540_v27 = vpop.xlane.xlu0 %1539 }
 0x230   : > { %v1557_v7 = vmul.f32 0.0625, %v1540_v27 }
 0x231   : > { %v1865_v30 = vpack.c.bf16 %v1583_v12, %v1583_v12  ;;  %v1543_v42 = vpop.xlane.xlu1 %1542 }
 0x232   : > { %v2223_v31 = vpop.eup %2222  ;;  %v1567_v16 = vadd.f32 1e-08, %v1557_v7  ;;  %v1558_v23 = vmul.f32 0.0625, %v1543_v42 }
 0x233   : > { %1634 = vst.msk [vmem:[%s2870_s11 + $0x8] sm:$0xf] %vm1631_vm3, %v1865_v30  ;;  %v1584_v5 = vmul.f32 %v2223_v31, %v2819_v46 }
 0x234   : > { %2228 = vrsqrt.f32 %v1567_v16  ;;  %v1568_v47 = vadd.f32 1e-08, %v1558_v23 }
 0x235   : > { %v1866_v56 = vpack.c.bf16 %v1584_v5, %v1584_v5 }
 0x236   : > { %v2225_v11 = vpop.eup %2224  ;;  %2230 = vrsqrt.f32 %v1568_v47 }
 0x237   : > { %1635 = vst.msk [vmem:[%s2870_s11 + $0xc] sm:$0xf] %vm1631_vm3, %v1866_v56  ;;  %v1585_v3 = vmul.f32 %v2225_v11, %v2829_v18  ;;  %v1546_v4 = vpop.xlane.xlu0 %1545 }
 0x238   : > { %v2227_v14 = vpop.eup %2226  ;;  %v1559_v55 = vmul.f32 0.0625, %v1546_v4 }
 0x239   : > { %v1867_v26 = vpack.c.bf16 %v1585_v3, %v1585_v3  ;;  %v1586_v17 = vmul.f32 %v2227_v14, %v2833_v50  ;;  %v1549_v52 = vpop.xlane.xlu1 %1548 }
 0x23a   : > { %v1569_v46 = vadd.f32 1e-08, %v1559_v55  ;;  %v1560_v21 = vmul.f32 0.0625, %v1549_v52 }
 0x23b   : > { %1636 = vst.msk [vmem:[%s2870_s11 + $0x10] sm:$0xf] %vm1631_vm3, %v1867_v26  ;;  %v1868_v6 = vpack.c.bf16 %v1586_v17, %v1586_v17 }
 0x23c   : > { %2232 = vrsqrt.f32 %v1569_v46  ;;  %v1570_v38 = vadd.f32 1e-08, %v1560_v21 }
 0x23d   : > { %1637 = vst.msk [vmem:[%s2870_s11 + $0x14] sm:$0xf] %vm1631_vm3, %v1868_v6 }
 0x23e   : > { %v2229_v18 = vpop.eup %2228  ;;  %2234 = vrsqrt.f32 %v1570_v38 }
 0x23f   : > { %v1587_v37 = vmul.f32 %v2229_v18, %v2843_v29 }
 0x240   : > { %v2231_v32 = vpop.eup %2230 }
 0x241   : > { %v1869_v44 = vpack.c.bf16 %v1587_v37, %v1587_v37  ;;  %v1588_v50 = vmul.f32 %v2231_v32, %v2847_v57 }
 0x243   : > { %1638 = vst.msk [vmem:[%s2870_s11 + $0x18] sm:$0xf] %vm1631_vm3, %v1869_v44  ;;  %v1870_v33 = vpack.c.bf16 %v1588_v50, %v1588_v50 }
 0x245   : > { %1639 = vst.msk [vmem:[%s2870_s11 + $0x1c] sm:$0xf] %vm1631_vm3, %v1870_v33 }
 0x246   : > { %v2233_v48 = vpop.eup %2232 }
 0x247   : > { %v1589_v35 = vmul.f32 %v2233_v48, %v2855_v39 }
 0x248   : > { %v2235_v15 = vpop.eup %2234 }
 0x249   : > { %v1871_v59 = vpack.c.bf16 %v1589_v35, %v1589_v35  ;;  %v1590_v36 = vmul.f32 %v2235_v15, %v2859_v45 }
 0x24b   : > { %1640 = vst.msk [vmem:[%s2870_s11 + $0x20] sm:$0xf] %vm1631_vm3, %v1871_v59  ;;  %v1872_v60 = vpack.c.bf16 %v1590_v36, %v1590_v36 }
 0x24d   : > { %1641 = vst.msk [vmem:[%s2870_s11 + $0x24] sm:$0xf] %vm1631_vm3, %v1872_v60 }
 0x24e PF: > { %s13_s14 = sadd.s32 1, %s2258_s14   ;;  %s2914_s12 = smov %s2254_s13 }
 0x24f   : > { %p10_p5 = scmp.ge.s32.totalorder %s13_s14, 4   ;;  %s2915_s13 = smov %s2917_s15 }
 0x251   :  { %12 = sbr.rel (!%p10_p5) target bundleno = 2 (0x2), region = 70 }

// kernel: progan_generator_forward.7
= control target key start
LH: loop header
LB: loop body
LE: loop exit
PB: predicated region body
PF: predicated region fallthrough
CT: control target
= control target key end

     0   :  { %s2291_s18 = smov 0   ;;  %s2293_s19 = smov 0   ;;  %s2848_s0 = inlined_call_operand.vmem [shape: bf16[2,1,102,16], index: 0, kind: input, shape index: {}]   ;;  %s2849_s1 = inlined_call_operand.vmem [shape: bf16[9,16,16], index: 1, kind: input, shape index: {}]   ;;  %s2850_s2 = inlined_call_operand.vmem [shape: f32[1,16], index: 2, kind: input, shape index: {}]   ;;  %s2851_s3 = inlined_call_operand.vmem [shape: bf16[16,128], index: 3, kind: input, shape index: {}]   ;;  %s2852_s4 = inlined_call_operand.vmem [shape: f32[1,128], index: 4, kind: input, shape index: {}]   ;;  %s2853_s5 = inlined_call_operand.vmem [shape: f32[2,1,80,128], index: 5, kind: output, shape index: {}]  }
   0x1   :  { %s2295_s20 = smov 0  }
   0x2 LB: > { %s27_s21 = sadd.s32 1, %s2253_s19  ;;  %p1786_p0 = scmp.ge.s32.totalorder %s2257_s20, 1  ;;  %s2257_s20 = sphi %s2295_s20, %s15_s20   ;;  %s2253_s19 = sphi %s2293_s19, %s2855_s19   ;;  %s2249_s18 = sphi %s2291_s18, %s2854_s18  }
   0x3   : > { %p29_p1 = scmp.ge.s32.totalorder %s27_s21, 2  ;;  %p207_p2 = scmp.lt.s32.totalorder %s2257_s20, 3 }
   0x5   : > { %s2857_s21 = smov (%p29_p1, %s27_s21), 0  ;;  %p208_p3 = pnand %p1786_p0, %p207_p2 }
   0x6   : > { %v2191_v0 = vld [vmem:[%s2849_s1 + $0x8] sm:$0xff] (!%p208_p3)   ;;  %v2259_v1 = vmov (!%p208_p3), 0.0   ;;  %v2192_v2 = vld [vmem:[%s2849_s1] sm:$0xff] (!%p208_p3)   ;;  %vm2260_vm0 = vmmov (!%p208_p3), 0   ;;  %p243_p4 = scmp.lt.s32.totalorder (!%p208_p3), %s2249_s18, 1  ;;  %vm359_vm1 = vcmask (!%p208_p3), 130048  }
   0x7   : > { %211 = sbr.rel (%p208_p3) target bundleno = 824 (0x338), region = 40  ;;  %1943 = vmatprep.subr.bf16.mxu0 (!%p208_p3), %v2259_v1  ;;  %1965 = vmatprep.subr.bf16.mxu1 (!%p208_p3), %v2259_v1  ;;  %v2203_v3 = vld [vmem:[%s2849_s1 + $0x18] sm:$0xff] (!%p208_p3)   ;;  %vm308_vm2 = vsmask.f32 (!%p208_p3), 7424  ;;  %v2196_v18 = vld [vmem:[%s2849_s1 + $0x10] sm:$0xff] (!%p208_p3)   ;;  %vm946_vm3 = vcmask (!%p208_p3), 1045504  }
   0x8   : > { %1944 = vmatpush3.bf16.msra.mxu0 (!%p208_p3), %v2191_v0  ;;  %1945 = vmatprep.mubr.msk.bf16.mxu0 (!%p208_p3), %vm2260_vm0, %v2259_v1  ;;  %vm1187_vm4 = vsmask.f32 (!%p208_p3), 5376  ;;  %vm1328_vm5 = vcmask (!%p208_p3), 1044480   ;;  %vm540_vm6 = vcmask (!%p208_p3), 1046528   ;;  %vm785_vm7 = vsmask.f32 (!%p208_p3), 6400 }
   0x9   : > { %1966 = vmatpush3.bf16.msra.mxu1 (!%p208_p3), %v2192_v2  ;;  %1967 = vmatprep.mubr.msk.bf16.mxu1 (!%p208_p3), %vm2260_vm0, %v2259_v1 }
   0xa   : > { %1987 = vmatprep.subr.bf16.mxu0 (!%p208_p3), %v2259_v1  ;;  %2009 = vmatprep.subr.bf16.mxu1 (!%p208_p3), %v2259_v1 }
   0xe   : > { %s2859_s18 = smov (!%p243_p4, %s2249_s18), 1 }
   0xf   : > { %s2163_s26 = smul.u32 52, %s2859_s18 }
  0x10   : > { %s2164_s27 = smul.u32 80, %s2859_s18 }
  0x11   : > { %s2329_s29 = scalar_lea.vmem %s2848_s0, %s2163_s26 }
  0x12   : > { %v262_v4 = vld [vmem:[%s2329_s29] sm:$0xf]  ;;  %v263_v5 = vld [vmem:[%s2329_s29 + $0x4] sm:$0xf]  ;;  %v264_v6 = vld [vmem:[%s2329_s29 + $0x8] sm:$0xf]  ;;  %s2827_s7 = scalar_lea.vmem %s2853_s5, %s2164_s27 }
  0x13   : > { %v2338_v7 = vld [vmem:[%s2329_s29 + $0xc] sm:$0xf]  ;;  %v2340_v8 = vcombine.low %v262_v4, %v263_v5  ;;  %v266_v9 = vld [vmem:[%s2329_s29 + $0x10] sm:$0xf]  ;;  %v2344_v10 = vld [vmem:[%s2329_s29 + $0x14] sm:$0xf]  ;;  %v2421_v43 = vcombine.low %v263_v5, %v264_v6 }
  0x14   : > { %v2347_v11 = vcombine.low %v264_v6, %v2338_v7  ;;  %v2354_v14 = vcombine.low %v266_v9, %v2344_v10  ;;  %v2366_v22 = vld [vmem:[%s2329_s29 + $0x18] sm:$0xf]  ;;  %v2369_v23 = vld [vmem:[%s2329_s29 + $0x1c] sm:$0xf]  ;;  %v2374_v25 = vld [vmem:[%s2329_s29 + $0x28] sm:$0xf]  ;;  %v2431_v52 = vcombine.low %v2338_v7, %v266_v9 }
  0x15   : > { %v310_v12 = vshrl.u32 %v2340_v8, 16  ;;  %v312_v13 = vshll.u32 %v2340_v8, 16  ;;  %1968 = vmatmul.mubr.msk.bf16.vlgmr.msra.gmra.mrb[0].mxu1 %vm359_vm1, %v2340_v8  ;;  %v2377_v26 = vld [vmem:[%s2329_s29 + $0x2c] sm:$0xf]  ;;  %v2383_v29 = vcombine.low %v2366_v22, %v2369_v23  ;;  %v2395_v31 = vld [vmem:[%s2329_s29 + $0x20] sm:$0xf]  ;;  %v2418_v41 = vcombine.low %v2374_v25, %v2374_v25 }
  0x16   : > { %v317_v15 = vshll.u32 %v2347_v11, 16  ;;  %1971 = vmatprep.mubr.msk.bf16.mxu1 %vm2260_vm0, %v2259_v1  ;;  %2010 = vmatpush3.bf16.msra.mxu1 %v2203_v3  ;;  %v321_v20 = vshrl.u32 %v2347_v11, 16  ;;  %v325_v21 = vshll.u32 %v2354_v14, 16  ;;  %v2387_v30 = vcombine.low %v2374_v25, %v2377_v26  ;;  %v2398_v32 = vld [vmem:[%s2329_s29 + $0x24] sm:$0xf] }
  0x17   : > { %v314_v16 = vrot.slane %v312_v13, 1  ;;  %2053 = vmatprep.subr.bf16.mxu1 %v2259_v1  ;;  %v329_v34 = vshrl.u32 %v2354_v14, 16  ;;  %v333_v35 = vshll.u32 %v2383_v29, 16  ;;  %v2405_v36 = vcombine.low %v2395_v31, %v2398_v32  ;;  %v2441_v62 = vld [vmem:[%s2329_s29 + $0x30] ss:$0 sps:$4 sm:$0x77]  }
  0x18   : > { %v319_v17 = vrot.slane %v317_v15, 1  ;;  %v327_v28 = vrot.slane %v325_v21, 1  ;;  %v337_v39 = vshrl.u32 %v2383_v29, 16  ;;  %v1189_v44 = vrot.slane %v317_v15, 3 }
  0x19   : > { %v315_v19 = vor.u32 %v314_v16, %v310_v12  ;;  %v335_v38 = vrot.slane %v333_v35, 1  ;;  %v341_v40 = vshll.u32 %v2405_v36, 16  ;;  %v1188_v45 = vrot.slane %v321_v20, 2 }
  0x1a   : > { %v323_v27 = vor.u32 %v321_v20, %v319_v17  ;;  %v331_v37 = vor.u32 %v329_v34, %v327_v28  ;;  %v1192_v48 = vrot.slane %v325_v21, 3  ;;  %v1191_v49 = vrot.slane %v329_v34, 2 }
  0x1b   : > { %v320_v24 = vsel %vm308_vm2, %v315_v19, %v319_v17  ;;  %v339_v46 = vor.u32 %v337_v39, %v335_v38  ;;  %v343_v47 = vrot.slane %v341_v40, 1  ;;  %v345_v50 = vshrl.u32 %v2405_v36, 16 }
  0x1c   : > { %1946 = vmatmul.mubr.msk.bf16.vlgmr.msra.gmra.mrb[0].mxu0 %vm359_vm1, %v320_v24  ;;  %v328_v33 = vsel %vm308_vm2, %v323_v27, %v327_v28  ;;  %v336_v42 = vsel %vm308_vm2, %v331_v37, %v335_v38  ;;  %v349_v51 = vshll.u32 %v2418_v41, 16  ;;  %v667_v53 = vrot.slane %v2421_v43, 1 }
  0x1d   : > { %1988 = vmatpush3.bf16.msra.mxu0 %v2196_v18  ;;  %1949 = vmatprep.mubr.msk.bf16.mxu0 %vm2260_vm0, %v2259_v1  ;;  %v1069_v54 = vrot.slane %v2347_v11, 2  ;;  %v344_v55 = vsel %vm308_vm2, %v339_v46, %v343_v47  ;;  %v1070_v56 = vrot.slane %v2354_v14, 2  ;;  %v1190_v57 = vor.u32 %v1189_v44, %v1188_v45 }
  0x1e   : > { %1972 = vmatmul.mubr.msk.bf16.gmra.mrb[4].mxu1 %vm359_vm1, %v2347_v11  ;;  %2031 = vmatprep.subr.bf16.mxu0 %v2259_v1  ;;  %v347_v58 = vor.u32 %v345_v50, %v343_v47  ;;  %v351_v59 = vrot.slane %v349_v51, 1  ;;  %v1193_v60 = vor.u32 %v1192_v48, %v1191_v49  ;;  %v1072_v61 = vrot.slane %v2383_v29, 2 }
  0x1f   : > { %1975 = vmatprep.mubr.msk.bf16.mxu1 %vm2260_vm0, %v2259_v1  ;;  %v2444_v63 = vsel %vm946_vm3, %v1069_v54, %v1070_v56  ;;  %v1195_v0 = vrot.slane %v337_v39, 2  ;;  %v1196_v2 = vrot.slane %v333_v35, 3  ;;  %v1074_v3 = vrot.slane %v2405_v36, 2 }
  0x20   : > { %v668_v4 = vrot.slane %v2431_v52, 1  ;;  %v2449_v5 = vsel %vm1187_vm4, %v1190_v57, %v1193_v60  ;;  %v2452_v6 = vsel %vm946_vm3, %v1070_v56, %v1072_v61  ;;  %v1199_v7 = vrot.slane %v345_v50, 2  ;;  %v2209_v50 = vld [vmem:[%s2849_s1 + $0x28] sm:$0xff]  }
  0x21   : > { %v1197_v9 = vor.u32 %v1196_v2, %v1195_v0  ;;  %v2455_v12 = vsel %vm946_vm3, %v1072_v61, %v1074_v3  ;;  %v1200_v13 = vrot.slane %v341_v40, 3  ;;  %v1076_v15 = vrot.slane %v2387_v30, 2 }
  0x22   : > { %v1204_v16 = vshrl.u32 %v2387_v30, 16  ;;  %v1207_v17 = vshll.u32 %v2387_v30, 16  ;;  %v1078_v18 = vrot.slane %v2441_v62, 2  ;;  %v1213_v19 = vshrl.u32 %v2441_v62, 16 }
  0x23   : > { %v2466_v20 = vsel %vm1187_vm4, %v1193_v60, %v1197_v9  ;;  %v1201_v21 = vor.u32 %v1200_v13, %v1199_v7  ;;  %v2469_v24 = vsel %vm946_vm3, %v1074_v3, %v1076_v15  ;;  %v1216_v27 = vshll.u32 %v2441_v62, 16 }
  0x24   : > { %1950 = vmatmul.mubr.msk.bf16.gmra.mrb[4].mxu0 %vm359_vm1, %v328_v33  ;;  %v1206_v28 = vrot.slane %v1204_v16, 2  ;;  %v1209_v33 = vrot.slane %v1207_v17, 3  ;;  %v2475_v34 = vsel %vm946_vm3, %v1076_v15, %v1078_v18  ;;  %v1215_v35 = vrot.slane %v1213_v19, 2 }
  0x25   : > { %1953 = vmatprep.mubr.msk.bf16.mxu0 %vm2260_vm0, %v2259_v1  ;;  %v2480_v37 = vsel %vm1187_vm4, %v1197_v9, %v1201_v21  ;;  %v1218_v38 = vrot.slane %v1216_v27, 3  ;;  %v1329_v39 = vrot.slane %v2347_v11, 3  ;;  %v352_v44 = vsel %vm308_vm2, %v347_v58, %v351_v59 }
  0x26   : > { %1976 = vmatmul.mubr.msk.bf16.gmra.mrb[8].mxu1 %vm359_vm1, %v2354_v14  ;;  %v1210_v40 = vor.u32 %v1209_v33, %v1206_v28  ;;  %v669_v48 = vsel %vm540_vm6, %v667_v53, %v668_v4  ;;  %v2494_v49 = vcombine.low %v2344_v10, %v2366_v22  ;;  %v541_v54 = vrot.slane %v2340_v8, 1  ;;  %v2204_v8 = vld [vmem:[%s2849_s1 + $0x20] sm:$0xff]  }
  0x27   : > { %1979 = vmatprep.mubr.msk.bf16.mxu1 %vm2260_vm0, %v2259_v1  ;;  %v1219_v45 = vor.u32 %v1218_v38, %v1215_v35  ;;  %v542_v53 = vrot.slane %v2347_v11, 1  ;;  %v2523_v57 = vcombine.low %v2369_v23, %v2395_v31  ;;  %v544_v58 = vrot.slane %v2354_v14, 1 }
  0x28   : > { %v2486_v46 = vsel %vm1187_vm4, %v1201_v21, %v1210_v40  ;;  %v670_v10 = vrot.slane %v2494_v49, 1  ;;  %v1334_v59 = vrot.slane %v2405_v36, 3  ;;  %v2541_v61 = vcombine.low %v2398_v32, %v2374_v25 }
  0x29   : > { %v2500_v51 = vsel %vm1187_vm4, %v1210_v40, %v1219_v45  ;;  %v543_v56 = vsel %vm540_vm6, %v541_v54, %v542_v53  ;;  %v672_v23 = vrot.slane %v2523_v57, 1  ;;  %v545_v60 = vsel %vm540_vm6, %v542_v53, %v544_v58 }
  0x2a   : > { %v671_v11 = vsel %vm540_vm6, %v668_v4, %v670_v10  ;;  %v546_v0 = vrot.slane %v2383_v29, 1  ;;  %v1336_v2 = vrot.slane %v2387_v30, 3  ;;  %v674_v3 = vrot.slane %v2541_v61, 1 }
  0x2b   : > { %v2560_v7 = vcombine.low %v2377_v26, %v2377_v26  ;;  %v1338_v30 = vrot.slane %v2441_v62, 3  ;;  %v787_v62 = vshrl.u32 %v2421_v43, 16  ;;  %v790_v16 = vshll.u32 %v2421_v43, 16 }
  0x2c   : > { %1954 = vmatmul.mubr.msk.bf16.gmra.mrb[8].mxu0 %vm359_vm1, %v336_v42  ;;  %v1330_v42 = vrot.slane %v2354_v14, 3  ;;  %v673_v14 = vsel %vm540_vm6, %v670_v10, %v672_v23  ;;  %v2554_v25 = vsel %vm1328_vm5, %v1334_v59, %v1336_v2  ;;  %v547_v32 = vsel %vm540_vm6, %v544_v58, %v546_v0 }
  0x2d   : > { %1957 = vmatprep.mubr.msk.bf16.mxu0 %vm2260_vm0, %v2259_v1  ;;  %v675_v4 = vsel %vm540_vm6, %v672_v23, %v674_v3  ;;  %v676_v9 = vrot.slane %v2560_v7, 1  ;;  %v2572_v13 = vsel %vm1328_vm5, %v1336_v2, %v1338_v30  ;;  %v795_v17 = vshrl.u32 %v2431_v52, 16 }
  0x2e   : > { %1980 = vmatmul.mubr.msk.bf16.gmra.mrb[12].mxu1 %vm359_vm1, %v2383_v29  ;;  %v2489_v47 = vsel %vm1328_vm5, %v1329_v39, %v1330_v42  ;;  %v798_v18 = vshll.u32 %v2431_v52, 16  ;;  %v947_v19 = vrot.slane %v2421_v43, 2  ;;  %v789_v27 = vrot.slane %v787_v62, 1  ;;  %v2211_v39 = vld [vmem:[%s2849_s1 + $0x38] sm:$0xff]  }
  0x2f   : > { %1983 = vmatprep.mubr.msk.bf16.mxu1 %vm2260_vm0, %v2259_v1  ;;  %v677_v15 = vsel %vm540_vm6, %v674_v3, %v676_v9  ;;  %v792_v28 = vrot.slane %v790_v16, 2  ;;  %v797_v33 = vrot.slane %v795_v17, 1  ;;  %v816_v10 = vshll.u32 %v2523_v57, 16 }
  0x30   : > { %v800_v35 = vrot.slane %v798_v18, 2  ;;  %v834_v30 = vshll.u32 %v2560_v7, 16 }
  0x31   : > { %v793_v43 = vor.u32 %v792_v28, %v789_v27  ;;  %v818_v58 = vrot.slane %v816_v10, 2 }
  0x32   : > { %v801_v40 = vor.u32 %v800_v35, %v797_v33 }
  0x34   : > { %1958 = vmatmul.mubr.msk.bf16.gmra.mrb[12].mxu0 %vm359_vm1, %v344_v55  ;;  %v1332_v55 = vrot.slane %v2383_v29, 3  ;;  %v548_v29 = vrot.slane %v2405_v36, 1  ;;  %v802_v45 = vsel %vm785_vm7, %v793_v43, %v801_v40 }
  0x35   : > { %1961 = vmatprep.mubr.msk.bf16.mxu0 %vm2260_vm0, %v2259_v1 }
  0x36   : > { %1984 = vmatmul.mubr.msk.bf16.gmra.mrb[16].mxu1 %vm359_vm1, %v2405_v36  ;;  %v2513_v22 = vsel %vm1328_vm5, %v1330_v42, %v1332_v55  ;;  %v2536_v31 = vsel %vm1328_vm5, %v1332_v55, %v1334_v59  ;;  %v549_v26 = vsel %vm540_vm6, %v546_v0, %v548_v29  ;;  %v550_v36 = vrot.slane %v2418_v41, 1 }
  0x37   : > { %2011 = vmatprep.mubr.msk.bf16.mxu1 %vm2260_vm0, %v2259_v1  ;;  %v948_v41 = vrot.slane %v2431_v52, 2  ;;  %v804_v52 = vshrl.u32 %v2494_v49, 16  ;;  %v807_v42 = vshll.u32 %v2494_v49, 16  ;;  %v813_v55 = vshrl.u32 %v2523_v57, 16 }
  0x38   : > { %v551_v21 = vsel %vm540_vm6, %v548_v29, %v550_v36  ;;  %v831_v29 = vshrl.u32 %v2560_v7, 16 }
  0x39   : > { %v949_v38 = vsel %vm946_vm3, %v947_v19, %v948_v41  ;;  %v809_v54 = vrot.slane %v807_v42, 2 }
  0x3c   : > { %1962 = vmatmul.mubr.msk.bf16.gmra.mrb[16].mxu0 %vm359_vm1, %v352_v44  ;;  %v950_v44 = vrot.slane %v2494_v49, 2 }
  0x3d   : > { %1989 = vmatprep.mubr.msk.bf16.mxu0 %vm2260_vm0, %v2259_v1 }
  0x3e   : > { %2012 = vmatmul.mubr.msk.bf16.vlgmr.msra.gmra.mrb[20].mxu1 %vm359_vm1, %v669_v48  ;;  %v2210_v48 = vld [vmem:[%s2849_s1 + $0x30] sm:$0xff]   ;;  %v951_v53 = vsel %vm946_vm3, %v948_v41, %v950_v44 }
  0x3f   : > { %2015 = vmatprep.mubr.msk.bf16.mxu1 %vm2260_vm0, %v2259_v1  ;;  %2054 = vmatpush3.bf16.msra.mxu1 %v2209_v50  ;;  %v806_v50 = vrot.slane %v804_v52, 1 }
  0x40   : > { %2097 = vmatprep.subr.bf16.mxu1 %v2259_v1 }
  0x41   : > { %v810_v49 = vor.u32 %v809_v54, %v806_v50 }
  0x44   : > { %1990 = vmatmul.mubr.msk.bf16.vlgmr.msra.gmra.mrb[20].mxu0 %vm359_vm1, %v543_v56  ;;  %v952_v56 = vrot.slane %v2523_v57, 2  ;;  %v954_v57 = vrot.slane %v2541_v61, 2 }
  0x45   : > { %2032 = vmatpush3.bf16.msra.mxu0 %v2204_v8  ;;  %1993 = vmatprep.mubr.msk.bf16.mxu0 %vm2260_vm0, %v2259_v1  ;;  %v811_v8 = vsel %vm785_vm7, %v801_v40, %v810_v49 }
  0x46   : > { %2016 = vmatmul.mubr.msk.bf16.gmra.mrb[24].mxu1 %vm359_vm1, %v671_v11  ;;  %2075 = vmatprep.subr.bf16.mxu0 %v2259_v1  ;;  %v815_v11 = vrot.slane %v813_v55, 1  ;;  %v953_v59 = vsel %vm946_vm3, %v950_v44, %v952_v56 }
  0x47   : > { %2019 = vmatprep.mubr.msk.bf16.mxu1 %vm2260_vm0, %v2259_v1 }
  0x48   : > { %v819_v23 = vor.u32 %v818_v58, %v815_v11 }
  0x4a   : > { %v820_v0 = vsel %vm785_vm7, %v810_v49, %v819_v23 }
  0x4c   : > { %1994 = vmatmul.mubr.msk.bf16.gmra.mrb[24].mxu0 %vm359_vm1, %v545_v60  ;;  %v822_v60 = vshrl.u32 %v2541_v61, 16 }
  0x4d   : > { %1997 = vmatprep.mubr.msk.bf16.mxu0 %vm2260_vm0, %v2259_v1 }
  0x4e   : > { %2020 = vmatmul.mubr.msk.bf16.gmra.mrb[28].mxu1 %vm359_vm1, %v673_v14  ;;  %v825_v14 = vshll.u32 %v2541_v61, 16  ;;  %v824_v2 = vrot.slane %v822_v60, 1  ;;  %v956_v61 = vrot.slane %v2560_v7, 2  ;;  %v2212_v7 = vld [vmem:[%s2849_s1 + $0x40] sm:$0xff]  }
  0x4f   : > { %2023 = vmatprep.mubr.msk.bf16.mxu1 %vm2260_vm0, %v2259_v1 }
  0x50   : > { %v827_v3 = vrot.slane %v825_v14, 2  ;;  %v957_v36 = vsel %vm946_vm3, %v954_v57, %v956_v61 }
  0x54   : > { %1998 = vmatmul.mubr.msk.bf16.gmra.mrb[28].mxu0 %vm359_vm1, %v547_v32  ;;  %v955_v32 = vsel %vm946_vm3, %v952_v56, %v954_v57 }
  0x55   : > { %2001 = vmatprep.mubr.msk.bf16.mxu0 %vm2260_vm0, %v2259_v1 }
  0x56   : > { %2024 = vmatmul.mubr.msk.bf16.gmra.mrb[32].mxu1 %vm359_vm1, %v675_v4  ;;  %v828_v4 = vor.u32 %v827_v3, %v824_v2 }
  0x57   : > { %2027 = vmatprep.mubr.msk.bf16.mxu1 %vm2260_vm0, %v2259_v1 }
  0x58   : > { %v829_v9 = vsel %vm785_vm7, %v819_v23, %v828_v4 }
  0x5c   : > { %2002 = vmatmul.mubr.msk.bf16.gmra.mrb[32].mxu0 %vm359_vm1, %v549_v26  ;;  %v833_v26 = vrot.slane %v831_v29, 1 }
  0x5d   : > { %2005 = vmatprep.mubr.msk.bf16.mxu0 %vm2260_vm0, %v2259_v1 }
  0x5e   : > { %2028 = vmatmul.mubr.msk.bf16.gmra.mrb[36].mxu1 %vm359_vm1, %v677_v15  ;;  %v836_v15 = vrot.slane %v834_v30, 2 }
  0x5f   : > { %2055 = vmatprep.mubr.msk.bf16.mxu1 %vm2260_vm0, %v2259_v1 }
  0x60   : > { %v837_v62 = vor.u32 %v836_v15, %v833_v26 }
  0x62   : > { %v838_v16 = vsel %vm785_vm7, %v828_v4, %v837_v62 }
  0x64   : > { %2006 = vmatmul.mubr.msk.bf16.gmra.mrb[36].mxu0 %vm359_vm1, %v551_v21 }
  0x65   : > { %2033 = vmatprep.mubr.msk.bf16.mxu0 %vm2260_vm0, %v2259_v1 }
  0x66   : > { %2056 = vmatmul.mubr.msk.bf16.vlgmr.msra.gmra.mrb[40].mxu1 %vm359_vm1, %v949_v38 }
  0x67   : > { %2059 = vmatprep.mubr.msk.bf16.mxu1 %vm2260_vm0, %v2259_v1  ;;  %2098 = vmatpush3.bf16.msra.mxu1 %v2211_v39 }
  0x68   : > { %2141 = vmatprep.subr.bf16.mxu1 %v2259_v1 }
  0x6c   : > { %2034 = vmatmul.mubr.msk.bf16.vlgmr.msra.gmra.mrb[40].mxu0 %vm359_vm1, %v802_v45 }
  0x6d   : > { %2076 = vmatpush3.bf16.msra.mxu0 %v2210_v48  ;;  %2037 = vmatprep.mubr.msk.bf16.mxu0 %vm2260_vm0, %v2259_v1 }
  0x6e   : > { %2060 = vmatmul.mubr.msk.bf16.gmra.mrb[44].mxu1 %vm359_vm1, %v951_v53  ;;  %2119 = vmatprep.subr.bf16.mxu0 %v2259_v1 }
  0x6f   : > { %2063 = vmatprep.mubr.msk.bf16.mxu1 %vm2260_vm0, %v2259_v1 }
  0x74   : > { %2038 = vmatmul.mubr.msk.bf16.gmra.mrb[44].mxu0 %vm359_vm1, %v811_v8 }
  0x75   : > { %2041 = vmatprep.mubr.msk.bf16.mxu0 %vm2260_vm0, %v2259_v1 }
  0x76   : > { %2064 = vmatmul.mubr.msk.bf16.gmra.mrb[48].mxu1 %vm359_vm1, %v953_v59 }
  0x77   : > { %2067 = vmatprep.mubr.msk.bf16.mxu1 %vm2260_vm0, %v2259_v1 }
  0x7c   : > { %2042 = vmatmul.mubr.msk.bf16.gmra.mrb[48].mxu0 %vm359_vm1, %v820_v0 }
  0x7d   : > { %2045 = vmatprep.mubr.msk.bf16.mxu0 %vm2260_vm0, %v2259_v1 }
  0x7e   : > { %2068 = vmatmul.mubr.msk.bf16.gmra.mrb[52].mxu1 %vm359_vm1, %v955_v32 }
  0x7f   : > { %2071 = vmatprep.mubr.msk.bf16.mxu1 %vm2260_vm0, %v2259_v1 }
  0x84   : > { %2046 = vmatmul.mubr.msk.bf16.gmra.mrb[52].mxu0 %vm359_vm1, %v829_v9 }
  0x85   : > { %2049 = vmatprep.mubr.msk.bf16.mxu0 %vm2260_vm0, %v2259_v1 }
  0x86   : > { %2072 = vmatmul.mubr.msk.bf16.gmra.mrb[56].mxu1 %vm359_vm1, %v957_v36 }
  0x87   : > { %2099 = vmatprep.mubr.msk.bf16.mxu1 %vm2260_vm0, %v2259_v1 }
  0x8c   : > { %2050 = vmatmul.mubr.msk.bf16.gmra.mrb[56].mxu0 %vm359_vm1, %v838_v16 }
  0x8d   : > { %2077 = vmatprep.mubr.msk.bf16.mxu0 %vm2260_vm0, %v2259_v1 }
  0x8e   : > { %2100 = vmatmul.mubr.msk.bf16.vlgmr.msra.gmra.mrb[60].mxu1 %vm359_vm1, %v2449_v5 }
  0x8f   : > { %2103 = vmatprep.mubr.msk.bf16.mxu1 %vm2260_vm0, %v2259_v1 }
  0x94   : > { %2078 = vmatmul.mubr.msk.bf16.vlgmr.msra.gmra.mrb[60].mxu0 %vm359_vm1, %v2444_v63 }
  0x95   : > { %2120 = vmatpush3.bf16.msra.mxu0 %v2212_v7  ;;  %2081 = vmatprep.mubr.msk.bf16.mxu0 %vm2260_vm0, %v2259_v1 }
  0x96   : > { %2104 = vmatmul.mubr.msk.bf16.gmra.mrb[64].mxu1 %vm359_vm1, %v2466_v20 }
  0x97   : > { %2107 = vmatprep.mubr.msk.bf16.mxu1 %vm2260_vm0, %v2259_v1 }
  0x9c   : > { %2082 = vmatmul.mubr.msk.bf16.gmra.mrb[64].mxu0 %vm359_vm1, %v2452_v6 }
  0x9d   : > { %2085 = vmatprep.mubr.msk.bf16.mxu0 %vm2260_vm0, %v2259_v1 }
  0x9e   : > { %2108 = vmatmul.mubr.msk.bf16.gmra.mrb[68].mxu1 %vm359_vm1, %v2480_v37 }
  0x9f   : > { %2111 = vmatprep.mubr.msk.bf16.mxu1 %vm2260_vm0, %v2259_v1 }
  0xa4   : > { %2086 = vmatmul.mubr.msk.bf16.gmra.mrb[68].mxu0 %vm359_vm1, %v2455_v12 }
  0xa5   : > { %2089 = vmatprep.mubr.msk.bf16.mxu0 %vm2260_vm0, %v2259_v1 }
  0xa6   : > { %2112 = vmatmul.mubr.msk.bf16.gmra.mrb[72].mxu1 %vm359_vm1, %v2486_v46 }
  0xa7   : > { %2115 = vmatprep.mubr.msk.bf16.mxu1 %vm2260_vm0, %v2259_v1 }
  0xac   : > { %2090 = vmatmul.mubr.msk.bf16.gmra.mrb[72].mxu0 %vm359_vm1, %v2469_v24 }
  0xad   : > { %2093 = vmatprep.mubr.msk.bf16.mxu0 %vm2260_vm0, %v2259_v1 }
  0xae   : > { %2116 = vmatmul.mubr.msk.bf16.gmra.mrb[76].mxu1 %vm359_vm1, %v2500_v51 }
  0xaf   : > { %2143 = vmatprep.mubr.msk.bf16.mxu1 %vm2260_vm0, %v2259_v1 }
  0xb4   : > { %2094 = vmatmul.mubr.msk.bf16.gmra.mrb[76].mxu0 %vm359_vm1, %v2475_v34 }
  0xb5   : > { %2121 = vmatprep.mubr.msk.bf16.mxu0 %vm2260_vm0, %v2259_v1 }
  0xbc   : > { %2122 = vmatmul.mubr.msk.bf16.vlgmr.msra.gmra.mrb[80].mxu0 %vm359_vm1, %v2489_v47 }
  0xbd   : > { %2125 = vmatprep.mubr.msk.bf16.mxu0 %vm2260_vm0, %v2259_v1 }
  0xc4   : > { %2126 = vmatmul.mubr.msk.bf16.gmra.mrb[84].mxu0 %vm359_vm1, %v2513_v22 }
  0xc5   : > { %2129 = vmatprep.mubr.msk.bf16.mxu0 %vm2260_vm0, %v2259_v1 }
  0xcc   : > { %2130 = vmatmul.mubr.msk.bf16.gmra.mrb[88].mxu0 %vm359_vm1, %v2536_v31 }
  0xcd   : > { %2133 = vmatprep.mubr.msk.bf16.mxu0 %vm2260_vm0, %v2259_v1 }
  0xd4   : > { %2134 = vmatmul.mubr.msk.bf16.gmra.mrb[92].mxu0 %vm359_vm1, %v2554_v25 }
  0xd5   : > { %2137 = vmatprep.mubr.msk.bf16.mxu0 %vm2260_vm0, %v2259_v1 }
  0xdc   : > { %2138 = vmatmul.mubr.msk.bf16.gmra.mrb[96].mxu0 %vm359_vm1, %v2572_v13 }
  0xe8   : > { %v498_v63 = vpop.f32.mrb[0].mxu1 }
  0xe9   : > { %v1969_v5 = vpop.f32.mrb[1].mxu1 }
  0xea   : > { %v501_v6 = vpop.f32.mrb[2].mxu1 }
  0xeb   : > { %v1970_v12 = vpop.f32.mrb[3].mxu1 }
  0xef   : > { %v409_v20 = vpop.f32.mrb[0].mxu0 }
  0xf0   : > { %v499_v24 = vadd.f32 %v498_v63, %v409_v20  ;;  %v1947_v34 = vpop.f32.mrb[1].mxu0 }
  0xf1   : > { %v412_v37 = vpop.f32.mrb[2].mxu0  ;;  %v506_v46 = vpop.f32.mrb[4].mxu1 }
  0xf2   : > { %v502_v47 = vadd.f32 %v501_v6, %v412_v37  ;;  %v1948_v51 = vpop.f32.mrb[3].mxu0  ;;  %v1973_v22 = vpop.f32.mrb[5].mxu1 }
  0xf3   : > { %v509_v31 = vpop.f32.mrb[6].mxu1 }
  0xf4   : > { %v1974_v25 = vpop.f32.mrb[7].mxu1 }
  0xf7   : > { %v417_v17 = vpop.f32.mrb[4].mxu0 }
  0xf8   : > { %v507_v18 = vadd.f32 %v506_v46, %v417_v17  ;;  %v1951_v19 = vpop.f32.mrb[5].mxu0 }
  0xf9   : > { %v420_v41 = vpop.f32.mrb[6].mxu0  ;;  %v514_v21 = vpop.f32.mrb[8].mxu1 }
  0xfa   : > { %v510_v13 = vadd.f32 %v509_v31, %v420_v41  ;;  %v1952_v27 = vpop.f32.mrb[7].mxu0  ;;  %v1977_v28 = vpop.f32.mrb[9].mxu1 }
  0xfb   : > { %v517_v33 = vpop.f32.mrb[10].mxu1 }
  0xfc   : > { %v1978_v35 = vpop.f32.mrb[11].mxu1 }
  0xff   : > { %v425_v38 = vpop.f32.mrb[8].mxu0 }
 0x100   : > { %v515_v39 = vadd.f32 %v514_v21, %v425_v38  ;;  %v1955_v43 = vpop.f32.mrb[9].mxu0 }
 0x101   : > { %v428_v40 = vpop.f32.mrb[10].mxu0  ;;  %v522_v52 = vpop.f32.mrb[12].mxu1 }
 0x102   : > { %v518_v42 = vadd.f32 %v517_v33, %v428_v40  ;;  %v1956_v44 = vpop.f32.mrb[11].mxu0  ;;  %v1981_v45 = vpop.f32.mrb[13].mxu1 }
 0x103   : > { %v525_v48 = vpop.f32.mrb[14].mxu1 }
 0x104   : > { %v1982_v50 = vpop.f32.mrb[15].mxu1 }
 0x107   : > { %v433_v54 = vpop.f32.mrb[12].mxu0 }
 0x108   : > { %v523_v53 = vadd.f32 %v522_v52, %v433_v54  ;;  %v1959_v49 = vpop.f32.mrb[13].mxu0 }
 0x109   : > { %v436_v55 = vpop.f32.mrb[14].mxu0  ;;  %v530_v10 = vpop.f32.mrb[16].mxu1 }
 0x10a   : > { %v526_v56 = vadd.f32 %v525_v48, %v436_v55  ;;  %v1960_v8 = vpop.f32.mrb[15].mxu0  ;;  %v1985_v11 = vpop.f32.mrb[17].mxu1 }
 0x10b   : > { %v533_v58 = vpop.f32.mrb[18].mxu1 }
 0x10c   : > { %v1986_v59 = vpop.f32.mrb[19].mxu1 }
 0x10f   : > { %v441_v23 = vpop.f32.mrb[16].mxu0 }
 0x110   : > { %v531_v60 = vadd.f32 %v530_v10, %v441_v23  ;;  %v1963_v14 = vpop.f32.mrb[17].mxu0 }
 0x111   : > { %v444_v57 = vpop.f32.mrb[18].mxu0  ;;  %v733_v0 = vpop.f32.mrb[20].mxu1 }
 0x112   : > { %v534_v2 = vadd.f32 %v533_v58, %v444_v57  ;;  %v1964_v3 = vpop.f32.mrb[19].mxu0  ;;  %v2013_v32 = vpop.f32.mrb[21].mxu1 }
 0x113   : > { %v736_v4 = vpop.f32.mrb[22].mxu1 }
 0x114   : > { %v2014_v29 = vpop.f32.mrb[23].mxu1 }
 0x117   : > { %v607_v30 = vpop.f32.mrb[20].mxu0 }
 0x118   : > { %v646_v61 = vadd.f32 %v607_v30, %v499_v24  ;;  %v1991_v9 = vpop.f32.mrb[21].mxu0 }
 0x119   : > { %v610_v26 = vpop.f32.mrb[22].mxu0  ;;  %v741_v15 = vpop.f32.mrb[24].mxu1 }
 0x11a   : > { %v647_v36 = vadd.f32 %v610_v26, %v502_v47  ;;  %v772_v62 = vadd.f32 %v733_v0, %v646_v61  ;;  %v1992_v16 = vpop.f32.mrb[23].mxu0  ;;  %v2017_v7 = vpop.f32.mrb[25].mxu1 }
 0x11b   : > { %v744_v63 = vpop.f32.mrb[26].mxu1 }
 0x11c   : > { %v773_v5 = vadd.f32 %v736_v4, %v647_v36  ;;  %v2018_v6 = vpop.f32.mrb[27].mxu1 }
 0x11f   : > { %v615_v12 = vpop.f32.mrb[24].mxu0 }
 0x120   : > { %v648_v20 = vadd.f32 %v615_v12, %v507_v18  ;;  %v1995_v34 = vpop.f32.mrb[25].mxu0 }
 0x121   : > { %v618_v37 = vpop.f32.mrb[26].mxu0  ;;  %v749_v46 = vpop.f32.mrb[28].mxu1 }
 0x122   : > { %v649_v51 = vadd.f32 %v618_v37, %v510_v13  ;;  %v774_v22 = vadd.f32 %v741_v15, %v648_v20  ;;  %v1996_v31 = vpop.f32.mrb[27].mxu0  ;;  %v2021_v25 = vpop.f32.mrb[29].mxu1 }
 0x123   : > { %v752_v24 = vpop.f32.mrb[30].mxu1 }
 0x124   : > { %v775_v17 = vadd.f32 %v744_v63, %v649_v51  ;;  %v2022_v19 = vpop.f32.mrb[31].mxu1 }
 0x127   : > { %v623_v41 = vpop.f32.mrb[28].mxu0 }
 0x128   : > { %v650_v47 = vadd.f32 %v623_v41, %v515_v39  ;;  %v1999_v21 = vpop.f32.mrb[29].mxu0 }
 0x129   : > { %v626_v27 = vpop.f32.mrb[30].mxu0  ;;  %v757_v28 = vpop.f32.mrb[32].mxu1 }
 0x12a   : > { %v651_v33 = vadd.f32 %v626_v27, %v518_v42  ;;  %v776_v35 = vadd.f32 %v749_v46, %v650_v47  ;;  %v2000_v38 = vpop.f32.mrb[31].mxu0  ;;  %v2025_v43 = vpop.f32.mrb[33].mxu1 }
 0x12b   : > { %v760_v18 = vpop.f32.mrb[34].mxu1 }
 0x12c   : > { %v777_v40 = vadd.f32 %v752_v24, %v651_v33  ;;  %v2026_v52 = vpop.f32.mrb[35].mxu1 }
 0x12f   : > { %v631_v44 = vpop.f32.mrb[32].mxu0 }
 0x130   : > { %v652_v13 = vadd.f32 %v631_v44, %v523_v53  ;;  %v2003_v45 = vpop.f32.mrb[33].mxu0 }
 0x131   : > { %v634_v48 = vpop.f32.mrb[34].mxu0  ;;  %v765_v50 = vpop.f32.mrb[36].mxu1 }
 0x132   : > { %v653_v54 = vadd.f32 %v634_v48, %v526_v56  ;;  %v778_v49 = vadd.f32 %v757_v28, %v652_v13  ;;  %v2004_v55 = vpop.f32.mrb[35].mxu0  ;;  %v2029_v10 = vpop.f32.mrb[37].mxu1  ;;  %v2214_v56 = vld [vmem:[%s2851_s3] sm:$0xff]  }
 0x133   : > { %v768_v39 = vpop.f32.mrb[38].mxu1  ;;  %2142 = vmatpush3.bf16.msra.mxu1 %v2214_v56 }
 0x134   : > { %v779_v8 = vadd.f32 %v760_v18, %v653_v54  ;;  %v2030_v11 = vpop.f32.mrb[39].mxu1 }
 0x137   : > { %v639_v58 = vpop.f32.mrb[36].mxu0 }
 0x138   : > { %v654_v42 = vadd.f32 %v639_v58, %v531_v60  ;;  %v2007_v59 = vpop.f32.mrb[37].mxu0 }
 0x139   : > { %v642_v23 = vpop.f32.mrb[38].mxu0  ;;  %v1013_v14 = vpop.f32.mrb[40].mxu1 }
 0x13a   : > { %v655_v57 = vadd.f32 %v642_v23, %v534_v2  ;;  %v780_v0 = vadd.f32 %v765_v50, %v654_v42  ;;  %v2008_v3 = vpop.f32.mrb[39].mxu0  ;;  %v2057_v32 = vpop.f32.mrb[41].mxu1 }
 0x13b   : > { %v1016_v53 = vpop.f32.mrb[42].mxu1 }
 0x13c   : > { %v781_v4 = vadd.f32 %v768_v39, %v655_v57  ;;  %v2058_v29 = vpop.f32.mrb[43].mxu1 }
 0x13f   : > { %v894_v30 = vpop.f32.mrb[40].mxu0 }
 0x140   : > { %v933_v61 = vadd.f32 %v894_v30, %v772_v62  ;;  %v2035_v9 = vpop.f32.mrb[41].mxu0 }
 0x141   : > { %v897_v26 = vpop.f32.mrb[42].mxu0  ;;  %v1021_v60 = vpop.f32.mrb[44].mxu1 }
 0x142   : > { %v934_v15 = vadd.f32 %v897_v26, %v773_v5  ;;  %v1052_v36 = vadd.f32 %v1013_v14, %v933_v61  ;;  %v2036_v16 = vpop.f32.mrb[43].mxu0  ;;  %v2061_v2 = vpop.f32.mrb[45].mxu1 }
 0x143   : > { %v1024_v7 = vpop.f32.mrb[46].mxu1 }
 0x144   : > { %v1053_v63 = vadd.f32 %v1016_v53, %v934_v15  ;;  %v2062_v6 = vpop.f32.mrb[47].mxu1 }
 0x147   : > { %v902_v12 = vpop.f32.mrb[44].mxu0 }
 0x148   : > { %v935_v20 = vadd.f32 %v902_v12, %v774_v22  ;;  %v2039_v34 = vpop.f32.mrb[45].mxu0 }
 0x149   : > { %v905_v37 = vpop.f32.mrb[46].mxu0  ;;  %v1029_v46 = vpop.f32.mrb[48].mxu1 }
 0x14a   : > { %v936_v51 = vadd.f32 %v905_v37, %v775_v17  ;;  %v1054_v31 = vadd.f32 %v1021_v60, %v935_v20  ;;  %v2040_v25 = vpop.f32.mrb[47].mxu0  ;;  %v2065_v24 = vpop.f32.mrb[49].mxu1 }
 0x14b   : > { %v1032_v62 = vpop.f32.mrb[50].mxu1 }
 0x14c   : > { %v1055_v19 = vadd.f32 %v1024_v7, %v936_v51  ;;  %v2066_v41 = vpop.f32.mrb[51].mxu1 }
 0x14f   : > { %v910_v47 = vpop.f32.mrb[48].mxu0 }
 0x150   : > { %v937_v5 = vadd.f32 %v910_v47, %v776_v35  ;;  %v2043_v21 = vpop.f32.mrb[49].mxu0 }
 0x151   : > { %v913_v27 = vpop.f32.mrb[50].mxu0  ;;  %v1037_v28 = vpop.f32.mrb[52].mxu1 }
 0x152   : > { %v938_v33 = vadd.f32 %v913_v27, %v777_v40  ;;  %v1056_v38 = vadd.f32 %v1029_v46, %v937_v5  ;;  %v2044_v43 = vpop.f32.mrb[51].mxu0  ;;  %v2069_v18 = vpop.f32.mrb[53].mxu1 }
 0x153   : > { %v1040_v22 = vpop.f32.mrb[54].mxu1 }
 0x154   : > { %v1057_v52 = vadd.f32 %v1032_v62, %v938_v33  ;;  %v2070_v44 = vpop.f32.mrb[55].mxu1 }
 0x157   : > { %v918_v13 = vpop.f32.mrb[52].mxu0 }
 0x158   : > { %v939_v17 = vadd.f32 %v918_v13, %v778_v49  ;;  %v2047_v45 = vpop.f32.mrb[53].mxu0 }
 0x159   : > { %v921_v48 = vpop.f32.mrb[54].mxu0  ;;  %v1045_v50 = vpop.f32.mrb[56].mxu1 }
 0x15a   : > { %v940_v54 = vadd.f32 %v921_v48, %v779_v8  ;;  %v1058_v55 = vadd.f32 %v1037_v28, %v939_v17  ;;  %v2048_v10 = vpop.f32.mrb[55].mxu0  ;;  %v2073_v39 = vpop.f32.mrb[57].mxu1 }
 0x15b   : > { %v1048_v35 = vpop.f32.mrb[58].mxu1 }
 0x15c   : > { %v1059_v11 = vadd.f32 %v1040_v22, %v940_v54  ;;  %v2074_v58 = vpop.f32.mrb[59].mxu1 }
 0x15f   : > { %v926_v42 = vpop.f32.mrb[56].mxu0 }
 0x160   : > { %v941_v40 = vadd.f32 %v926_v42, %v780_v0  ;;  %v2051_v59 = vpop.f32.mrb[57].mxu0 }
 0x161   : > { %v929_v23 = vpop.f32.mrb[58].mxu0  ;;  %v1276_v14 = vpop.f32.mrb[60].mxu1 }
 0x162   : > { %v942_v57 = vadd.f32 %v929_v23, %v781_v4  ;;  %v1060_v3 = vadd.f32 %v1045_v50, %v941_v40  ;;  %v2052_v32 = vpop.f32.mrb[59].mxu0  ;;  %v2101_v53 = vpop.f32.mrb[61].mxu1 }
 0x163   : > { %v1279_v49 = vpop.f32.mrb[62].mxu1 }
 0x164   : > { %v1061_v29 = vadd.f32 %v1048_v35, %v942_v57  ;;  %v2102_v56 = vpop.f32.mrb[63].mxu1 }
 0x167   : > { %v1135_v30 = vpop.f32.mrb[60].mxu0 }
 0x168   : > { %v1174_v8 = vadd.f32 %v1135_v30, %v1052_v36  ;;  %v2079_v61 = vpop.f32.mrb[61].mxu0 }
 0x169   : > { %v1138_v9 = vpop.f32.mrb[62].mxu0  ;;  %v1284_v26 = vpop.f32.mrb[64].mxu1 }
 0x16a   : > { %v1175_v60 = vadd.f32 %v1138_v9, %v1053_v63  ;;  %v1315_v15 = vadd.f32 %v1276_v14, %v1174_v8  ;;  %v2080_v16 = vpop.f32.mrb[63].mxu0  ;;  %v2105_v2 = vpop.f32.mrb[65].mxu1 }
 0x16b   : > { %v1287_v0 = vpop.f32.mrb[66].mxu1 }
 0x16c   : > { %v1316_v7 = vadd.f32 %v1279_v49, %v1175_v60  ;;  %v2106_v6 = vpop.f32.mrb[67].mxu1 }
 0x16f   : > { %v1143_v12 = vpop.f32.mrb[64].mxu0 }
 0x170   : > { %v1176_v4 = vadd.f32 %v1143_v12, %v1054_v31  ;;  %v2083_v20 = vpop.f32.mrb[65].mxu0 }
 0x171   : > { %v1146_v34 = vpop.f32.mrb[66].mxu0  ;;  %v1292_v37 = vpop.f32.mrb[68].mxu1 }
 0x172   : > { %v1177_v46 = vadd.f32 %v1146_v34, %v1055_v19  ;;  %v1317_v51 = vadd.f32 %v1284_v26, %v1176_v4  ;;  %v2084_v25 = vpop.f32.mrb[67].mxu0  ;;  %v2109_v24 = vpop.f32.mrb[69].mxu1 }
 0x173   : > { %v1295_v36 = vpop.f32.mrb[70].mxu1 }
 0x174   : > { %v1318_v62 = vadd.f32 %v1287_v0, %v1177_v46  ;;  %v2110_v41 = vpop.f32.mrb[71].mxu1 }
 0x177   : > { %v1151_v47 = vpop.f32.mrb[68].mxu0 }
 0x178   : > { %v1178_v63 = vadd.f32 %v1151_v47, %v1056_v38  ;;  %v2087_v5 = vpop.f32.mrb[69].mxu0 }
 0x179   : > { %v1154_v21 = vpop.f32.mrb[70].mxu0  ;;  %v1300_v27 = vpop.f32.mrb[72].mxu1 }
 0x17a   : > { %v1179_v28 = vadd.f32 %v1154_v21, %v1057_v52  ;;  %v1319_v33 = vadd.f32 %v1292_v37, %v1178_v63  ;;  %v2088_v43 = vpop.f32.mrb[71].mxu0  ;;  %v2113_v18 = vpop.f32.mrb[73].mxu1 }
 0x17b   : > { %v1303_v31 = vpop.f32.mrb[74].mxu1 }
 0x17c   : > { %v2717_v22 = vadd.f32 %v1295_v36, %v1179_v28  ;;  %v2114_v44 = vpop.f32.mrb[75].mxu1 }
 0x17f   : > { %v1159_v19 = vpop.f32.mrb[72].mxu0 }
 0x180   : > { %v1180_v13 = vadd.f32 %v1159_v19, %v1058_v55  ;;  %v2091_v17 = vpop.f32.mrb[73].mxu0 }
 0x181   : > { %v1162_v45 = vpop.f32.mrb[74].mxu0  ;;  %v1308_v48 = vpop.f32.mrb[76].mxu1 }
 0x182   : > { %v1181_v50 = vadd.f32 %v1162_v45, %v1059_v11  ;;  %v2719_v54 = vadd.f32 %v1300_v27, %v1180_v13  ;;  %v2092_v38 = vpop.f32.mrb[75].mxu0  ;;  %v2117_v10 = vpop.f32.mrb[77].mxu1  ;;  %v2730_v11 = vld [vmem:[%s2850_s2] ss:$0 sm:$0xff] }
 0x183   : > { %v1311_v39 = vpop.f32.mrb[78].mxu1 }
 0x184   : > { %v2721_v35 = vadd.f32 %v1303_v31, %v1181_v50  ;;  %v2118_v52 = vpop.f32.mrb[79].mxu1 }
 0x187   : > { %v1167_v58 = vpop.f32.mrb[76].mxu0 }
 0x188   : > { %v1182_v42 = vadd.f32 %v1167_v58, %v1060_v3  ;;  %v2095_v40 = vpop.f32.mrb[77].mxu0 }
 0x189   : > { %v1170_v59 = vpop.f32.mrb[78].mxu0 }
 0x18a   : > { %v1183_v23 = vadd.f32 %v1170_v59, %v1061_v29  ;;  %v2723_v14 = vadd.f32 %v1308_v48, %v1182_v42  ;;  %v2096_v55 = vpop.f32.mrb[79].mxu0 }
 0x18c   : > { %v2725_v57 = vadd.f32 %v1311_v39, %v1183_v23 }
 0x18f   : > { %v1395_v32 = vpop.f32.mrb[80].mxu0 }
 0x190   : > { %v1434_v53 = vadd.f32 %v1395_v32, %v1315_v15  ;;  %v2123_v49 = vpop.f32.mrb[81].mxu0 }
 0x191   : > { %v1398_v56 = vpop.f32.mrb[82].mxu0 }
 0x192   : > { %v1451_v30 = vadd.f32 %v2730_v11, %v1434_v53  ;;  %v1435_v3 = vadd.f32 %v1398_v56, %v1316_v7  ;;  %v2124_v8 = vpop.f32.mrb[83].mxu0 }
 0x194   : > { %v1471_v61 = vmul.f32 0.2, %v1451_v30  ;;  %v1452_v29 = vadd.f32 %v2730_v11, %v1435_v3  ;;  %vm1461_vm8 = vcmp.ge.f32.partialorder %v1451_v30, 0.0 }
 0x196   : > { %v1472_v9 = vmul.f32 0.2, %v1452_v29  ;;  %v2734_v26 = vsel %vm1461_vm8, %v1451_v30, %v1471_v61  ;;  %vm1462_vm9 = vcmp.ge.f32.partialorder %v1452_v29, 0.0 }
 0x197   : > { %v1403_v60 = vpop.f32.mrb[84].mxu0  ;;  %v1491_v16 = vmul.f32 %v2734_v26, %v2734_v26 }
 0x198   : > { %v1436_v2 = vadd.f32 %v1403_v60, %v1317_v51  ;;  %v2127_v15 = vpop.f32.mrb[85].mxu0  ;;  %v2738_v0 = vsel %vm1462_vm9, %v1452_v29, %v1472_v9 }
 0x199   : > { %v1406_v6 = vpop.f32.mrb[86].mxu0  ;;  %v1501_v7 = vsel %vm359_vm1, %v1491_v16, 0.0  ;;  %v1492_v12 = vmul.f32 %v2738_v0, %v2738_v0 }
 0x19a   : > { %v1453_v4 = vadd.f32 %v2730_v11, %v1436_v2  ;;  %v1437_v20 = vadd.f32 %v1406_v6, %v1318_v62  ;;  %1502 = vadd.xlane.f32.xlu0 %v1501_v7  ;;  %v2128_v34 = vpop.f32.mrb[87].mxu0 }
 0x19b   : > { %v1504_v51 = vsel %vm359_vm1, %v1492_v12, 0.0 }
 0x19c   : > { %v1473_v37 = vmul.f32 0.2, %v1453_v4  ;;  %v1454_v46 = vadd.f32 %v2730_v11, %v1437_v20  ;;  %vm1463_vm10 = vcmp.ge.f32.partialorder %v1453_v4, 0.0 }
 0x19e   : > { %v1474_v25 = vmul.f32 0.2, %v1454_v46  ;;  %1505 = vadd.xlane.f32.xlu0 %v1504_v51  ;;  %v2746_v24 = vsel %vm1463_vm10, %v1453_v4, %v1473_v37  ;;  %vm1464_vm11 = vcmp.ge.f32.partialorder %v1454_v46, 0.0 }
 0x19f   : > { %v1411_v36 = vpop.f32.mrb[88].mxu0  ;;  %v1493_v41 = vmul.f32 %v2746_v24, %v2746_v24 }
 0x1a0   : > { %v1438_v47 = vadd.f32 %v1411_v36, %v1319_v33  ;;  %v2131_v63 = vpop.f32.mrb[89].mxu0  ;;  %v2750_v62 = vsel %vm1464_vm11, %v1454_v46, %v1474_v25 }
 0x1a1   : > { %v1414_v5 = vpop.f32.mrb[90].mxu0  ;;  %v1507_v21 = vsel %vm359_vm1, %v1493_v41, 0.0  ;;  %v1494_v27 = vmul.f32 %v2750_v62, %v2750_v62 }
 0x1a2   : > { %v1455_v28 = vadd.f32 %v2730_v11, %v1438_v47  ;;  %v1439_v43 = vadd.f32 %v1414_v5, %v2717_v22  ;;  %1508 = vadd.xlane.f32.xlu1 %v1507_v21  ;;  %v2132_v18 = vpop.f32.mrb[91].mxu0 }
 0x1a3   : > { %v1510_v33 = vsel %vm359_vm1, %v1494_v27, 0.0 }
 0x1a4   : > { %v1475_v31 = vmul.f32 0.2, %v1455_v28  ;;  %v1456_v44 = vadd.f32 %v2730_v11, %v1439_v43  ;;  %vm1465_vm12 = vcmp.ge.f32.partialorder %v1455_v28, 0.0 }
 0x1a6   : > { %v1476_v19 = vmul.f32 0.2, %v1456_v44  ;;  %1511 = vadd.xlane.f32.xlu1 %v1510_v33  ;;  %v2759_v13 = vsel %vm1465_vm12, %v1455_v28, %v1475_v31  ;;  %vm1466_vm13 = vcmp.ge.f32.partialorder %v1456_v44, 0.0 }
 0x1a7   : > { %v1419_v17 = vpop.f32.mrb[92].mxu0  ;;  %v1495_v45 = vmul.f32 %v2759_v13, %v2759_v13 }
 0x1a8   : > { %v1440_v48 = vadd.f32 %v1419_v17, %v2719_v54  ;;  %v2135_v22 = vpop.f32.mrb[93].mxu0  ;;  %v2764_v50 = vsel %vm1466_vm13, %v1456_v44, %v1476_v19 }
 0x1a9   : > { %v1422_v38 = vpop.f32.mrb[94].mxu0  ;;  %v1513_v10 = vsel %vm359_vm1, %v1495_v45, 0.0  ;;  %v1496_v39 = vmul.f32 %v2764_v50, %v2764_v50 }
 0x1aa   : > { %v1457_v52 = vadd.f32 %v2730_v11, %v1440_v48  ;;  %v1441_v58 = vadd.f32 %v1422_v38, %v2721_v35  ;;  %1514 = vadd.xlane.f32.xlu0 %v1513_v10  ;;  %v2136_v42 = vpop.f32.mrb[95].mxu0 }
 0x1ab   : > { %v1516_v40 = vsel %vm359_vm1, %v1496_v39, 0.0 }
 0x1ac   : > { %v1477_v59 = vmul.f32 0.2, %v1457_v52  ;;  %v1458_v54 = vadd.f32 %v2730_v11, %v1441_v58  ;;  %1517 = vadd.xlane.f32.xlu1 %v1516_v40  ;;  %vm1467_vm14 = vcmp.ge.f32.partialorder %v1457_v52, 0.0 }
 0x1ae   : > { %v1478_v23 = vmul.f32 0.2, %v1458_v54  ;;  %v2773_v55 = vsel %vm1467_vm14, %v1457_v52, %v1477_v59  ;;  %vm1468_vm15 = vcmp.ge.f32.partialorder %v1458_v54, 0.0 }
 0x1af   : > { %v1427_v32 = vpop.f32.mrb[96].mxu0  ;;  %v1497_v53 = vmul.f32 %v2773_v55, %v2773_v55 }
 0x1b0   : > { %v1442_v49 = vadd.f32 %v1427_v32, %v2723_v14  ;;  %v2139_v35 = vpop.f32.mrb[97].mxu0  ;;  %v2778_v56 = vsel %vm1468_vm15, %v1458_v54, %v1478_v23 }
 0x1b1   : > { %v1430_v30 = vpop.f32.mrb[98].mxu0  ;;  %v1519_v3 = vsel %vm359_vm1, %v1497_v53, 0.0  ;;  %v1498_v8 = vmul.f32 %v2778_v56, %v2778_v56 }
 0x1b2   : > { %v1459_v61 = vadd.f32 %v2730_v11, %v1442_v49  ;;  %v1443_v29 = vadd.f32 %v1430_v30, %v2725_v57  ;;  %1520 = vadd.xlane.f32.xlu0 %v1519_v3  ;;  %v2140_v9 = vpop.f32.mrb[99].mxu0 }
 0x1b3   : > { %v1522_v60 = vsel %vm359_vm1, %v1498_v8, 0.0 }
 0x1b4   : > { %v1479_v16 = vmul.f32 0.2, %v1459_v61  ;;  %v1460_v14 = vadd.f32 %v2730_v11, %v1443_v29  ;;  %1523 = vadd.xlane.f32.xlu1 %v1522_v60  ;;  %vm1469_vm2 = vcmp.ge.f32.partialorder %v1459_v61, 0.0 }
 0x1b6   : > { %v1480_v2 = vmul.f32 0.2, %v1460_v14  ;;  %v2787_v15 = vsel %vm1469_vm2, %v1459_v61, %v1479_v16  ;;  %vm1470_vm3 = vcmp.ge.f32.partialorder %v1460_v14, 0.0 }
 0x1b7   : > { %v1499_v6 = vmul.f32 %v2787_v15, %v2787_v15 }
 0x1b8   : > { %v2791_v7 = vsel %vm1470_vm3, %v1460_v14, %v1480_v2 }
 0x1b9   : > { %v1525_v57 = vsel %vm359_vm1, %v1499_v6, 0.0  ;;  %v1500_v12 = vmul.f32 %v2791_v7, %v2791_v7 }
 0x1ba   : > { %1526 = vadd.xlane.f32.xlu0 %v1525_v57 }
 0x1bb   : > { %v1528_v4 = vsel %vm359_vm1, %v1500_v12, 0.0 }
 0x1bc   : > { %1529 = vadd.xlane.f32.xlu1 %v1528_v4 }
 0x227   : > { %v1503_v11 = vpop.xlane.xlu0 %1502 }
 0x228   : > { %v1532_v20 = vmul.f32 0.0625, %v1503_v11 }
 0x22a   : > { %v1542_v34 = vadd.f32 1e-08, %v1532_v20 }
 0x22b   : > { %v1506_v37 = vpop.xlane.xlu0 %1505 }
 0x22c   : > { %v1533_v46 = vmul.f32 0.0625, %v1506_v37  ;;  %2215 = vrsqrt.f32 %v1542_v34 }
 0x22e   : > { %v1543_v51 = vadd.f32 1e-08, %v1533_v46 }
 0x22f   : > { %v1509_v25 = vpop.xlane.xlu1 %1508 }
 0x230   : > { %2217 = vrsqrt.f32 %v1543_v51  ;;  %v1534_v36 = vmul.f32 0.0625, %v1509_v25 }
 0x232   : > { %v1544_v41 = vadd.f32 1e-08, %v1534_v36 }
 0x233   : > { %v1512_v47 = vpop.xlane.xlu1 %1511 }
 0x234   : > { %v1535_v63 = vmul.f32 0.0625, %v1512_v47  ;;  %2219 = vrsqrt.f32 %v1544_v41 }
 0x236   : > { %v1545_v5 = vadd.f32 1e-08, %v1535_v63  ;;  %v2216_v27 = vpop.eup %2215 }
 0x237   : > { %v1515_v21 = vpop.xlane.xlu0 %1514  ;;  %v1562_v33 = vmul.f32 %v2216_v27, %v2734_v26 }
 0x238   : > { %2221 = vrsqrt.f32 %v1545_v5  ;;  %v1536_v28 = vmul.f32 0.0625, %v1515_v21 }
 0x239   : > { %v1518_v43 = vpop.xlane.xlu1 %1517 }
 0x23a   : > { %v2218_v18 = vpop.eup %2217  ;;  %v1546_v31 = vadd.f32 1e-08, %v1536_v28  ;;  %v1537_v44 = vmul.f32 0.0625, %v1518_v43 }
 0x23b   : > { %v1563_v19 = vmul.f32 %v2218_v18, %v2738_v0 }
 0x23c   : > { %v1547_v17 = vadd.f32 1e-08, %v1537_v44  ;;  %2223 = vrsqrt.f32 %v1546_v31 }
 0x23d   : > { %v1572_v45 = vpack.c.bf16 %v1563_v19, %v1562_v33 }
 0x23e   : > { %2225 = vrsqrt.f32 %v1547_v17  ;;  %v2220_v22 = vpop.eup %2219 }
 0x23f   : > { %2144 = vmatmul.mubr.msk.bf16.vlgmr.msra.gmra.mrb[80].mxu1 %vm359_vm1, %v1572_v45  ;;  %v1521_v48 = vpop.xlane.xlu0 %1520  ;;  %v1564_v26 = vmul.f32 %v2220_v22, %v2746_v24 }
 0x240   : > { %v1538_v38 = vmul.f32 0.0625, %v1521_v48  ;;  %2147 = vmatprep.mubr.msk.bf16.mxu1 %vm2260_vm0, %v2259_v1 }
 0x241   : > { %v1524_v10 = vpop.xlane.xlu1 %1523 }
 0x242   : > { %v2222_v39 = vpop.eup %2221  ;;  %v1548_v52 = vadd.f32 1e-08, %v1538_v38  ;;  %v1539_v58 = vmul.f32 0.0625, %v1524_v10 }
 0x243   : > { %v1565_v0 = vmul.f32 %v2222_v39, %v2750_v62 }
 0x244   : > { %v1549_v42 = vadd.f32 1e-08, %v1539_v58  ;;  %2227 = vrsqrt.f32 %v1548_v52 }
 0x245   : > { %v1573_v40 = vpack.c.bf16 %v1565_v0, %v1564_v26 }
 0x246   : > { %2229 = vrsqrt.f32 %v1549_v42  ;;  %v2224_v59 = vpop.eup %2223 }
 0x247   : > { %2148 = vmatmul.mubr.msk.bf16.gmra.mrb[84].mxu1 %vm359_vm1, %v1573_v40  ;;  %v1527_v54 = vpop.xlane.xlu0 %1526  ;;  %v1566_v62 = vmul.f32 %v2224_v59, %v2759_v13 }
 0x248   : > { %v2226_v23 = vpop.eup %2225  ;;  %v1540_v32 = vmul.f32 0.0625, %v1527_v54  ;;  %2151 = vmatprep.mubr.msk.bf16.mxu1 %vm2260_vm0, %v2259_v1 }
 0x249   : > { %v1530_v53 = vpop.xlane.xlu1 %1529  ;;  %v1567_v49 = vmul.f32 %v2226_v23, %v2764_v50 }
 0x24a   : > { %v1550_v35 = vadd.f32 1e-08, %v1540_v32  ;;  %v1541_v24 = vmul.f32 0.0625, %v1530_v53 }
 0x24b   : > { %v1574_v3 = vpack.c.bf16 %v1567_v49, %v1566_v62 }
 0x24c   : > { %v1551_v30 = vadd.f32 1e-08, %v1541_v24  ;;  %2231 = vrsqrt.f32 %v1550_v35 }
 0x24e   : > { %2233 = vrsqrt.f32 %v1551_v30  ;;  %v2228_v8 = vpop.eup %2227 }
 0x24f   : > { %2152 = vmatmul.mubr.msk.bf16.gmra.mrb[88].mxu1 %vm359_vm1, %v1574_v3  ;;  %v1568_v50 = vmul.f32 %v2228_v8, %v2773_v55  ;;  %v1874_v55 = vld [vmem:[%s2852_s4] ss:$0 sm:$0xff] }
 0x250   : > { %v2230_v61 = vpop.eup %2229  ;;  %2155 = vmatprep.mubr.msk.bf16.mxu1 %vm2260_vm0, %v2259_v1 }
 0x251   : > { %v1569_v29 = vmul.f32 %v2230_v61, %v2778_v56 }
 0x253   : > { %v1575_v9 = vpack.c.bf16 %v1569_v29, %v1568_v50 }
 0x256   : > { %v2232_v60 = vpop.eup %2231 }
 0x257   : > { %2156 = vmatmul.mubr.msk.bf16.gmra.mrb[92].mxu1 %vm359_vm1, %v1575_v9  ;;  %v1570_v14 = vmul.f32 %v2232_v60, %v2787_v15 }
 0x258   : > { %v2234_v13 = vpop.eup %2233  ;;  %2159 = vmatprep.mubr.msk.bf16.mxu1 %vm2260_vm0, %v2259_v1 }
 0x259   : > { %v1571_v16 = vmul.f32 %v2234_v13, %v2791_v7 }
 0x25b   : > { %v1576_v2 = vpack.c.bf16 %v1571_v16, %v1570_v14 }
 0x25f   : > { %2160 = vmatmul.mubr.msk.bf16.gmra.mrb[96].mxu1 %vm359_vm1, %v1576_v2 }
 0x312   : > { %v1641_v1 = vpop.f32.mrb[80].mxu1 }
 0x313   : > { %v1642_v56 = vadd.f32 %v1874_v55, %v1641_v1  ;;  %v2145_v15 = vpop.f32.mrb[81].mxu1 }
 0x314   : > { %v1644_v6 = vpop.f32.mrb[82].mxu1 }
 0x315   : > { %1680 = vst [vmem:[%s2827_s7] sm:$0xff] %v1642_v56  ;;  %v1645_v7 = vadd.f32 %v1874_v55, %v1644_v6  ;;  %v2146_v57 = vpop.f32.mrb[83].mxu1 }
 0x317   : > { %1681 = vst [vmem:[%s2827_s7 + $0x8] sm:$0xff] %v1645_v7 }
 0x31a   : > { %v1649_v12 = vpop.f32.mrb[84].mxu1 }
 0x31b   : > { %v1650_v4 = vadd.f32 %v1874_v55, %v1649_v12  ;;  %v2149_v11 = vpop.f32.mrb[85].mxu1 }
 0x31c   : > { %v1652_v20 = vpop.f32.mrb[86].mxu1 }
 0x31d   : > { %1682 = vst [vmem:[%s2827_s7 + $0x10] sm:$0xff] %v1650_v4  ;;  %v1653_v34 = vadd.f32 %v1874_v55, %v1652_v20  ;;  %v2150_v37 = vpop.f32.mrb[87].mxu1 }
 0x31f   : > { %1683 = vst [vmem:[%s2827_s7 + $0x18] sm:$0xff] %v1653_v34 }
 0x322   : > { %v1657_v46 = vpop.f32.mrb[88].mxu1 }
 0x323   : > { %v1658_v51 = vadd.f32 %v1874_v55, %v1657_v46  ;;  %v2153_v25 = vpop.f32.mrb[89].mxu1 }
 0x324   : > { %v1660_v36 = vpop.f32.mrb[90].mxu1 }
 0x325   : > { %1684 = vst [vmem:[%s2827_s7 + $0x20] sm:$0xff] %v1658_v51  ;;  %v1661_v41 = vadd.f32 %v1874_v55, %v1660_v36  ;;  %v2154_v47 = vpop.f32.mrb[91].mxu1 }
 0x327   : > { %1685 = vst [vmem:[%s2827_s7 + $0x28] sm:$0xff] %v1661_v41 }
 0x32a   : > { %v1665_v63 = vpop.f32.mrb[92].mxu1 }
 0x32b   : > { %v1666_v5 = vadd.f32 %v1874_v55, %v1665_v63  ;;  %v2157_v21 = vpop.f32.mrb[93].mxu1 }
 0x32c   : > { %v1668_v27 = vpop.f32.mrb[94].mxu1 }
 0x32d   : > { %1686 = vst [vmem:[%s2827_s7 + $0x30] sm:$0xff] %v1666_v5  ;;  %v1669_v28 = vadd.f32 %v1874_v55, %v1668_v27  ;;  %v2158_v43 = vpop.f32.mrb[95].mxu1 }
 0x32f   : > { %1687 = vst [vmem:[%s2827_s7 + $0x38] sm:$0xff] %v1669_v28 }
 0x332   : > { %v1673_v18 = vpop.f32.mrb[96].mxu1 }
 0x333   : > { %v1674_v31 = vadd.f32 %v1874_v55, %v1673_v18  ;;  %v2161_v44 = vpop.f32.mrb[97].mxu1 }
 0x334   : > { %v1676_v33 = vpop.f32.mrb[98].mxu1 }
 0x335   : > { %1688 = vst [vmem:[%s2827_s7 + $0x40] sm:$0xff] %v1674_v31  ;;  %v1677_v19 = vadd.f32 %v1874_v55, %v1676_v33  ;;  %v2162_v17 = vpop.f32.mrb[99].mxu1 }
 0x337   : > { %1689 = vst [vmem:[%s2827_s7 + $0x48] sm:$0xff] %v1677_v19 }
 0x338 PF: > { %s15_s20 = sadd.s32 1, %s2257_s20   ;;  %s2854_s18 = smov %s2253_s19 }
 0x339   : > { %p12_p5 = scmp.ge.s32.totalorder %s15_s20, 4   ;;  %s2855_s19 = smov %s2857_s21 }
 0x33b   :  { %14 = sbr.rel (!%p12_p5) target bundleno = 2 (0x2), region = 78 }

</bundles_post_ra>
